<compile_context>
chip_gen: v7x
topology: tpu7x:2x2x1
jax: 0.10.0
libtpu: 0.0.40
codegen_flags: <defaults>
</compile_context>

<pallas_src>
import functools

import jax
import jax.numpy as jnp
from jax.experimental import pallas as pl
from jax.experimental.pallas import tpu as pltpu

BN_EPS = 1e-5
ACT_DTYPE = jnp.bfloat16

# (name, planes, num_blocks, first_stride) -- static architecture config.
LAYER_CFGS = (("layer1", 64, 2, 1), ("layer2", 128, 2, 2), ("layer3", 256, 2, 2))


def _round_up(x, m):
    return (x + m - 1) // m * m


# ----------------------------------------------------------------------------
# Pallas kernels
# ----------------------------------------------------------------------------
def _conv_bn_kernel(p_ref, w_ref, s_ref, b_ref, o_ref, acc_ref, *, relu):
    # p_ref: (TM, TK) bf16 patches tile, w_ref: (TK, TN) bf16 weight tile,
    # s/b: (1, TN) f32 folded BN, acc_ref: (TM, TN) f32 scratch.
    k = pl.program_id(2)

    @pl.when(k == 0)
    def _init():
        acc_ref[...] = jnp.zeros_like(acc_ref)

    acc_ref[...] += jnp.dot(p_ref[...], w_ref[...],
                            preferred_element_type=jnp.float32)

    @pl.when(k == pl.num_programs(2) - 1)
    def _finalize():
        acc = acc_ref[...] * s_ref[...] + b_ref[...]
        if relu:
            acc = jnp.maximum(acc, 0.0)
        o_ref[...] = acc.astype(o_ref.dtype)


def _conv_bn_res_kernel(p_ref, w_ref, s_ref, b_ref, r_ref, o_ref, acc_ref, *, relu):
    # Same as above with the BasicBlock residual fused into the epilogue.
    k = pl.program_id(2)

    @pl.when(k == 0)
    def _init():
        acc_ref[...] = jnp.zeros_like(acc_ref)

    acc_ref[...] += jnp.dot(p_ref[...], w_ref[...],
                            preferred_element_type=jnp.float32)

    @pl.when(k == pl.num_programs(2) - 1)
    def _finalize():
        acc = acc_ref[...] * s_ref[...] + b_ref[...]
        acc = acc + r_ref[...].astype(jnp.float32)
        if relu:
            acc = jnp.maximum(acc, 0.0)
        o_ref[...] = acc.astype(o_ref.dtype)


def _maxpool_kernel(*refs):
    # refs = 9 shifted-view input tiles + 1 output tile (all (TM, C)).
    out_ref = refs[-1]
    acc = refs[0][...]
    for r in refs[1:-1]:
        acc = jnp.maximum(acc, r[...])
    out_ref[...] = acc


# ----------------------------------------------------------------------------
# Helpers: BN folding, im2col, tile selection
# ----------------------------------------------------------------------------
def _fold_bn(bn):
    gamma, beta, mean, var = bn
    scale = gamma / jnp.sqrt(var + BN_EPS)
    bias = beta - mean * scale
    return (scale.reshape(1, -1).astype(jnp.float32),
            bias.reshape(1, -1).astype(jnp.float32))


def _im2col(x_nhwc, kh, kw, stride, padding):
    # TODO(synk): the im2col window loop could be folded into the kernel's K
    # reduction (in-kernel shifted reads) to avoid the ~KH*KW x HBM traffic;
    # kept as XLA glue here for robustness.
    n, h, w, c = x_nhwc.shape
    ho = (h + 2 * padding - kh) // stride + 1
    wo = (w + 2 * padding - kw) // stride + 1
    if padding > 0:
        x_nhwc = jnp.pad(
            x_nhwc, ((0, 0), (padding, padding), (padding, padding), (0, 0)))
    cols = []
    for i in range(kh):
        for j in range(kw):
            cols.append(
                x_nhwc[:, i: i + (ho - 1) * stride + 1: stride,
                          j: j + (wo - 1) * stride + 1: stride, :])
    patches = cols[0] if len(cols) == 1 else jnp.concatenate(cols, axis=-1)
    return patches.reshape(n * ho * wo, kh * kw * c), ho, wo


def _pick_tiles(m, k, n):
    # M tile: multiple of 16 (bf16 sublane packing), capped at 256.
    tm = min(256, _round_up(m, 16))
    m_pad = _round_up(m, tm)
    # K: pad to a multiple of 128, pick the largest 128-multiple divisor <= 512.
    k_pad = _round_up(k, 128)
    tk = 128
    cand = 256
    while cand <= min(512, k_pad):
        if k_pad % cand == 0:
            tk = cand
        cand += 128
    # Cout: pad to a multiple of 128 so stores are lane-dense; 256 tiles for MXU.
    n_pad = _round_up(n, 128)
    tn = 256 if n_pad % 256 == 0 else 128
    return tm, m_pad, tk, k_pad, tn, n_pad


# ----------------------------------------------------------------------------
# Conv + BN (+ residual) (+ ReLU): im2col + tiled Pallas matmul
# ----------------------------------------------------------------------------
def conv_bn(x_nhwc, weight_oihw, bn, *, stride, padding, relu, residual=None):
    """conv2d (no bias) + BatchNorm (inference) [+ residual] [+ ReLU]."""
    n = x_nhwc.shape[0]
    cout, cin, kh, kw = weight_oihw.shape
    patches, ho, wo = _im2col(x_nhwc, kh, kw, stride, padding)
    m, kdim = patches.shape

    # OIHW -> (KH, KW, Cin, Cout) -> (KH*KW*Cin, Cout), matching patch order.
    w2 = jnp.transpose(weight_oihw, (2, 3, 1, 0)).reshape(kh * kw * cin, cout)
    scale, bias = _fold_bn(bn)

    tm, m_pad, tk, k_pad, tn, n_pad = _pick_tiles(m, kdim, cout)

    patches_p = jnp.pad(patches, ((0, m_pad - m), (0, k_pad - kdim))).astype(ACT_DTYPE)
    w_p = jnp.pad(w2, ((0, k_pad - kdim), (0, n_pad - cout))).astype(ACT_DTYPE)
    scale_p = jnp.pad(scale, ((0, 0), (0, n_pad - cout)))
    bias_p = jnp.pad(bias, ((0, 0), (0, n_pad - cout)))

    grid = (m_pad // tm, n_pad // tn, k_pad // tk)

    in_specs = [
        pl.BlockSpec((tm, tk), lambda i, j, k: (i, k)),   # patches
        pl.BlockSpec((tk, tn), lambda i, j, k: (k, j)),   # weights
        pl.BlockSpec((1, tn), lambda i, j, k: (0, j)),    # BN scale
        pl.BlockSpec((1, tn), lambda i, j, k: (0, j)),    # BN bias
    ]
    operands = [patches_p, w_p, scale_p, bias_p]
    kernel = functools.partial(_conv_bn_kernel, relu=relu)
    bytes_accessed = 2 * (m_pad * k_pad + k_pad * n_pad + m_pad * n_pad)

    if residual is not None:
        res_p = jnp.pad(residual.astype(ACT_DTYPE).reshape(m, cout),
                        ((0, m_pad - m), (0, n_pad - cout)))
        in_specs.append(pl.BlockSpec((tm, tn), lambda i, j, k: (i, j)))
        operands.append(res_p)
        kernel = functools.partial(_conv_bn_res_kernel, relu=relu)
        bytes_accessed += 2 * m_pad * n_pad

    out = pl.pallas_call(
        kernel,
        out_shape=jax.ShapeDtypeStruct((m_pad, n_pad), ACT_DTYPE),
        grid_spec=pltpu.PrefetchScalarGridSpec(
            num_scalar_prefetch=0,
            grid=grid,
            in_specs=in_specs,
            out_specs=pl.BlockSpec((tm, tn), lambda i, j, k: (i, j)),
            scratch_shapes=[pltpu.VMEM((tm, tn), jnp.float32)],
        ),
        compiler_params=pltpu.CompilerParams(
            dimension_semantics=("parallel", "parallel", "arbitrary"),
            vmem_limit_bytes=32 * 1024 * 1024,
        ),
        cost_estimate=pl.CostEstimate(
            flops=2 * m_pad * n_pad * k_pad,
            transcendentals=0,
            bytes_accessed=bytes_accessed,
        ),
    )(*operands)

    return out[:m, :cout].reshape(n, ho, wo, cout)


# ----------------------------------------------------------------------------
# MaxPool 3x3 stride 2 pad 1 (nine shifted views, no 9x stacked tensor)
# ----------------------------------------------------------------------------
def maxpool_3x3_s2_p1(x_nhwc):
    n, h, w, c = x_nhwc.shape
    k, s, p = 3, 2, 1
    ho = (h + 2 * p - k) // s + 1
    wo = (w + 2 * p - k) // s + 1
    xp = jnp.pad(x_nhwc, ((0, 0), (p, p), (p, p), (0, 0)),
                 constant_values=-float("inf"))

    m = n * ho * wo
    tm = min(512, _round_up(m, 16))
    m_pad = _round_up(m, tm)

    views = []
    for i in range(k):
        for j in range(k):
            v = xp[:, i: i + (ho - 1) * s + 1: s,
                      j: j + (wo - 1) * s + 1: s, :].reshape(m, c)
            if m_pad != m:
                v = jnp.pad(v, ((0, m_pad - m), (0, 0)))
            views.append(v)

    spec = pl.BlockSpec((tm, c), lambda i: (i, 0))
    out = pl.pallas_call(
        _maxpool_kernel,
        out_shape=jax.ShapeDtypeStruct((m_pad, c), x_nhwc.dtype),
        grid_spec=pltpu.PrefetchScalarGridSpec(
            num_scalar_prefetch=0,
            grid=(m_pad // tm,),
            in_specs=[spec] * 9,
            out_specs=spec,
        ),
        compiler_params=pltpu.CompilerParams(
            dimension_semantics=("parallel",)),
    )(*views)
    return out[:m].reshape(n, ho, wo, c)


# ----------------------------------------------------------------------------
# Parameter construction (deterministic, synthetic weights; arrays only --
# strides/topology stay in the static LAYER_CFGS so jit tracing never sees
# them as dynamic values).
# ----------------------------------------------------------------------------
def _init_conv(key, cout, cin, kh, kw):
    return 0.05 * jax.random.normal(key, (cout, cin, kh, kw), jnp.float32)


def _init_bn(key, c):
    k1, k2, k3, k4 = jax.random.split(key, 4)
    gamma = 1.0 + 0.1 * jax.random.normal(k1, (c,), jnp.float32)
    beta = 0.1 * jax.random.normal(k2, (c,), jnp.float32)
    mean = 0.1 * jax.random.normal(k3, (c,), jnp.float32)
    var = jnp.abs(jax.random.normal(k4, (c,), jnp.float32)) + 0.5
    return (gamma, beta, mean, var)


def init_resnet18_params(key):
    """BasicBlock, layers=[2,2,2,2]; only stem + layer1/2/3 are needed."""
    keys = iter(jax.random.split(key, 128))
    params = {
        "conv1_w": _init_conv(next(keys), 64, 3, 7, 7),
        "bn1": _init_bn(next(keys), 64),
    }
    inplanes = 64
    for name, planes, blocks, stride in LAYER_CFGS:
        blocks_params = []
        for b in range(blocks):
            blk_stride = stride if b == 0 else 1
            blk = {
                "conv1_w": _init_conv(next(keys), planes, inplanes, 3, 3),
                "bn1": _init_bn(next(keys), planes),
                "conv2_w": _init_conv(next(keys), planes, planes, 3, 3),
                "bn2": _init_bn(next(keys), planes),
            }
            if blk_stride != 1 or inplanes != planes:
                blk["ds_w"] = _init_conv(next(keys), planes, inplanes, 1, 1)
                blk["ds_bn"] = _init_bn(next(keys), planes)
            blocks_params.append(blk)
            inplanes = planes
        params[name] = blocks_params
    return params


# ----------------------------------------------------------------------------
# Forward pass
# ----------------------------------------------------------------------------
def basic_block_forward(x, blk, stride):
    # TODO(synk): the whole BasicBlock could be fused into one pallas_call
    # (intermediate kept in VMEM scratch); kept as fused-epilogue convs here.
    identity = x
    out = conv_bn(x, blk["conv1_w"], blk["bn1"],
                  stride=stride, padding=1, relu=True)
    if "ds_w" in blk:
        identity = conv_bn(x, blk["ds_w"], blk["ds_bn"],
                           stride=stride, padding=0, relu=False)
    out = conv_bn(out, blk["conv2_w"], blk["bn2"],
                  stride=1, padding=1, relu=True, residual=identity)
    return out


def resnet_forward(params, x_nchw):
    # PyTorch NCHW -> NHWC bf16 for the TPU kernels.
    x = jnp.transpose(x_nchw, (0, 2, 3, 1)).astype(ACT_DTYPE)

    # Stem: conv7x7 s2 p3 + BN + ReLU, then maxpool 3x3 s2 p1.
    x = conv_bn(x, params["conv1_w"], params["bn1"],
                stride=2, padding=3, relu=True)
    x = maxpool_3x3_s2_p1(x)

    feats = []
    for name, _planes, _blocks, stride in LAYER_CFGS:
        for b, blk in enumerate(params[name]):
            blk_stride = stride if b == 0 else 1
            x = basic_block_forward(x, blk, blk_stride)
        feats.append(x)

    # Back to NCHW / f32 to match the PyTorch module's output convention.
    to_nchw = lambda t: jnp.transpose(t, (0, 3, 1, 2)).astype(jnp.float32)
    return [to_nchw(f) for f in feats]


# TODO(synk): layer4 / avgpool / fc exist in __init__ but are unused by
# _forward_impl, so they are intentionally not instantiated here.


if __name__ == "__main__":
    key = jax.random.PRNGKey(0)
    pkey, xkey = jax.random.split(key)
    params = init_resnet18_params(pkey)

    # Small deterministic input: batch=2, RGB, 32x32 (NCHW, as PyTorch expects).
    x = jax.random.normal(xkey, (2, 3, 32, 32), jnp.float32)

    fwd = jax.jit(resnet_forward)
    feats = fwd(params, x)
    feats = [jax.block_until_ready(f) for f in feats]

    assert feats[0].shape == (2, 64, 8, 8), feats[0].shape
    assert feats[1].shape == (2, 128, 4, 4), feats[1].shape
    assert feats[2].shape == (2, 256, 2, 2), feats[2].shape
    assert all(bool(jnp.all(jnp.isfinite(f))) for f in feats)
    print("KERNEL_OK")
</pallas_src>

<mosaic_0001>
module attributes {stable_mosaic.version = 11 : i64} {
  func.func @_conv_bn_kernel(%arg0: i32, %arg1: i32, %arg2: i32, %arg3: memref<256x256xbf16, #tpu.memory_space<vmem>>, %arg4: memref<256x128xbf16, #tpu.memory_space<vmem>>, %arg5: memref<1x128xf32, #tpu.memory_space<vmem>>, %arg6: memref<1x128xf32, #tpu.memory_space<vmem>>, %arg7: memref<256x128xbf16, #tpu.memory_space<vmem>>, %arg8: memref<256x128xf32, #tpu.memory_space<vmem>>) attributes {dimension_semantics = [#tpu.dimension_semantics<parallel>, #tpu.dimension_semantics<parallel>, #tpu.dimension_semantics<arbitrary>], iteration_bounds = array<i64: 2, 1, 1>, scalar_prefetch = 0 : i64, scratch_operands = 1 : i64, tpu.core_type = #tpu.core_type<tc>, window_params = [{transform_indices = @transform_0, window_bounds = array<i64: 256, 256>}, {transform_indices = @transform_1, window_bounds = array<i64: 256, 128>}, {transform_indices = @transform_2, window_bounds = array<i64: 1, 128>}, {transform_indices = @transform_3, window_bounds = array<i64: 1, 128>}, {transform_indices = @transform_4, window_bounds = array<i64: 256, 128>}]} {
    %c0_i32 = arith.constant 0 : i32
    %0 = arith.cmpi eq, %arg2, %c0_i32 : i32
    %1 = arith.extui %0 : i1 to i32
    %c0_i32_0 = arith.constant 0 : i32
    %2 = arith.cmpi ne, %1, %c0_i32_0 : i32
    scf.if %2 {
      %cst_10 = arith.constant 0.000000e+00 : f32
      %12 = vector.broadcast %cst_10 : f32 to vector<256x128xf32>
      %c0_11 = arith.constant 0 : index
      %c0_12 = arith.constant 0 : index
      %13 = vector.load %arg8[%c0_11, %c0_12] : memref<256x128xf32, #tpu.memory_space<vmem>>, vector<256x128xf32>
      tpu.vector_store %arg8[%c0_11, %c0_12], %12 {strides = array<i32>} : memref<256x128xf32, #tpu.memory_space<vmem>>, vector<256x128xf32>,
    } else {
    }
    %c0 = arith.constant 0 : index
    %c0_1 = arith.constant 0 : index
    %3 = vector.load %arg8[%c0, %c0_1] : memref<256x128xf32, #tpu.memory_space<vmem>>, vector<256x128xf32>
    %c0_2 = arith.constant 0 : index
    %c0_3 = arith.constant 0 : index
    %4 = vector.load %arg3[%c0_2, %c0_3] : memref<256x256xbf16, #tpu.memory_space<vmem>>, vector<256x256xbf16>
    %c0_4 = arith.constant 0 : index
    %c0_5 = arith.constant 0 : index
    %5 = vector.load %arg4[%c0_4, %c0_5] : memref<256x128xbf16, #tpu.memory_space<vmem>>, vector<256x128xbf16>
    %cst = arith.constant dense<0.000000e+00> : vector<256x128xf32>
    %6 = tpu.matmul %4, %5, %cst {dimension_numbers = #tpu.dot_dimension_numbers<[1], [0], [0], [1], [0, 0, 1, 1], [], []>} : vector<256x256xbf16>, vector<256x128xbf16>, vector<256x128xf32> -> vector<256x128xf32>
    %7 = arith.addf %3, %6 : vector<256x128xf32>
    %c0_6 = arith.constant 0 : index
    %c0_7 = arith.constant 0 : index
    %8 = vector.load %arg8[%c0_6, %c0_7] : memref<256x128xf32, #tpu.memory_space<vmem>>, vector<256x128xf32>
    tpu.vector_store %arg8[%c0_6, %c0_7], %7 {strides = array<i32>} : memref<256x128xf32, #tpu.memory_space<vmem>>, vector<256x128xf32>,
    %c0_i32_8 = arith.constant 0 : i32
    %9 = arith.cmpi eq, %arg2, %c0_i32_8 : i32
    %10 = arith.extui %9 : i1 to i32
    %c0_i32_9 = arith.constant 0 : i32
    %11 = arith.cmpi ne, %10, %c0_i32_9 : i32
    scf.if %11 {
      %c0_10 = arith.constant 0 : index
      %c0_11 = arith.constant 0 : index
      %12 = vector.load %arg8[%c0_10, %c0_11] : memref<256x128xf32, #tpu.memory_space<vmem>>, vector<256x128xf32>
      %c0_12 = arith.constant 0 : index
      %c0_13 = arith.constant 0 : index
      %13 = vector.load %arg5[%c0_12, %c0_13] : memref<1x128xf32, #tpu.memory_space<vmem>>, vector<1x128xf32>
      %14 = vector.broadcast %13 : vector<1x128xf32> to vector<256x128xf32>
      %15 = arith.mulf %12, %14 : vector<256x128xf32>
      %c0_14 = arith.constant 0 : index
      %c0_15 = arith.constant 0 : index
      %16 = vector.load %arg6[%c0_14, %c0_15] : memref<1x128xf32, #tpu.memory_space<vmem>>, vector<1x128xf32>
      %17 = vector.broadcast %16 : vector<1x128xf32> to vector<256x128xf32>
      %18 = arith.addf %15, %17 : vector<256x128xf32>
      %cst_16 = arith.constant 0.000000e+00 : f32
      %19 = vector.broadcast %cst_16 : f32 to vector<256x128xf32>
      %20 = arith.maximumf %18, %19 : vector<256x128xf32>
      %21 = arith.truncf %20 : vector<256x128xf32> to vector<256x128xbf16>
      %c0_17 = arith.constant 0 : index
      %c0_18 = arith.constant 0 : index
      %22 = vector.load %arg7[%c0_17, %c0_18] : memref<256x128xbf16, #tpu.memory_space<vmem>>, vector<256x128xbf16>
      tpu.vector_store %arg7[%c0_17, %c0_18], %21 {strides = array<i32>} : memref<256x128xbf16, #tpu.memory_space<vmem>>, vector<256x128xbf16>,
    } else {
    }
    return
  }
  func.func @transform_0(%arg0: i32, %arg1: i32, %arg2: i32) -> (i32, i32) {
    %c0_i32 = arith.constant 0 : i32
    return %arg0, %arg2 : i32, i32
  }
  func.func @transform_1(%arg0: i32, %arg1: i32, %arg2: i32) -> (i32, i32) {
    %c0_i32 = arith.constant 0 : i32
    return %arg2, %arg1 : i32, i32
  }
  func.func @transform_2(%arg0: i32, %arg1: i32, %arg2: i32) -> (i32, i32) {
    %c0_i32 = arith.constant 0 : i32
    %c0_i32_0 = arith.constant 0 : i32
    return %c0_i32, %arg1 : i32, i32
  }
  func.func @transform_3(%arg0: i32, %arg1: i32, %arg2: i32) -> (i32, i32) {
    %c0_i32 = arith.constant 0 : i32
    %c0_i32_0 = arith.constant 0 : i32
    return %c0_i32, %arg1 : i32, i32
  }
  func.func @transform_4(%arg0: i32, %arg1: i32, %arg2: i32) -> (i32, i32) {
    %c0_i32 = arith.constant 0 : i32
    return %arg0, %arg1 : i32, i32
  }
}

module attributes {stable_mosaic.version = 11 : i64} {
  func.func @_maxpool_kernel(%arg0: i32, %arg1: memref<128x64xbf16, #tpu.memory_space<vmem>>, %arg2: memref<128x64xbf16, #tpu.memory_space<vmem>>, %arg3: memref<128x64xbf16, #tpu.memory_space<vmem>>, %arg4: memref<128x64xbf16, #tpu.memory_space<vmem>>, %arg5: memref<128x64xbf16, #tpu.memory_space<vmem>>, %arg6: memref<128x64xbf16, #tpu.memory_space<vmem>>, %arg7: memref<128x64xbf16, #tpu.memory_space<vmem>>, %arg8: memref<128x64xbf16, #tpu.memory_space<vmem>>, %arg9: memref<128x64xbf16, #tpu.memory_space<vmem>>, %arg10: memref<128x64xbf16, #tpu.memory_space<vmem>>) attributes {dimension_semantics = [#tpu.dimension_semantics<parallel>], iteration_bounds = array<i64: 1>, scalar_prefetch = 0 : i64, scratch_operands = 0 : i64, tpu.core_type = #tpu.core_type<tc>, window_params = [{transform_indices = @transform_0, window_bounds = array<i64: 128, 64>}, {transform_indices = @transform_1, window_bounds = array<i64: 128, 64>}, {transform_indices = @transform_2, window_bounds = array<i64: 128, 64>}, {transform_indices = @transform_3, window_bounds = array<i64: 128, 64>}, {transform_indices = @transform_4, window_bounds = array<i64: 128, 64>}, {transform_indices = @transform_5, window_bounds = array<i64: 128, 64>}, {transform_indices = @transform_6, window_bounds = array<i64: 128, 64>}, {transform_indices = @transform_7, window_bounds = array<i64: 128, 64>}, {transform_indices = @transform_8, window_bounds = array<i64: 128, 64>}, {transform_indices = @transform_9, window_bounds = array<i64: 128, 64>}]} {
    %c0 = arith.constant 0 : index
    %c0_0 = arith.constant 0 : index
    %0 = vector.load %arg1[%c0, %c0_0] : memref<128x64xbf16, #tpu.memory_space<vmem>>, vector<128x64xbf16>
    %c0_1 = arith.constant 0 : index
    %c0_2 = arith.constant 0 : index
    %1 = vector.load %arg2[%c0_1, %c0_2] : memref<128x64xbf16, #tpu.memory_space<vmem>>, vector<128x64xbf16>
    %2 = arith.maximumf %0, %1 : vector<128x64xbf16>
    %c0_3 = arith.constant 0 : index
    %c0_4 = arith.constant 0 : index
    %3 = vector.load %arg3[%c0_3, %c0_4] : memref<128x64xbf16, #tpu.memory_space<vmem>>, vector<128x64xbf16>
    %4 = arith.maximumf %2, %3 : vector<128x64xbf16>
    %c0_5 = arith.constant 0 : index
    %c0_6 = arith.constant 0 : index
    %5 = vector.load %arg4[%c0_5, %c0_6] : memref<128x64xbf16, #tpu.memory_space<vmem>>, vector<128x64xbf16>
    %6 = arith.maximumf %4, %5 : vector<128x64xbf16>
    %c0_7 = arith.constant 0 : index
    %c0_8 = arith.constant 0 : index
    %7 = vector.load %arg5[%c0_7, %c0_8] : memref<128x64xbf16, #tpu.memory_space<vmem>>, vector<128x64xbf16>
    %8 = arith.maximumf %6, %7 : vector<128x64xbf16>
    %c0_9 = arith.constant 0 : index
    %c0_10 = arith.constant 0 : index
    %9 = vector.load %arg6[%c0_9, %c0_10] : memref<128x64xbf16, #tpu.memory_space<vmem>>, vector<128x64xbf16>
    %10 = arith.maximumf %8, %9 : vector<128x64xbf16>
    %c0_11 = arith.constant 0 : index
    %c0_12 = arith.constant 0 : index
    %11 = vector.load %arg7[%c0_11, %c0_12] : memref<128x64xbf16, #tpu.memory_space<vmem>>, vector<128x64xbf16>
    %12 = arith.maximumf %10, %11 : vector<128x64xbf16>
    %c0_13 = arith.constant 0 : index
    %c0_14 = arith.constant 0 : index
    %13 = vector.load %arg8[%c0_13, %c0_14] : memref<128x64xbf16, #tpu.memory_space<vmem>>, vector<128x64xbf16>
    %14 = arith.maximumf %12, %13 : vector<128x64xbf16>
    %c0_15 = arith.constant 0 : index
    %c0_16 = arith.constant 0 : index
    %15 = vector.load %arg9[%c0_15, %c0_16] : memref<128x64xbf16, #tpu.memory_space<vmem>>, vector<128x64xbf16>
    %16 = arith.maximumf %14, %15 : vector<128x64xbf16>
    %c0_17 = arith.constant 0 : index
    %c0_18 = arith.constant 0 : index
    %17 = vector.load %arg10[%c0_17, %c0_18] : memref<128x64xbf16, #tpu.memory_space<vmem>>, vector<128x64xbf16>
    tpu.vector_store %arg10[%c0_17, %c0_18], %16 {strides = array<i32>} : memref<128x64xbf16, #tpu.memory_space<vmem>>, vector<128x64xbf16>,
    return
  }
  func.func @transform_0(%arg0: i32) -> (i32, i32) {
    %c0_i32 = arith.constant 0 : i32
    %c0_i32_0 = arith.constant 0 : i32
    return %arg0, %c0_i32 : i32, i32
  }
  func.func @transform_1(%arg0: i32) -> (i32, i32) {
    %c0_i32 = arith.constant 0 : i32
    %c0_i32_0 = arith.constant 0 : i32
    return %arg0, %c0_i32 : i32, i32
  }
  func.func @transform_2(%arg0: i32) -> (i32, i32) {
    %c0_i32 = arith.constant 0 : i32
    %c0_i32_0 = arith.constant 0 : i32
    return %arg0, %c0_i32 : i32, i32
  }
  func.func @transform_3(%arg0: i32) -> (i32, i32) {
    %c0_i32 = arith.constant 0 : i32
    %c0_i32_0 = arith.constant 0 : i32
    return %arg0, %c0_i32 : i32, i32
  }
  func.func @transform_4(%arg0: i32) -> (i32, i32) {
    %c0_i32 = arith.constant 0 : i32
    %c0_i32_0 = arith.constant 0 : i32
    return %arg0, %c0_i32 : i32, i32
  }
  func.func @transform_5(%arg0: i32) -> (i32, i32) {
    %c0_i32 = arith.constant 0 : i32
    %c0_i32_0 = arith.constant 0 : i32
    return %arg0, %c0_i32 : i32, i32
  }
  func.func @transform_6(%arg0: i32) -> (i32, i32) {
    %c0_i32 = arith.constant 0 : i32
    %c0_i32_0 = arith.constant 0 : i32
    return %arg0, %c0_i32 : i32, i32
  }
  func.func @transform_7(%arg0: i32) -> (i32, i32) {
    %c0_i32 = arith.constant 0 : i32
    %c0_i32_0 = arith.constant 0 : i32
    return %arg0, %c0_i32 : i32, i32
  }
  func.func @transform_8(%arg0: i32) -> (i32, i32) {
    %c0_i32 = arith.constant 0 : i32
    %c0_i32_0 = arith.constant 0 : i32
    return %arg0, %c0_i32 : i32, i32
  }
  func.func @transform_9(%arg0: i32) -> (i32, i32) {
    %c0_i32 = arith.constant 0 : i32
    %c0_i32_0 = arith.constant 0 : i32
    return %arg0, %c0_i32 : i32, i32
  }
}

module attributes {stable_mosaic.version = 11 : i64} {
  func.func @_conv_bn_kernel(%arg0: i32, %arg1: i32, %arg2: i32, %arg3: memref<128x128xbf16, #tpu.memory_space<vmem>>, %arg4: memref<128x128xbf16, #tpu.memory_space<vmem>>, %arg5: memref<1x128xf32, #tpu.memory_space<vmem>>, %arg6: memref<1x128xf32, #tpu.memory_space<vmem>>, %arg7: memref<128x128xbf16, #tpu.memory_space<vmem>>, %arg8: memref<128x128xf32, #tpu.memory_space<vmem>>) attributes {dimension_semantics = [#tpu.dimension_semantics<parallel>, #tpu.dimension_semantics<parallel>, #tpu.dimension_semantics<arbitrary>], iteration_bounds = array<i64: 1, 1, 5>, scalar_prefetch = 0 : i64, scratch_operands = 1 : i64, tpu.core_type = #tpu.core_type<tc>, window_params = [{transform_indices = @transform_0, window_bounds = array<i64: 128, 128>}, {transform_indices = @transform_1, window_bounds = array<i64: 128, 128>}, {transform_indices = @transform_2, window_bounds = array<i64: 1, 128>}, {transform_indices = @transform_3, window_bounds = array<i64: 1, 128>}, {transform_indices = @transform_4, window_bounds = array<i64: 128, 128>}]} {
    %c0_i32 = arith.constant 0 : i32
    %0 = arith.cmpi eq, %arg2, %c0_i32 : i32
    %1 = arith.extui %0 : i1 to i32
    %c0_i32_0 = arith.constant 0 : i32
    %2 = arith.cmpi ne, %1, %c0_i32_0 : i32
    scf.if %2 {
      %cst_9 = arith.constant 0.000000e+00 : f32
      %12 = vector.broadcast %cst_9 : f32 to vector<128x128xf32>
      %c0_10 = arith.constant 0 : index
      %c0_11 = arith.constant 0 : index
      %13 = vector.load %arg8[%c0_10, %c0_11] : memref<128x128xf32, #tpu.memory_space<vmem>>, vector<128x128xf32>
      tpu.vector_store %arg8[%c0_10, %c0_11], %12 {strides = array<i32>} : memref<128x128xf32, #tpu.memory_space<vmem>>, vector<128x128xf32>,
    } else {
    }
    %c0 = arith.constant 0 : index
    %c0_1 = arith.constant 0 : index
    %3 = vector.load %arg8[%c0, %c0_1] : memref<128x128xf32, #tpu.memory_space<vmem>>, vector<128x128xf32>
    %c0_2 = arith.constant 0 : index
    %c0_3 = arith.constant 0 : index
    %4 = vector.load %arg3[%c0_2, %c0_3] : memref<128x128xbf16, #tpu.memory_space<vmem>>, vector<128x128xbf16>
    %c0_4 = arith.constant 0 : index
    %c0_5 = arith.constant 0 : index
    %5 = vector.load %arg4[%c0_4, %c0_5] : memref<128x128xbf16, #tpu.memory_space<vmem>>, vector<128x128xbf16>
    %cst = arith.constant dense<0.000000e+00> : vector<128x128xf32>
    %6 = tpu.matmul %4, %5, %cst {dimension_numbers = #tpu.dot_dimension_numbers<[1], [0], [0], [1], [0, 0, 1, 1], [], []>} : vector<128x128xbf16>, vector<128x128xbf16>, vector<128x128xf32> -> vector<128x128xf32>
    %7 = arith.addf %3, %6 : vector<128x128xf32>
    %c0_6 = arith.constant 0 : index
    %c0_7 = arith.constant 0 : index
    %8 = vector.load %arg8[%c0_6, %c0_7] : memref<128x128xf32, #tpu.memory_space<vmem>>, vector<128x128xf32>
    tpu.vector_store %arg8[%c0_6, %c0_7], %7 {strides = array<i32>} : memref<128x128xf32, #tpu.memory_space<vmem>>, vector<128x128xf32>,
    %c4_i32 = arith.constant 4 : i32
    %9 = arith.cmpi eq, %arg2, %c4_i32 : i32
    %10 = arith.extui %9 : i1 to i32
    %c0_i32_8 = arith.constant 0 : i32
    %11 = arith.cmpi ne, %10, %c0_i32_8 : i32
    scf.if %11 {
      %c0_9 = arith.constant 0 : index
      %c0_10 = arith.constant 0 : index
      %12 = vector.load %arg8[%c0_9, %c0_10] : memref<128x128xf32, #tpu.memory_space<vmem>>, vector<128x128xf32>
      %c0_11 = arith.constant 0 : index
      %c0_12 = arith.constant 0 : index
      %13 = vector.load %arg5[%c0_11, %c0_12] : memref<1x128xf32, #tpu.memory_space<vmem>>, vector<1x128xf32>
      %14 = vector.broadcast %13 : vector<1x128xf32> to vector<128x128xf32>
      %15 = arith.mulf %12, %14 : vector<128x128xf32>
      %c0_13 = arith.constant 0 : index
      %c0_14 = arith.constant 0 : index
      %16 = vector.load %arg6[%c0_13, %c0_14] : memref<1x128xf32, #tpu.memory_space<vmem>>, vector<1x128xf32>
      %17 = vector.broadcast %16 : vector<1x128xf32> to vector<128x128xf32>
      %18 = arith.addf %15, %17 : vector<128x128xf32>
      %cst_15 = arith.constant 0.000000e+00 : f32
      %19 = vector.broadcast %cst_15 : f32 to vector<128x128xf32>
      %20 = arith.maximumf %18, %19 : vector<128x128xf32>
      %21 = arith.truncf %20 : vector<128x128xf32> to vector<128x128xbf16>
      %c0_16 = arith.constant 0 : index
      %c0_17 = arith.constant 0 : index
      %22 = vector.load %arg7[%c0_16, %c0_17] : memref<128x128xbf16, #tpu.memory_space<vmem>>, vector<128x128xbf16>
      tpu.vector_store %arg7[%c0_16, %c0_17], %21 {strides = array<i32>} : memref<128x128xbf16, #tpu.memory_space<vmem>>, vector<128x128xbf16>,
    } else {
    }
    return
  }
  func.func @transform_0(%arg0: i32, %arg1: i32, %arg2: i32) -> (i32, i32) {
    %c0_i32 = arith.constant 0 : i32
    return %arg0, %arg2 : i32, i32
  }
  func.func @transform_1(%arg0: i32, %arg1: i32, %arg2: i32) -> (i32, i32) {
    %c0_i32 = arith.constant 0 : i32
    return %arg2, %arg1 : i32, i32
  }
  func.func @transform_2(%arg0: i32, %arg1: i32, %arg2: i32) -> (i32, i32) {
    %c0_i32 = arith.constant 0 : i32
    %c0_i32_0 = arith.constant 0 : i32
    return %c0_i32, %arg1 : i32, i32
  }
  func.func @transform_3(%arg0: i32, %arg1: i32, %arg2: i32) -> (i32, i32) {
    %c0_i32 = arith.constant 0 : i32
    %c0_i32_0 = arith.constant 0 : i32
    return %c0_i32, %arg1 : i32, i32
  }
  func.func @transform_4(%arg0: i32, %arg1: i32, %arg2: i32) -> (i32, i32) {
    %c0_i32 = arith.constant 0 : i32
    return %arg0, %arg1 : i32, i32
  }
}

module attributes {stable_mosaic.version = 11 : i64} {
  func.func @_conv_bn_res_kernel(%arg0: i32, %arg1: i32, %arg2: i32, %arg3: memref<128x128xbf16, #tpu.memory_space<vmem>>, %arg4: memref<128x128xbf16, #tpu.memory_space<vmem>>, %arg5: memref<1x128xf32, #tpu.memory_space<vmem>>, %arg6: memref<1x128xf32, #tpu.memory_space<vmem>>, %arg7: memref<128x128xbf16, #tpu.memory_space<vmem>>, %arg8: memref<128x128xbf16, #tpu.memory_space<vmem>>, %arg9: memref<128x128xf32, #tpu.memory_space<vmem>>) attributes {dimension_semantics = [#tpu.dimension_semantics<parallel>, #tpu.dimension_semantics<parallel>, #tpu.dimension_semantics<arbitrary>], iteration_bounds = array<i64: 1, 1, 5>, scalar_prefetch = 0 : i64, scratch_operands = 1 : i64, tpu.core_type = #tpu.core_type<tc>, window_params = [{transform_indices = @transform_0, window_bounds = array<i64: 128, 128>}, {transform_indices = @transform_1, window_bounds = array<i64: 128, 128>}, {transform_indices = @transform_2, window_bounds = array<i64: 1, 128>}, {transform_indices = @transform_3, window_bounds = array<i64: 1, 128>}, {transform_indices = @transform_4, window_bounds = array<i64: 128, 128>}, {transform_indices = @transform_5, window_bounds = array<i64: 128, 128>}]} {
    %c0_i32 = arith.constant 0 : i32
    %0 = arith.cmpi eq, %arg2, %c0_i32 : i32
    %1 = arith.extui %0 : i1 to i32
    %c0_i32_0 = arith.constant 0 : i32
    %2 = arith.cmpi ne, %1, %c0_i32_0 : i32
    scf.if %2 {
      %cst_9 = arith.constant 0.000000e+00 : f32
      %12 = vector.broadcast %cst_9 : f32 to vector<128x128xf32>
      %c0_10 = arith.constant 0 : index
      %c0_11 = arith.constant 0 : index
      %13 = vector.load %arg9[%c0_10, %c0_11] : memref<128x128xf32, #tpu.memory_space<vmem>>, vector<128x128xf32>
      tpu.vector_store %arg9[%c0_10, %c0_11], %12 {strides = array<i32>} : memref<128x128xf32, #tpu.memory_space<vmem>>, vector<128x128xf32>,
    } else {
    }
    %c0 = arith.constant 0 : index
    %c0_1 = arith.constant 0 : index
    %3 = vector.load %arg9[%c0, %c0_1] : memref<128x128xf32, #tpu.memory_space<vmem>>, vector<128x128xf32>
    %c0_2 = arith.constant 0 : index
    %c0_3 = arith.constant 0 : index
    %4 = vector.load %arg3[%c0_2, %c0_3] : memref<128x128xbf16, #tpu.memory_space<vmem>>, vector<128x128xbf16>
    %c0_4 = arith.constant 0 : index
    %c0_5 = arith.constant 0 : index
    %5 = vector.load %arg4[%c0_4, %c0_5] : memref<128x128xbf16, #tpu.memory_space<vmem>>, vector<128x128xbf16>
    %cst = arith.constant dense<0.000000e+00> : vector<128x128xf32>
    %6 = tpu.matmul %4, %5, %cst {dimension_numbers = #tpu.dot_dimension_numbers<[1], [0], [0], [1], [0, 0, 1, 1], [], []>} : vector<128x128xbf16>, vector<128x128xbf16>, vector<128x128xf32> -> vector<128x128xf32>
    %7 = arith.addf %3, %6 : vector<128x128xf32>
    %c0_6 = arith.constant 0 : index
    %c0_7 = arith.constant 0 : index
    %8 = vector.load %arg9[%c0_6, %c0_7] : memref<128x128xf32, #tpu.memory_space<vmem>>, vector<128x128xf32>
    tpu.vector_store %arg9[%c0_6, %c0_7], %7 {strides = array<i32>} : memref<128x128xf32, #tpu.memory_space<vmem>>, vector<128x128xf32>,
    %c4_i32 = arith.constant 4 : i32
    %9 = arith.cmpi eq, %arg2, %c4_i32 : i32
    %10 = arith.extui %9 : i1 to i32
    %c0_i32_8 = arith.constant 0 : i32
    %11 = arith.cmpi ne, %10, %c0_i32_8 : i32
    scf.if %11 {
      %c0_9 = arith.constant 0 : index
      %c0_10 = arith.constant 0 : index
      %12 = vector.load %arg9[%c0_9, %c0_10] : memref<128x128xf32, #tpu.memory_space<vmem>>, vector<128x128xf32>
      %c0_11 = arith.constant 0 : index
      %c0_12 = arith.constant 0 : index
      %13 = vector.load %arg5[%c0_11, %c0_12] : memref<1x128xf32, #tpu.memory_space<vmem>>, vector<1x128xf32>
      %14 = vector.broadcast %13 : vector<1x128xf32> to vector<128x128xf32>
      %15 = arith.mulf %12, %14 : vector<128x128xf32>
      %c0_13 = arith.constant 0 : index
      %c0_14 = arith.constant 0 : index
      %16 = vector.load %arg6[%c0_13, %c0_14] : memref<1x128xf32, #tpu.memory_space<vmem>>, vector<1x128xf32>
      %17 = vector.broadcast %16 : vector<1x128xf32> to vector<128x128xf32>
      %18 = arith.addf %15, %17 : vector<128x128xf32>
      %c0_15 = arith.constant 0 : index
      %c0_16 = arith.constant 0 : index
      %19 = vector.load %arg7[%c0_15, %c0_16] : memref<128x128xbf16, #tpu.memory_space<vmem>>, vector<128x128xbf16>
      %20 = arith.extf %19 : vector<128x128xbf16> to vector<128x128xf32>
      %21 = arith.addf %18, %20 : vector<128x128xf32>
      %cst_17 = arith.constant 0.000000e+00 : f32
      %22 = vector.broadcast %cst_17 : f32 to vector<128x128xf32>
      %23 = arith.maximumf %21, %22 : vector<128x128xf32>
      %24 = arith.truncf %23 : vector<128x128xf32> to vector<128x128xbf16>
      %c0_18 = arith.constant 0 : index
      %c0_19 = arith.constant 0 : index
      %25 = vector.load %arg8[%c0_18, %c0_19] : memref<128x128xbf16, #tpu.memory_space<vmem>>, vector<128x128xbf16>
      tpu.vector_store %arg8[%c0_18, %c0_19], %24 {strides = array<i32>} : memref<128x128xbf16, #tpu.memory_space<vmem>>, vector<128x128xbf16>,
    } else {
    }
    return
  }
  func.func @transform_0(%arg0: i32, %arg1: i32, %arg2: i32) -> (i32, i32) {
    %c0_i32 = arith.constant 0 : i32
    return %arg0, %arg2 : i32, i32
  }
  func.func @transform_1(%arg0: i32, %arg1: i32, %arg2: i32) -> (i32, i32) {
    %c0_i32 = arith.constant 0 : i32
    return %arg2, %arg1 : i32, i32
  }
  func.func @transform_2(%arg0: i32, %arg1: i32, %arg2: i32) -> (i32, i32) {
    %c0_i32 = arith.constant 0 : i32
    %c0_i32_0 = arith.constant 0 : i32
    return %c0_i32, %arg1 : i32, i32
  }
  func.func @transform_3(%arg0: i32, %arg1: i32, %arg2: i32) -> (i32, i32) {
    %c0_i32 = arith.constant 0 : i32
    %c0_i32_0 = arith.constant 0 : i32
    return %c0_i32, %arg1 : i32, i32
  }
  func.func @transform_4(%arg0: i32, %arg1: i32, %arg2: i32) -> (i32, i32) {
    %c0_i32 = arith.constant 0 : i32
    return %arg0, %arg1 : i32, i32
  }
  func.func @transform_5(%arg0: i32, %arg1: i32, %arg2: i32) -> (i32, i32) {
    %c0_i32 = arith.constant 0 : i32
    return %arg0, %arg1 : i32, i32
  }
}

module attributes {stable_mosaic.version = 11 : i64} {
  func.func @_conv_bn_kernel(%arg0: i32, %arg1: i32, %arg2: i32, %arg3: memref<32x128xbf16, #tpu.memory_space<vmem>>, %arg4: memref<128x128xbf16, #tpu.memory_space<vmem>>, %arg5: memref<1x128xf32, #tpu.memory_space<vmem>>, %arg6: memref<1x128xf32, #tpu.memory_space<vmem>>, %arg7: memref<32x128xbf16, #tpu.memory_space<vmem>>, %arg8: memref<32x128xf32, #tpu.memory_space<vmem>>) attributes {dimension_semantics = [#tpu.dimension_semantics<parallel>, #tpu.dimension_semantics<parallel>, #tpu.dimension_semantics<arbitrary>], iteration_bounds = array<i64: 1, 1, 5>, scalar_prefetch = 0 : i64, scratch_operands = 1 : i64, tpu.core_type = #tpu.core_type<tc>, window_params = [{transform_indices = @transform_0, window_bounds = array<i64: 32, 128>}, {transform_indices = @transform_1, window_bounds = array<i64: 128, 128>}, {transform_indices = @transform_2, window_bounds = array<i64: 1, 128>}, {transform_indices = @transform_3, window_bounds = array<i64: 1, 128>}, {transform_indices = @transform_4, window_bounds = array<i64: 32, 128>}]} {
    %c0_i32 = arith.constant 0 : i32
    %0 = arith.cmpi eq, %arg2, %c0_i32 : i32
    %1 = arith.extui %0 : i1 to i32
    %c0_i32_0 = arith.constant 0 : i32
    %2 = arith.cmpi ne, %1, %c0_i32_0 : i32
    scf.if %2 {
      %cst_9 = arith.constant 0.000000e+00 : f32
      %12 = vector.broadcast %cst_9 : f32 to vector<32x128xf32>
      %c0_10 = arith.constant 0 : index
      %c0_11 = arith.constant 0 : index
      %13 = vector.load %arg8[%c0_10, %c0_11] : memref<32x128xf32, #tpu.memory_space<vmem>>, vector<32x128xf32>
      tpu.vector_store %arg8[%c0_10, %c0_11], %12 {strides = array<i32>} : memref<32x128xf32, #tpu.memory_space<vmem>>, vector<32x128xf32>,
    } else {
    }
    %c0 = arith.constant 0 : index
    %c0_1 = arith.constant 0 : index
    %3 = vector.load %arg8[%c0, %c0_1] : memref<32x128xf32, #tpu.memory_space<vmem>>, vector<32x128xf32>
    %c0_2 = arith.constant 0 : index
    %c0_3 = arith.constant 0 : index
    %4 = vector.load %arg3[%c0_2, %c0_3] : memref<32x128xbf16, #tpu.memory_space<vmem>>, vector<32x128xbf16>
    %c0_4 = arith.constant 0 : index
    %c0_5 = arith.constant 0 : index
    %5 = vector.load %arg4[%c0_4, %c0_5] : memref<128x128xbf16, #tpu.memory_space<vmem>>, vector<128x128xbf16>
    %cst = arith.constant dense<0.000000e+00> : vector<32x128xf32>
    %6 = tpu.matmul %4, %5, %cst {dimension_numbers = #tpu.dot_dimension_numbers<[1], [0], [0], [1], [0, 0, 1, 1], [], []>} : vector<32x128xbf16>, vector<128x128xbf16>, vector<32x128xf32> -> vector<32x128xf32>
    %7 = arith.addf %3, %6 : vector<32x128xf32>
    %c0_6 = arith.constant 0 : index
    %c0_7 = arith.constant 0 : index
    %8 = vector.load %arg8[%c0_6, %c0_7] : memref<32x128xf32, #tpu.memory_space<vmem>>, vector<32x128xf32>
    tpu.vector_store %arg8[%c0_6, %c0_7], %7 {strides = array<i32>} : memref<32x128xf32, #tpu.memory_space<vmem>>, vector<32x128xf32>,
    %c4_i32 = arith.constant 4 : i32
    %9 = arith.cmpi eq, %arg2, %c4_i32 : i32
    %10 = arith.extui %9 : i1 to i32
    %c0_i32_8 = arith.constant 0 : i32
    %11 = arith.cmpi ne, %10, %c0_i32_8 : i32
    scf.if %11 {
      %c0_9 = arith.constant 0 : index
      %c0_10 = arith.constant 0 : index
      %12 = vector.load %arg8[%c0_9, %c0_10] : memref<32x128xf32, #tpu.memory_space<vmem>>, vector<32x128xf32>
      %c0_11 = arith.constant 0 : index
      %c0_12 = arith.constant 0 : index
      %13 = vector.load %arg5[%c0_11, %c0_12] : memref<1x128xf32, #tpu.memory_space<vmem>>, vector<1x128xf32>
      %14 = vector.broadcast %13 : vector<1x128xf32> to vector<32x128xf32>
      %15 = arith.mulf %12, %14 : vector<32x128xf32>
      %c0_13 = arith.constant 0 : index
      %c0_14 = arith.constant 0 : index
      %16 = vector.load %arg6[%c0_13, %c0_14] : memref<1x128xf32, #tpu.memory_space<vmem>>, vector<1x128xf32>
      %17 = vector.broadcast %16 : vector<1x128xf32> to vector<32x128xf32>
      %18 = arith.addf %15, %17 : vector<32x128xf32>
      %cst_15 = arith.constant 0.000000e+00 : f32
      %19 = vector.broadcast %cst_15 : f32 to vector<32x128xf32>
      %20 = arith.maximumf %18, %19 : vector<32x128xf32>
      %21 = arith.truncf %20 : vector<32x128xf32> to vector<32x128xbf16>
      %c0_16 = arith.constant 0 : index
      %c0_17 = arith.constant 0 : index
      %22 = vector.load %arg7[%c0_16, %c0_17] : memref<32x128xbf16, #tpu.memory_space<vmem>>, vector<32x128xbf16>
      tpu.vector_store %arg7[%c0_16, %c0_17], %21 {strides = array<i32>} : memref<32x128xbf16, #tpu.memory_space<vmem>>, vector<32x128xbf16>,
    } else {
    }
    return
  }
  func.func @transform_0(%arg0: i32, %arg1: i32, %arg2: i32) -> (i32, i32) {
    %c0_i32 = arith.constant 0 : i32
    return %arg0, %arg2 : i32, i32
  }
  func.func @transform_1(%arg0: i32, %arg1: i32, %arg2: i32) -> (i32, i32) {
    %c0_i32 = arith.constant 0 : i32
    return %arg2, %arg1 : i32, i32
  }
  func.func @transform_2(%arg0: i32, %arg1: i32, %arg2: i32) -> (i32, i32) {
    %c0_i32 = arith.constant 0 : i32
    %c0_i32_0 = arith.constant 0 : i32
    return %c0_i32, %arg1 : i32, i32
  }
  func.func @transform_3(%arg0: i32, %arg1: i32, %arg2: i32) -> (i32, i32) {
    %c0_i32 = arith.constant 0 : i32
    %c0_i32_0 = arith.constant 0 : i32
    return %c0_i32, %arg1 : i32, i32
  }
  func.func @transform_4(%arg0: i32, %arg1: i32, %arg2: i32) -> (i32, i32) {
    %c0_i32 = arith.constant 0 : i32
    return %arg0, %arg1 : i32, i32
  }
}

module attributes {stable_mosaic.version = 11 : i64} {
  func.func @_conv_bn_kernel(%arg0: i32, %arg1: i32, %arg2: i32, %arg3: memref<32x128xbf16, #tpu.memory_space<vmem>>, %arg4: memref<128x128xbf16, #tpu.memory_space<vmem>>, %arg5: memref<1x128xf32, #tpu.memory_space<vmem>>, %arg6: memref<1x128xf32, #tpu.memory_space<vmem>>, %arg7: memref<32x128xbf16, #tpu.memory_space<vmem>>, %arg8: memref<32x128xf32, #tpu.memory_space<vmem>>) attributes {dimension_semantics = [#tpu.dimension_semantics<parallel>, #tpu.dimension_semantics<parallel>, #tpu.dimension_semantics<arbitrary>], iteration_bounds = array<i64: 1, 1, 1>, scalar_prefetch = 0 : i64, scratch_operands = 1 : i64, tpu.core_type = #tpu.core_type<tc>, window_params = [{transform_indices = @transform_0, window_bounds = array<i64: 32, 128>}, {transform_indices = @transform_1, window_bounds = array<i64: 128, 128>}, {transform_indices = @transform_2, window_bounds = array<i64: 1, 128>}, {transform_indices = @transform_3, window_bounds = array<i64: 1, 128>}, {transform_indices = @transform_4, window_bounds = array<i64: 32, 128>}]} {
    %c0_i32 = arith.constant 0 : i32
    %0 = arith.cmpi eq, %arg2, %c0_i32 : i32
    %1 = arith.extui %0 : i1 to i32
    %c0_i32_0 = arith.constant 0 : i32
    %2 = arith.cmpi ne, %1, %c0_i32_0 : i32
    scf.if %2 {
      %cst_10 = arith.constant 0.000000e+00 : f32
      %12 = vector.broadcast %cst_10 : f32 to vector<32x128xf32>
      %c0_11 = arith.constant 0 : index
      %c0_12 = arith.constant 0 : index
      %13 = vector.load %arg8[%c0_11, %c0_12] : memref<32x128xf32, #tpu.memory_space<vmem>>, vector<32x128xf32>
      tpu.vector_store %arg8[%c0_11, %c0_12], %12 {strides = array<i32>} : memref<32x128xf32, #tpu.memory_space<vmem>>, vector<32x128xf32>,
    } else {
    }
    %c0 = arith.constant 0 : index
    %c0_1 = arith.constant 0 : index
    %3 = vector.load %arg8[%c0, %c0_1] : memref<32x128xf32, #tpu.memory_space<vmem>>, vector<32x128xf32>
    %c0_2 = arith.constant 0 : index
    %c0_3 = arith.constant 0 : index
    %4 = vector.load %arg3[%c0_2, %c0_3] : memref<32x128xbf16, #tpu.memory_space<vmem>>, vector<32x128xbf16>
    %c0_4 = arith.constant 0 : index
    %c0_5 = arith.constant 0 : index
    %5 = vector.load %arg4[%c0_4, %c0_5] : memref<128x128xbf16, #tpu.memory_space<vmem>>, vector<128x128xbf16>
    %cst = arith.constant dense<0.000000e+00> : vector<32x128xf32>
    %6 = tpu.matmul %4, %5, %cst {dimension_numbers = #tpu.dot_dimension_numbers<[1], [0], [0], [1], [0, 0, 1, 1], [], []>} : vector<32x128xbf16>, vector<128x128xbf16>, vector<32x128xf32> -> vector<32x128xf32>
    %7 = arith.addf %3, %6 : vector<32x128xf32>
    %c0_6 = arith.constant 0 : index
    %c0_7 = arith.constant 0 : index
    %8 = vector.load %arg8[%c0_6, %c0_7] : memref<32x128xf32, #tpu.memory_space<vmem>>, vector<32x128xf32>
    tpu.vector_store %arg8[%c0_6, %c0_7], %7 {strides = array<i32>} : memref<32x128xf32, #tpu.memory_space<vmem>>, vector<32x128xf32>,
    %c0_i32_8 = arith.constant 0 : i32
    %9 = arith.cmpi eq, %arg2, %c0_i32_8 : i32
    %10 = arith.extui %9 : i1 to i32
    %c0_i32_9 = arith.constant 0 : i32
    %11 = arith.cmpi ne, %10, %c0_i32_9 : i32
    scf.if %11 {
      %c0_10 = arith.constant 0 : index
      %c0_11 = arith.constant 0 : index
      %12 = vector.load %arg8[%c0_10, %c0_11] : memref<32x128xf32, #tpu.memory_space<vmem>>, vector<32x128xf32>
      %c0_12 = arith.constant 0 : index
      %c0_13 = arith.constant 0 : index
      %13 = vector.load %arg5[%c0_12, %c0_13] : memref<1x128xf32, #tpu.memory_space<vmem>>, vector<1x128xf32>
      %14 = vector.broadcast %13 : vector<1x128xf32> to vector<32x128xf32>
      %15 = arith.mulf %12, %14 : vector<32x128xf32>
      %c0_14 = arith.constant 0 : index
      %c0_15 = arith.constant 0 : index
      %16 = vector.load %arg6[%c0_14, %c0_15] : memref<1x128xf32, #tpu.memory_space<vmem>>, vector<1x128xf32>
      %17 = vector.broadcast %16 : vector<1x128xf32> to vector<32x128xf32>
      %18 = arith.addf %15, %17 : vector<32x128xf32>
      %19 = arith.truncf %18 : vector<32x128xf32> to vector<32x128xbf16>
      %c0_16 = arith.constant 0 : index
      %c0_17 = arith.constant 0 : index
      %20 = vector.load %arg7[%c0_16, %c0_17] : memref<32x128xbf16, #tpu.memory_space<vmem>>, vector<32x128xbf16>
      tpu.vector_store %arg7[%c0_16, %c0_17], %19 {strides = array<i32>} : memref<32x128xbf16, #tpu.memory_space<vmem>>, vector<32x128xbf16>,
    } else {
    }
    return
  }
  func.func @transform_0(%arg0: i32, %arg1: i32, %arg2: i32) -> (i32, i32) {
    %c0_i32 = arith.constant 0 : i32
    return %arg0, %arg2 : i32, i32
  }
  func.func @transform_1(%arg0: i32, %arg1: i32, %arg2: i32) -> (i32, i32) {
    %c0_i32 = arith.constant 0 : i32
    return %arg2, %arg1 : i32, i32
  }
  func.func @transform_2(%arg0: i32, %arg1: i32, %arg2: i32) -> (i32, i32) {
    %c0_i32 = arith.constant 0 : i32
    %c0_i32_0 = arith.constant 0 : i32
    return %c0_i32, %arg1 : i32, i32
  }
  func.func @transform_3(%arg0: i32, %arg1: i32, %arg2: i32) -> (i32, i32) {
    %c0_i32 = arith.constant 0 : i32
    %c0_i32_0 = arith.constant 0 : i32
    return %c0_i32, %arg1 : i32, i32
  }
  func.func @transform_4(%arg0: i32, %arg1: i32, %arg2: i32) -> (i32, i32) {
    %c0_i32 = arith.constant 0 : i32
    return %arg0, %arg1 : i32, i32
  }
}

module attributes {stable_mosaic.version = 11 : i64} {
  func.func @_conv_bn_res_kernel(%arg0: i32, %arg1: i32, %arg2: i32, %arg3: memref<32x384xbf16, #tpu.memory_space<vmem>>, %arg4: memref<384x128xbf16, #tpu.memory_space<vmem>>, %arg5: memref<1x128xf32, #tpu.memory_space<vmem>>, %arg6: memref<1x128xf32, #tpu.memory_space<vmem>>, %arg7: memref<32x128xbf16, #tpu.memory_space<vmem>>, %arg8: memref<32x128xbf16, #tpu.memory_space<vmem>>, %arg9: memref<32x128xf32, #tpu.memory_space<vmem>>) attributes {dimension_semantics = [#tpu.dimension_semantics<parallel>, #tpu.dimension_semantics<parallel>, #tpu.dimension_semantics<arbitrary>], iteration_bounds = array<i64: 1, 1, 3>, scalar_prefetch = 0 : i64, scratch_operands = 1 : i64, tpu.core_type = #tpu.core_type<tc>, window_params = [{transform_indices = @transform_0, window_bounds = array<i64: 32, 384>}, {transform_indices = @transform_1, window_bounds = array<i64: 384, 128>}, {transform_indices = @transform_2, window_bounds = array<i64: 1, 128>}, {transform_indices = @transform_3, window_bounds = array<i64: 1, 128>}, {transform_indices = @transform_4, window_bounds = array<i64: 32, 128>}, {transform_indices = @transform_5, window_bounds = array<i64: 32, 128>}]} {
    %c0_i32 = arith.constant 0 : i32
    %0 = arith.cmpi eq, %arg2, %c0_i32 : i32
    %1 = arith.extui %0 : i1 to i32
    %c0_i32_0 = arith.constant 0 : i32
    %2 = arith.cmpi ne, %1, %c0_i32_0 : i32
    scf.if %2 {
      %cst_9 = arith.constant 0.000000e+00 : f32
      %12 = vector.broadcast %cst_9 : f32 to vector<32x128xf32>
      %c0_10 = arith.constant 0 : index
      %c0_11 = arith.constant 0 : index
      %13 = vector.load %arg9[%c0_10, %c0_11] : memref<32x128xf32, #tpu.memory_space<vmem>>, vector<32x128xf32>
      tpu.vector_store %arg9[%c0_10, %c0_11], %12 {strides = array<i32>} : memref<32x128xf32, #tpu.memory_space<vmem>>, vector<32x128xf32>,
    } else {
    }
    %c0 = arith.constant 0 : index
    %c0_1 = arith.constant 0 : index
    %3 = vector.load %arg9[%c0, %c0_1] : memref<32x128xf32, #tpu.memory_space<vmem>>, vector<32x128xf32>
    %c0_2 = arith.constant 0 : index
    %c0_3 = arith.constant 0 : index
    %4 = vector.load %arg3[%c0_2, %c0_3] : memref<32x384xbf16, #tpu.memory_space<vmem>>, vector<32x384xbf16>
    %c0_4 = arith.constant 0 : index
    %c0_5 = arith.constant 0 : index
    %5 = vector.load %arg4[%c0_4, %c0_5] : memref<384x128xbf16, #tpu.memory_space<vmem>>, vector<384x128xbf16>
    %cst = arith.constant dense<0.000000e+00> : vector<32x128xf32>
    %6 = tpu.matmul %4, %5, %cst {dimension_numbers = #tpu.dot_dimension_numbers<[1], [0], [0], [1], [0, 0, 1, 1], [], []>} : vector<32x384xbf16>, vector<384x128xbf16>, vector<32x128xf32> -> vector<32x128xf32>
    %7 = arith.addf %3, %6 : vector<32x128xf32>
    %c0_6 = arith.constant 0 : index
    %c0_7 = arith.constant 0 : index
    %8 = vector.load %arg9[%c0_6, %c0_7] : memref<32x128xf32, #tpu.memory_space<vmem>>, vector<32x128xf32>
    tpu.vector_store %arg9[%c0_6, %c0_7], %7 {strides = array<i32>} : memref<32x128xf32, #tpu.memory_space<vmem>>, vector<32x128xf32>,
    %c2_i32 = arith.constant 2 : i32
    %9 = arith.cmpi eq, %arg2, %c2_i32 : i32
    %10 = arith.extui %9 : i1 to i32
    %c0_i32_8 = arith.constant 0 : i32
    %11 = arith.cmpi ne, %10, %c0_i32_8 : i32
    scf.if %11 {
      %c0_9 = arith.constant 0 : index
      %c0_10 = arith.constant 0 : index
      %12 = vector.load %arg9[%c0_9, %c0_10] : memref<32x128xf32, #tpu.memory_space<vmem>>, vector<32x128xf32>
      %c0_11 = arith.constant 0 : index
      %c0_12 = arith.constant 0 : index
      %13 = vector.load %arg5[%c0_11, %c0_12] : memref<1x128xf32, #tpu.memory_space<vmem>>, vector<1x128xf32>
      %14 = vector.broadcast %13 : vector<1x128xf32> to vector<32x128xf32>
      %15 = arith.mulf %12, %14 : vector<32x128xf32>
      %c0_13 = arith.constant 0 : index
      %c0_14 = arith.constant 0 : index
      %16 = vector.load %arg6[%c0_13, %c0_14] : memref<1x128xf32, #tpu.memory_space<vmem>>, vector<1x128xf32>
      %17 = vector.broadcast %16 : vector<1x128xf32> to vector<32x128xf32>
      %18 = arith.addf %15, %17 : vector<32x128xf32>
      %c0_15 = arith.constant 0 : index
      %c0_16 = arith.constant 0 : index
      %19 = vector.load %arg7[%c0_15, %c0_16] : memref<32x128xbf16, #tpu.memory_space<vmem>>, vector<32x128xbf16>
      %20 = arith.extf %19 : vector<32x128xbf16> to vector<32x128xf32>
      %21 = arith.addf %18, %20 : vector<32x128xf32>
      %cst_17 = arith.constant 0.000000e+00 : f32
      %22 = vector.broadcast %cst_17 : f32 to vector<32x128xf32>
      %23 = arith.maximumf %21, %22 : vector<32x128xf32>
      %24 = arith.truncf %23 : vector<32x128xf32> to vector<32x128xbf16>
      %c0_18 = arith.constant 0 : index
      %c0_19 = arith.constant 0 : index
      %25 = vector.load %arg8[%c0_18, %c0_19] : memref<32x128xbf16, #tpu.memory_space<vmem>>, vector<32x128xbf16>
      tpu.vector_store %arg8[%c0_18, %c0_19], %24 {strides = array<i32>} : memref<32x128xbf16, #tpu.memory_space<vmem>>, vector<32x128xbf16>,
    } else {
    }
    return
  }
  func.func @transform_0(%arg0: i32, %arg1: i32, %arg2: i32) -> (i32, i32) {
    %c0_i32 = arith.constant 0 : i32
    return %arg0, %arg2 : i32, i32
  }
  func.func @transform_1(%arg0: i32, %arg1: i32, %arg2: i32) -> (i32, i32) {
    %c0_i32 = arith.constant 0 : i32
    return %arg2, %arg1 : i32, i32
  }
  func.func @transform_2(%arg0: i32, %arg1: i32, %arg2: i32) -> (i32, i32) {
    %c0_i32 = arith.constant 0 : i32
    %c0_i32_0 = arith.constant 0 : i32
    return %c0_i32, %arg1 : i32, i32
  }
  func.func @transform_3(%arg0: i32, %arg1: i32, %arg2: i32) -> (i32, i32) {
    %c0_i32 = arith.constant 0 : i32
    %c0_i32_0 = arith.constant 0 : i32
    return %c0_i32, %arg1 : i32, i32
  }
  func.func @transform_4(%arg0: i32, %arg1: i32, %arg2: i32) -> (i32, i32) {
    %c0_i32 = arith.constant 0 : i32
    return %arg0, %arg1 : i32, i32
  }
  func.func @transform_5(%arg0: i32, %arg1: i32, %arg2: i32) -> (i32, i32) {
    %c0_i32 = arith.constant 0 : i32
    return %arg0, %arg1 : i32, i32
  }
}

module attributes {stable_mosaic.version = 11 : i64} {
  func.func @_conv_bn_kernel(%arg0: i32, %arg1: i32, %arg2: i32, %arg3: memref<32x384xbf16, #tpu.memory_space<vmem>>, %arg4: memref<384x128xbf16, #tpu.memory_space<vmem>>, %arg5: memref<1x128xf32, #tpu.memory_space<vmem>>, %arg6: memref<1x128xf32, #tpu.memory_space<vmem>>, %arg7: memref<32x128xbf16, #tpu.memory_space<vmem>>, %arg8: memref<32x128xf32, #tpu.memory_space<vmem>>) attributes {dimension_semantics = [#tpu.dimension_semantics<parallel>, #tpu.dimension_semantics<parallel>, #tpu.dimension_semantics<arbitrary>], iteration_bounds = array<i64: 1, 1, 3>, scalar_prefetch = 0 : i64, scratch_operands = 1 : i64, tpu.core_type = #tpu.core_type<tc>, window_params = [{transform_indices = @transform_0, window_bounds = array<i64: 32, 384>}, {transform_indices = @transform_1, window_bounds = array<i64: 384, 128>}, {transform_indices = @transform_2, window_bounds = array<i64: 1, 128>}, {transform_indices = @transform_3, window_bounds = array<i64: 1, 128>}, {transform_indices = @transform_4, window_bounds = array<i64: 32, 128>}]} {
    %c0_i32 = arith.constant 0 : i32
    %0 = arith.cmpi eq, %arg2, %c0_i32 : i32
    %1 = arith.extui %0 : i1 to i32
    %c0_i32_0 = arith.constant 0 : i32
    %2 = arith.cmpi ne, %1, %c0_i32_0 : i32
    scf.if %2 {
      %cst_9 = arith.constant 0.000000e+00 : f32
      %12 = vector.broadcast %cst_9 : f32 to vector<32x128xf32>
      %c0_10 = arith.constant 0 : index
      %c0_11 = arith.constant 0 : index
      %13 = vector.load %arg8[%c0_10, %c0_11] : memref<32x128xf32, #tpu.memory_space<vmem>>, vector<32x128xf32>
      tpu.vector_store %arg8[%c0_10, %c0_11], %12 {strides = array<i32>} : memref<32x128xf32, #tpu.memory_space<vmem>>, vector<32x128xf32>,
    } else {
    }
    %c0 = arith.constant 0 : index
    %c0_1 = arith.constant 0 : index
    %3 = vector.load %arg8[%c0, %c0_1] : memref<32x128xf32, #tpu.memory_space<vmem>>, vector<32x128xf32>
    %c0_2 = arith.constant 0 : index
    %c0_3 = arith.constant 0 : index
    %4 = vector.load %arg3[%c0_2, %c0_3] : memref<32x384xbf16, #tpu.memory_space<vmem>>, vector<32x384xbf16>
    %c0_4 = arith.constant 0 : index
    %c0_5 = arith.constant 0 : index
    %5 = vector.load %arg4[%c0_4, %c0_5] : memref<384x128xbf16, #tpu.memory_space<vmem>>, vector<384x128xbf16>
    %cst = arith.constant dense<0.000000e+00> : vector<32x128xf32>
    %6 = tpu.matmul %4, %5, %cst {dimension_numbers = #tpu.dot_dimension_numbers<[1], [0], [0], [1], [0, 0, 1, 1], [], []>} : vector<32x384xbf16>, vector<384x128xbf16>, vector<32x128xf32> -> vector<32x128xf32>
    %7 = arith.addf %3, %6 : vector<32x128xf32>
    %c0_6 = arith.constant 0 : index
    %c0_7 = arith.constant 0 : index
    %8 = vector.load %arg8[%c0_6, %c0_7] : memref<32x128xf32, #tpu.memory_space<vmem>>, vector<32x128xf32>
    tpu.vector_store %arg8[%c0_6, %c0_7], %7 {strides = array<i32>} : memref<32x128xf32, #tpu.memory_space<vmem>>, vector<32x128xf32>,
    %c2_i32 = arith.constant 2 : i32
    %9 = arith.cmpi eq, %arg2, %c2_i32 : i32
    %10 = arith.extui %9 : i1 to i32
    %c0_i32_8 = arith.constant 0 : i32
    %11 = arith.cmpi ne, %10, %c0_i32_8 : i32
    scf.if %11 {
      %c0_9 = arith.constant 0 : index
      %c0_10 = arith.constant 0 : index
      %12 = vector.load %arg8[%c0_9, %c0_10] : memref<32x128xf32, #tpu.memory_space<vmem>>, vector<32x128xf32>
      %c0_11 = arith.constant 0 : index
      %c0_12 = arith.constant 0 : index
      %13 = vector.load %arg5[%c0_11, %c0_12] : memref<1x128xf32, #tpu.memory_space<vmem>>, vector<1x128xf32>
      %14 = vector.broadcast %13 : vector<1x128xf32> to vector<32x128xf32>
      %15 = arith.mulf %12, %14 : vector<32x128xf32>
      %c0_13 = arith.constant 0 : index
      %c0_14 = arith.constant 0 : index
      %16 = vector.load %arg6[%c0_13, %c0_14] : memref<1x128xf32, #tpu.memory_space<vmem>>, vector<1x128xf32>
      %17 = vector.broadcast %16 : vector<1x128xf32> to vector<32x128xf32>
      %18 = arith.addf %15, %17 : vector<32x128xf32>
      %cst_15 = arith.constant 0.000000e+00 : f32
      %19 = vector.broadcast %cst_15 : f32 to vector<32x128xf32>
      %20 = arith.maximumf %18, %19 : vector<32x128xf32>
      %21 = arith.truncf %20 : vector<32x128xf32> to vector<32x128xbf16>
      %c0_16 = arith.constant 0 : index
      %c0_17 = arith.constant 0 : index
      %22 = vector.load %arg7[%c0_16, %c0_17] : memref<32x128xbf16, #tpu.memory_space<vmem>>, vector<32x128xbf16>
      tpu.vector_store %arg7[%c0_16, %c0_17], %21 {strides = array<i32>} : memref<32x128xbf16, #tpu.memory_space<vmem>>, vector<32x128xbf16>,
    } else {
    }
    return
  }
  func.func @transform_0(%arg0: i32, %arg1: i32, %arg2: i32) -> (i32, i32) {
    %c0_i32 = arith.constant 0 : i32
    return %arg0, %arg2 : i32, i32
  }
  func.func @transform_1(%arg0: i32, %arg1: i32, %arg2: i32) -> (i32, i32) {
    %c0_i32 = arith.constant 0 : i32
    return %arg2, %arg1 : i32, i32
  }
  func.func @transform_2(%arg0: i32, %arg1: i32, %arg2: i32) -> (i32, i32) {
    %c0_i32 = arith.constant 0 : i32
    %c0_i32_0 = arith.constant 0 : i32
    return %c0_i32, %arg1 : i32, i32
  }
  func.func @transform_3(%arg0: i32, %arg1: i32, %arg2: i32) -> (i32, i32) {
    %c0_i32 = arith.constant 0 : i32
    %c0_i32_0 = arith.constant 0 : i32
    return %c0_i32, %arg1 : i32, i32
  }
  func.func @transform_4(%arg0: i32, %arg1: i32, %arg2: i32) -> (i32, i32) {
    %c0_i32 = arith.constant 0 : i32
    return %arg0, %arg1 : i32, i32
  }
}

module attributes {stable_mosaic.version = 11 : i64} {
  func.func @_conv_bn_kernel(%arg0: i32, %arg1: i32, %arg2: i32, %arg3: memref<16x384xbf16, #tpu.memory_space<vmem>>, %arg4: memref<384x256xbf16, #tpu.memory_space<vmem>>, %arg5: memref<1x256xf32, #tpu.memory_space<vmem>>, %arg6: memref<1x256xf32, #tpu.memory_space<vmem>>, %arg7: memref<16x256xbf16, #tpu.memory_space<vmem>>, %arg8: memref<16x256xf32, #tpu.memory_space<vmem>>) attributes {dimension_semantics = [#tpu.dimension_semantics<parallel>, #tpu.dimension_semantics<parallel>, #tpu.dimension_semantics<arbitrary>], iteration_bounds = array<i64: 1, 1, 3>, scalar_prefetch = 0 : i64, scratch_operands = 1 : i64, tpu.core_type = #tpu.core_type<tc>, window_params = [{transform_indices = @transform_0, window_bounds = array<i64: 16, 384>}, {transform_indices = @transform_1, window_bounds = array<i64: 384, 256>}, {transform_indices = @transform_2, window_bounds = array<i64: 1, 256>}, {transform_indices = @transform_3, window_bounds = array<i64: 1, 256>}, {transform_indices = @transform_4, window_bounds = array<i64: 16, 256>}]} {
    %c0_i32 = arith.constant 0 : i32
    %0 = arith.cmpi eq, %arg2, %c0_i32 : i32
    %1 = arith.extui %0 : i1 to i32
    %c0_i32_0 = arith.constant 0 : i32
    %2 = arith.cmpi ne, %1, %c0_i32_0 : i32
    scf.if %2 {
      %cst_9 = arith.constant 0.000000e+00 : f32
      %12 = vector.broadcast %cst_9 : f32 to vector<16x256xf32>
      %c0_10 = arith.constant 0 : index
      %c0_11 = arith.constant 0 : index
      %13 = vector.load %arg8[%c0_10, %c0_11] : memref<16x256xf32, #tpu.memory_space<vmem>>, vector<16x256xf32>
      tpu.vector_store %arg8[%c0_10, %c0_11], %12 {strides = array<i32>} : memref<16x256xf32, #tpu.memory_space<vmem>>, vector<16x256xf32>,
    } else {
    }
    %c0 = arith.constant 0 : index
    %c0_1 = arith.constant 0 : index
    %3 = vector.load %arg8[%c0, %c0_1] : memref<16x256xf32, #tpu.memory_space<vmem>>, vector<16x256xf32>
    %c0_2 = arith.constant 0 : index
    %c0_3 = arith.constant 0 : index
    %4 = vector.load %arg3[%c0_2, %c0_3] : memref<16x384xbf16, #tpu.memory_space<vmem>>, vector<16x384xbf16>
    %c0_4 = arith.constant 0 : index
    %c0_5 = arith.constant 0 : index
    %5 = vector.load %arg4[%c0_4, %c0_5] : memref<384x256xbf16, #tpu.memory_space<vmem>>, vector<384x256xbf16>
    %cst = arith.constant dense<0.000000e+00> : vector<16x256xf32>
    %6 = tpu.matmul %4, %5, %cst {dimension_numbers = #tpu.dot_dimension_numbers<[1], [0], [0], [1], [0, 0, 1, 1], [], []>} : vector<16x384xbf16>, vector<384x256xbf16>, vector<16x256xf32> -> vector<16x256xf32>
    %7 = arith.addf %3, %6 : vector<16x256xf32>
    %c0_6 = arith.constant 0 : index
    %c0_7 = arith.constant 0 : index
    %8 = vector.load %arg8[%c0_6, %c0_7] : memref<16x256xf32, #tpu.memory_space<vmem>>, vector<16x256xf32>
    tpu.vector_store %arg8[%c0_6, %c0_7], %7 {strides = array<i32>} : memref<16x256xf32, #tpu.memory_space<vmem>>, vector<16x256xf32>,
    %c2_i32 = arith.constant 2 : i32
    %9 = arith.cmpi eq, %arg2, %c2_i32 : i32
    %10 = arith.extui %9 : i1 to i32
    %c0_i32_8 = arith.constant 0 : i32
    %11 = arith.cmpi ne, %10, %c0_i32_8 : i32
    scf.if %11 {
      %c0_9 = arith.constant 0 : index
      %c0_10 = arith.constant 0 : index
      %12 = vector.load %arg8[%c0_9, %c0_10] : memref<16x256xf32, #tpu.memory_space<vmem>>, vector<16x256xf32>
      %c0_11 = arith.constant 0 : index
      %c0_12 = arith.constant 0 : index
      %13 = vector.load %arg5[%c0_11, %c0_12] : memref<1x256xf32, #tpu.memory_space<vmem>>, vector<1x256xf32>
      %14 = vector.broadcast %13 : vector<1x256xf32> to vector<16x256xf32>
      %15 = arith.mulf %12, %14 : vector<16x256xf32>
      %c0_13 = arith.constant 0 : index
      %c0_14 = arith.constant 0 : index
      %16 = vector.load %arg6[%c0_13, %c0_14] : memref<1x256xf32, #tpu.memory_space<vmem>>, vector<1x256xf32>
      %17 = vector.broadcast %16 : vector<1x256xf32> to vector<16x256xf32>
      %18 = arith.addf %15, %17 : vector<16x256xf32>
      %cst_15 = arith.constant 0.000000e+00 : f32
      %19 = vector.broadcast %cst_15 : f32 to vector<16x256xf32>
      %20 = arith.maximumf %18, %19 : vector<16x256xf32>
      %21 = arith.truncf %20 : vector<16x256xf32> to vector<16x256xbf16>
      %c0_16 = arith.constant 0 : index
      %c0_17 = arith.constant 0 : index
      %22 = vector.load %arg7[%c0_16, %c0_17] : memref<16x256xbf16, #tpu.memory_space<vmem>>, vector<16x256xbf16>
      tpu.vector_store %arg7[%c0_16, %c0_17], %21 {strides = array<i32>} : memref<16x256xbf16, #tpu.memory_space<vmem>>, vector<16x256xbf16>,
    } else {
    }
    return
  }
  func.func @transform_0(%arg0: i32, %arg1: i32, %arg2: i32) -> (i32, i32) {
    %c0_i32 = arith.constant 0 : i32
    return %arg0, %arg2 : i32, i32
  }
  func.func @transform_1(%arg0: i32, %arg1: i32, %arg2: i32) -> (i32, i32) {
    %c0_i32 = arith.constant 0 : i32
    return %arg2, %arg1 : i32, i32
  }
  func.func @transform_2(%arg0: i32, %arg1: i32, %arg2: i32) -> (i32, i32) {
    %c0_i32 = arith.constant 0 : i32
    %c0_i32_0 = arith.constant 0 : i32
    return %c0_i32, %arg1 : i32, i32
  }
  func.func @transform_3(%arg0: i32, %arg1: i32, %arg2: i32) -> (i32, i32) {
    %c0_i32 = arith.constant 0 : i32
    %c0_i32_0 = arith.constant 0 : i32
    return %c0_i32, %arg1 : i32, i32
  }
  func.func @transform_4(%arg0: i32, %arg1: i32, %arg2: i32) -> (i32, i32) {
    %c0_i32 = arith.constant 0 : i32
    return %arg0, %arg1 : i32, i32
  }
}

module attributes {stable_mosaic.version = 11 : i64} {
  func.func @_conv_bn_kernel(%arg0: i32, %arg1: i32, %arg2: i32, %arg3: memref<16x128xbf16, #tpu.memory_space<vmem>>, %arg4: memref<128x256xbf16, #tpu.memory_space<vmem>>, %arg5: memref<1x256xf32, #tpu.memory_space<vmem>>, %arg6: memref<1x256xf32, #tpu.memory_space<vmem>>, %arg7: memref<16x256xbf16, #tpu.memory_space<vmem>>, %arg8: memref<16x256xf32, #tpu.memory_space<vmem>>) attributes {dimension_semantics = [#tpu.dimension_semantics<parallel>, #tpu.dimension_semantics<parallel>, #tpu.dimension_semantics<arbitrary>], iteration_bounds = array<i64: 1, 1, 1>, scalar_prefetch = 0 : i64, scratch_operands = 1 : i64, tpu.core_type = #tpu.core_type<tc>, window_params = [{transform_indices = @transform_0, window_bounds = array<i64: 16, 128>}, {transform_indices = @transform_1, window_bounds = array<i64: 128, 256>}, {transform_indices = @transform_2, window_bounds = array<i64: 1, 256>}, {transform_indices = @transform_3, window_bounds = array<i64: 1, 256>}, {transform_indices = @transform_4, window_bounds = array<i64: 16, 256>}]} {
    %c0_i32 = arith.constant 0 : i32
    %0 = arith.cmpi eq, %arg2, %c0_i32 : i32
    %1 = arith.extui %0 : i1 to i32
    %c0_i32_0 = arith.constant 0 : i32
    %2 = arith.cmpi ne, %1, %c0_i32_0 : i32
    scf.if %2 {
      %cst_10 = arith.constant 0.000000e+00 : f32
      %12 = vector.broadcast %cst_10 : f32 to vector<16x256xf32>
      %c0_11 = arith.constant 0 : index
      %c0_12 = arith.constant 0 : index
      %13 = vector.load %arg8[%c0_11, %c0_12] : memref<16x256xf32, #tpu.memory_space<vmem>>, vector<16x256xf32>
      tpu.vector_store %arg8[%c0_11, %c0_12], %12 {strides = array<i32>} : memref<16x256xf32, #tpu.memory_space<vmem>>, vector<16x256xf32>,
    } else {
    }
    %c0 = arith.constant 0 : index
    %c0_1 = arith.constant 0 : index
    %3 = vector.load %arg8[%c0, %c0_1] : memref<16x256xf32, #tpu.memory_space<vmem>>, vector<16x256xf32>
    %c0_2 = arith.constant 0 : index
    %c0_3 = arith.constant 0 : index
    %4 = vector.load %arg3[%c0_2, %c0_3] : memref<16x128xbf16, #tpu.memory_space<vmem>>, vector<16x128xbf16>
    %c0_4 = arith.constant 0 : index
    %c0_5 = arith.constant 0 : index
    %5 = vector.load %arg4[%c0_4, %c0_5] : memref<128x256xbf16, #tpu.memory_space<vmem>>, vector<128x256xbf16>
    %cst = arith.constant dense<0.000000e+00> : vector<16x256xf32>
    %6 = tpu.matmul %4, %5, %cst {dimension_numbers = #tpu.dot_dimension_numbers<[1], [0], [0], [1], [0, 0, 1, 1], [], []>} : vector<16x128xbf16>, vector<128x256xbf16>, vector<16x256xf32> -> vector<16x256xf32>
    %7 = arith.addf %3, %6 : vector<16x256xf32>
    %c0_6 = arith.constant 0 : index
    %c0_7 = arith.constant 0 : index
    %8 = vector.load %arg8[%c0_6, %c0_7] : memref<16x256xf32, #tpu.memory_space<vmem>>, vector<16x256xf32>
    tpu.vector_store %arg8[%c0_6, %c0_7], %7 {strides = array<i32>} : memref<16x256xf32, #tpu.memory_space<vmem>>, vector<16x256xf32>,
    %c0_i32_8 = arith.constant 0 : i32
    %9 = arith.cmpi eq, %arg2, %c0_i32_8 : i32
    %10 = arith.extui %9 : i1 to i32
    %c0_i32_9 = arith.constant 0 : i32
    %11 = arith.cmpi ne, %10, %c0_i32_9 : i32
    scf.if %11 {
      %c0_10 = arith.constant 0 : index
      %c0_11 = arith.constant 0 : index
      %12 = vector.load %arg8[%c0_10, %c0_11] : memref<16x256xf32, #tpu.memory_space<vmem>>, vector<16x256xf32>
      %c0_12 = arith.constant 0 : index
      %c0_13 = arith.constant 0 : index
      %13 = vector.load %arg5[%c0_12, %c0_13] : memref<1x256xf32, #tpu.memory_space<vmem>>, vector<1x256xf32>
      %14 = vector.broadcast %13 : vector<1x256xf32> to vector<16x256xf32>
      %15 = arith.mulf %12, %14 : vector<16x256xf32>
      %c0_14 = arith.constant 0 : index
      %c0_15 = arith.constant 0 : index
      %16 = vector.load %arg6[%c0_14, %c0_15] : memref<1x256xf32, #tpu.memory_space<vmem>>, vector<1x256xf32>
      %17 = vector.broadcast %16 : vector<1x256xf32> to vector<16x256xf32>
      %18 = arith.addf %15, %17 : vector<16x256xf32>
      %19 = arith.truncf %18 : vector<16x256xf32> to vector<16x256xbf16>
      %c0_16 = arith.constant 0 : index
      %c0_17 = arith.constant 0 : index
      %20 = vector.load %arg7[%c0_16, %c0_17] : memref<16x256xbf16, #tpu.memory_space<vmem>>, vector<16x256xbf16>
      tpu.vector_store %arg7[%c0_16, %c0_17], %19 {strides = array<i32>} : memref<16x256xbf16, #tpu.memory_space<vmem>>, vector<16x256xbf16>,
    } else {
    }
    return
  }
  func.func @transform_0(%arg0: i32, %arg1: i32, %arg2: i32) -> (i32, i32) {
    %c0_i32 = arith.constant 0 : i32
    return %arg0, %arg2 : i32, i32
  }
  func.func @transform_1(%arg0: i32, %arg1: i32, %arg2: i32) -> (i32, i32) {
    %c0_i32 = arith.constant 0 : i32
    return %arg2, %arg1 : i32, i32
  }
  func.func @transform_2(%arg0: i32, %arg1: i32, %arg2: i32) -> (i32, i32) {
    %c0_i32 = arith.constant 0 : i32
    %c0_i32_0 = arith.constant 0 : i32
    return %c0_i32, %arg1 : i32, i32
  }
  func.func @transform_3(%arg0: i32, %arg1: i32, %arg2: i32) -> (i32, i32) {
    %c0_i32 = arith.constant 0 : i32
    %c0_i32_0 = arith.constant 0 : i32
    return %c0_i32, %arg1 : i32, i32
  }
  func.func @transform_4(%arg0: i32, %arg1: i32, %arg2: i32) -> (i32, i32) {
    %c0_i32 = arith.constant 0 : i32
    return %arg0, %arg1 : i32, i32
  }
}

module attributes {stable_mosaic.version = 11 : i64} {
  func.func @_conv_bn_res_kernel(%arg0: i32, %arg1: i32, %arg2: i32, %arg3: memref<16x384xbf16, #tpu.memory_space<vmem>>, %arg4: memref<384x256xbf16, #tpu.memory_space<vmem>>, %arg5: memref<1x256xf32, #tpu.memory_space<vmem>>, %arg6: memref<1x256xf32, #tpu.memory_space<vmem>>, %arg7: memref<16x256xbf16, #tpu.memory_space<vmem>>, %arg8: memref<16x256xbf16, #tpu.memory_space<vmem>>, %arg9: memref<16x256xf32, #tpu.memory_space<vmem>>) attributes {dimension_semantics = [#tpu.dimension_semantics<parallel>, #tpu.dimension_semantics<parallel>, #tpu.dimension_semantics<arbitrary>], iteration_bounds = array<i64: 1, 1, 6>, scalar_prefetch = 0 : i64, scratch_operands = 1 : i64, tpu.core_type = #tpu.core_type<tc>, window_params = [{transform_indices = @transform_0, window_bounds = array<i64: 16, 384>}, {transform_indices = @transform_1, window_bounds = array<i64: 384, 256>}, {transform_indices = @transform_2, window_bounds = array<i64: 1, 256>}, {transform_indices = @transform_3, window_bounds = array<i64: 1, 256>}, {transform_indices = @transform_4, window_bounds = array<i64: 16, 256>}, {transform_indices = @transform_5, window_bounds = array<i64: 16, 256>}]} {
    %c0_i32 = arith.constant 0 : i32
    %0 = arith.cmpi eq, %arg2, %c0_i32 : i32
    %1 = arith.extui %0 : i1 to i32
    %c0_i32_0 = arith.constant 0 : i32
    %2 = arith.cmpi ne, %1, %c0_i32_0 : i32
    scf.if %2 {
      %cst_9 = arith.constant 0.000000e+00 : f32
      %12 = vector.broadcast %cst_9 : f32 to vector<16x256xf32>
      %c0_10 = arith.constant 0 : index
      %c0_11 = arith.constant 0 : index
      %13 = vector.load %arg9[%c0_10, %c0_11] : memref<16x256xf32, #tpu.memory_space<vmem>>, vector<16x256xf32>
      tpu.vector_store %arg9[%c0_10, %c0_11], %12 {strides = array<i32>} : memref<16x256xf32, #tpu.memory_space<vmem>>, vector<16x256xf32>,
    } else {
    }
    %c0 = arith.constant 0 : index
    %c0_1 = arith.constant 0 : index
    %3 = vector.load %arg9[%c0, %c0_1] : memref<16x256xf32, #tpu.memory_space<vmem>>, vector<16x256xf32>
    %c0_2 = arith.constant 0 : index
    %c0_3 = arith.constant 0 : index
    %4 = vector.load %arg3[%c0_2, %c0_3] : memref<16x384xbf16, #tpu.memory_space<vmem>>, vector<16x384xbf16>
    %c0_4 = arith.constant 0 : index
    %c0_5 = arith.constant 0 : index
    %5 = vector.load %arg4[%c0_4, %c0_5] : memref<384x256xbf16, #tpu.memory_space<vmem>>, vector<384x256xbf16>
    %cst = arith.constant dense<0.000000e+00> : vector<16x256xf32>
    %6 = tpu.matmul %4, %5, %cst {dimension_numbers = #tpu.dot_dimension_numbers<[1], [0], [0], [1], [0, 0, 1, 1], [], []>} : vector<16x384xbf16>, vector<384x256xbf16>, vector<16x256xf32> -> vector<16x256xf32>
    %7 = arith.addf %3, %6 : vector<16x256xf32>
    %c0_6 = arith.constant 0 : index
    %c0_7 = arith.constant 0 : index
    %8 = vector.load %arg9[%c0_6, %c0_7] : memref<16x256xf32, #tpu.memory_space<vmem>>, vector<16x256xf32>
    tpu.vector_store %arg9[%c0_6, %c0_7], %7 {strides = array<i32>} : memref<16x256xf32, #tpu.memory_space<vmem>>, vector<16x256xf32>,
    %c5_i32 = arith.constant 5 : i32
    %9 = arith.cmpi eq, %arg2, %c5_i32 : i32
    %10 = arith.extui %9 : i1 to i32
    %c0_i32_8 = arith.constant 0 : i32
    %11 = arith.cmpi ne, %10, %c0_i32_8 : i32
    scf.if %11 {
      %c0_9 = arith.constant 0 : index
      %c0_10 = arith.constant 0 : index
      %12 = vector.load %arg9[%c0_9, %c0_10] : memref<16x256xf32, #tpu.memory_space<vmem>>, vector<16x256xf32>
      %c0_11 = arith.constant 0 : index
      %c0_12 = arith.constant 0 : index
      %13 = vector.load %arg5[%c0_11, %c0_12] : memref<1x256xf32, #tpu.memory_space<vmem>>, vector<1x256xf32>
      %14 = vector.broadcast %13 : vector<1x256xf32> to vector<16x256xf32>
      %15 = arith.mulf %12, %14 : vector<16x256xf32>
      %c0_13 = arith.constant 0 : index
      %c0_14 = arith.constant 0 : index
      %16 = vector.load %arg6[%c0_13, %c0_14] : memref<1x256xf32, #tpu.memory_space<vmem>>, vector<1x256xf32>
      %17 = vector.broadcast %16 : vector<1x256xf32> to vector<16x256xf32>
      %18 = arith.addf %15, %17 : vector<16x256xf32>
      %c0_15 = arith.constant 0 : index
      %c0_16 = arith.constant 0 : index
      %19 = vector.load %arg7[%c0_15, %c0_16] : memref<16x256xbf16, #tpu.memory_space<vmem>>, vector<16x256xbf16>
      %20 = arith.extf %19 : vector<16x256xbf16> to vector<16x256xf32>
      %21 = arith.addf %18, %20 : vector<16x256xf32>
      %cst_17 = arith.constant 0.000000e+00 : f32
      %22 = vector.broadcast %cst_17 : f32 to vector<16x256xf32>
      %23 = arith.maximumf %21, %22 : vector<16x256xf32>
      %24 = arith.truncf %23 : vector<16x256xf32> to vector<16x256xbf16>
      %c0_18 = arith.constant 0 : index
      %c0_19 = arith.constant 0 : index
      %25 = vector.load %arg8[%c0_18, %c0_19] : memref<16x256xbf16, #tpu.memory_space<vmem>>, vector<16x256xbf16>
      tpu.vector_store %arg8[%c0_18, %c0_19], %24 {strides = array<i32>} : memref<16x256xbf16, #tpu.memory_space<vmem>>, vector<16x256xbf16>,
    } else {
    }
    return
  }
  func.func @transform_0(%arg0: i32, %arg1: i32, %arg2: i32) -> (i32, i32) {
    %c0_i32 = arith.constant 0 : i32
    return %arg0, %arg2 : i32, i32
  }
  func.func @transform_1(%arg0: i32, %arg1: i32, %arg2: i32) -> (i32, i32) {
    %c0_i32 = arith.constant 0 : i32
    return %arg2, %arg1 : i32, i32
  }
  func.func @transform_2(%arg0: i32, %arg1: i32, %arg2: i32) -> (i32, i32) {
    %c0_i32 = arith.constant 0 : i32
    %c0_i32_0 = arith.constant 0 : i32
    return %c0_i32, %arg1 : i32, i32
  }
  func.func @transform_3(%arg0: i32, %arg1: i32, %arg2: i32) -> (i32, i32) {
    %c0_i32 = arith.constant 0 : i32
    %c0_i32_0 = arith.constant 0 : i32
    return %c0_i32, %arg1 : i32, i32
  }
  func.func @transform_4(%arg0: i32, %arg1: i32, %arg2: i32) -> (i32, i32) {
    %c0_i32 = arith.constant 0 : i32
    return %arg0, %arg1 : i32, i32
  }
  func.func @transform_5(%arg0: i32, %arg1: i32, %arg2: i32) -> (i32, i32) {
    %c0_i32 = arith.constant 0 : i32
    return %arg0, %arg1 : i32, i32
  }
}

module attributes {stable_mosaic.version = 11 : i64} {
  func.func @_conv_bn_kernel(%arg0: i32, %arg1: i32, %arg2: i32, %arg3: memref<16x384xbf16, #tpu.memory_space<vmem>>, %arg4: memref<384x256xbf16, #tpu.memory_space<vmem>>, %arg5: memref<1x256xf32, #tpu.memory_space<vmem>>, %arg6: memref<1x256xf32, #tpu.memory_space<vmem>>, %arg7: memref<16x256xbf16, #tpu.memory_space<vmem>>, %arg8: memref<16x256xf32, #tpu.memory_space<vmem>>) attributes {dimension_semantics = [#tpu.dimension_semantics<parallel>, #tpu.dimension_semantics<parallel>, #tpu.dimension_semantics<arbitrary>], iteration_bounds = array<i64: 1, 1, 6>, scalar_prefetch = 0 : i64, scratch_operands = 1 : i64, tpu.core_type = #tpu.core_type<tc>, window_params = [{transform_indices = @transform_0, window_bounds = array<i64: 16, 384>}, {transform_indices = @transform_1, window_bounds = array<i64: 384, 256>}, {transform_indices = @transform_2, window_bounds = array<i64: 1, 256>}, {transform_indices = @transform_3, window_bounds = array<i64: 1, 256>}, {transform_indices = @transform_4, window_bounds = array<i64: 16, 256>}]} {
    %c0_i32 = arith.constant 0 : i32
    %0 = arith.cmpi eq, %arg2, %c0_i32 : i32
    %1 = arith.extui %0 : i1 to i32
    %c0_i32_0 = arith.constant 0 : i32
    %2 = arith.cmpi ne, %1, %c0_i32_0 : i32
    scf.if %2 {
      %cst_9 = arith.constant 0.000000e+00 : f32
      %12 = vector.broadcast %cst_9 : f32 to vector<16x256xf32>
      %c0_10 = arith.constant 0 : index
      %c0_11 = arith.constant 0 : index
      %13 = vector.load %arg8[%c0_10, %c0_11] : memref<16x256xf32, #tpu.memory_space<vmem>>, vector<16x256xf32>
      tpu.vector_store %arg8[%c0_10, %c0_11], %12 {strides = array<i32>} : memref<16x256xf32, #tpu.memory_space<vmem>>, vector<16x256xf32>,
    } else {
    }
    %c0 = arith.constant 0 : index
    %c0_1 = arith.constant 0 : index
    %3 = vector.load %arg8[%c0, %c0_1] : memref<16x256xf32, #tpu.memory_space<vmem>>, vector<16x256xf32>
    %c0_2 = arith.constant 0 : index
    %c0_3 = arith.constant 0 : index
    %4 = vector.load %arg3[%c0_2, %c0_3] : memref<16x384xbf16, #tpu.memory_space<vmem>>, vector<16x384xbf16>
    %c0_4 = arith.constant 0 : index
    %c0_5 = arith.constant 0 : index
    %5 = vector.load %arg4[%c0_4, %c0_5] : memref<384x256xbf16, #tpu.memory_space<vmem>>, vector<384x256xbf16>
    %cst = arith.constant dense<0.000000e+00> : vector<16x256xf32>
    %6 = tpu.matmul %4, %5, %cst {dimension_numbers = #tpu.dot_dimension_numbers<[1], [0], [0], [1], [0, 0, 1, 1], [], []>} : vector<16x384xbf16>, vector<384x256xbf16>, vector<16x256xf32> -> vector<16x256xf32>
    %7 = arith.addf %3, %6 : vector<16x256xf32>
    %c0_6 = arith.constant 0 : index
    %c0_7 = arith.constant 0 : index
    %8 = vector.load %arg8[%c0_6, %c0_7] : memref<16x256xf32, #tpu.memory_space<vmem>>, vector<16x256xf32>
    tpu.vector_store %arg8[%c0_6, %c0_7], %7 {strides = array<i32>} : memref<16x256xf32, #tpu.memory_space<vmem>>, vector<16x256xf32>,
    %c5_i32 = arith.constant 5 : i32
    %9 = arith.cmpi eq, %arg2, %c5_i32 : i32
    %10 = arith.extui %9 : i1 to i32
    %c0_i32_8 = arith.constant 0 : i32
    %11 = arith.cmpi ne, %10, %c0_i32_8 : i32
    scf.if %11 {
      %c0_9 = arith.constant 0 : index
      %c0_10 = arith.constant 0 : index
      %12 = vector.load %arg8[%c0_9, %c0_10] : memref<16x256xf32, #tpu.memory_space<vmem>>, vector<16x256xf32>
      %c0_11 = arith.constant 0 : index
      %c0_12 = arith.constant 0 : index
      %13 = vector.load %arg5[%c0_11, %c0_12] : memref<1x256xf32, #tpu.memory_space<vmem>>, vector<1x256xf32>
      %14 = vector.broadcast %13 : vector<1x256xf32> to vector<16x256xf32>
      %15 = arith.mulf %12, %14 : vector<16x256xf32>
      %c0_13 = arith.constant 0 : index
      %c0_14 = arith.constant 0 : index
      %16 = vector.load %arg6[%c0_13, %c0_14] : memref<1x256xf32, #tpu.memory_space<vmem>>, vector<1x256xf32>
      %17 = vector.broadcast %16 : vector<1x256xf32> to vector<16x256xf32>
      %18 = arith.addf %15, %17 : vector<16x256xf32>
      %cst_15 = arith.constant 0.000000e+00 : f32
      %19 = vector.broadcast %cst_15 : f32 to vector<16x256xf32>
      %20 = arith.maximumf %18, %19 : vector<16x256xf32>
      %21 = arith.truncf %20 : vector<16x256xf32> to vector<16x256xbf16>
      %c0_16 = arith.constant 0 : index
      %c0_17 = arith.constant 0 : index
      %22 = vector.load %arg7[%c0_16, %c0_17] : memref<16x256xbf16, #tpu.memory_space<vmem>>, vector<16x256xbf16>
      tpu.vector_store %arg7[%c0_16, %c0_17], %21 {strides = array<i32>} : memref<16x256xbf16, #tpu.memory_space<vmem>>, vector<16x256xbf16>,
    } else {
    }
    return
  }
  func.func @transform_0(%arg0: i32, %arg1: i32, %arg2: i32) -> (i32, i32) {
    %c0_i32 = arith.constant 0 : i32
    return %arg0, %arg2 : i32, i32
  }
  func.func @transform_1(%arg0: i32, %arg1: i32, %arg2: i32) -> (i32, i32) {
    %c0_i32 = arith.constant 0 : i32
    return %arg2, %arg1 : i32, i32
  }
  func.func @transform_2(%arg0: i32, %arg1: i32, %arg2: i32) -> (i32, i32) {
    %c0_i32 = arith.constant 0 : i32
    %c0_i32_0 = arith.constant 0 : i32
    return %c0_i32, %arg1 : i32, i32
  }
  func.func @transform_3(%arg0: i32, %arg1: i32, %arg2: i32) -> (i32, i32) {
    %c0_i32 = arith.constant 0 : i32
    %c0_i32_0 = arith.constant 0 : i32
    return %c0_i32, %arg1 : i32, i32
  }
  func.func @transform_4(%arg0: i32, %arg1: i32, %arg2: i32) -> (i32, i32) {
    %c0_i32 = arith.constant 0 : i32
    return %arg0, %arg1 : i32, i32
  }
}

</mosaic_0001>

<bundles_post_ra>
// kernel: resnet_forward.17
= control target key start
LH: loop header
LB: loop body
LE: loop exit
PB: predicated region body
PF: predicated region fallthrough
CT: control target
= control target key end

     0   :  { %vm304_vm0 = vcmask 519168   ;;  %s871_s0 = inlined_call_operand.vmem [shape: bf16[128,64], index: 0, kind: input, shape index: {}]   ;;  %s872_s1 = inlined_call_operand.vmem [shape: bf16[128,64], index: 1, kind: input, shape index: {}]   ;;  %s873_s2 = inlined_call_operand.vmem [shape: bf16[128,64], index: 2, kind: input, shape index: {}]   ;;  %s874_s3 = inlined_call_operand.vmem [shape: bf16[128,64], index: 3, kind: input, shape index: {}]   ;;  %s875_s4 = inlined_call_operand.vmem [shape: bf16[128,64], index: 4, kind: input, shape index: {}]   ;;  %s876_s5 = inlined_call_operand.vmem [shape: bf16[128,64], index: 5, kind: input, shape index: {}]   ;;  %s877_s6 = inlined_call_operand.vmem [shape: bf16[128,64], index: 6, kind: input, shape index: {}]   ;;  %s878_s7 = inlined_call_operand.vmem [shape: bf16[128,64], index: 7, kind: input, shape index: {}]   ;;  %s879_s8 = inlined_call_operand.vmem [shape: bf16[128,64], index: 8, kind: input, shape index: {}]   ;;  %s880_s9 = inlined_call_operand.vmem [shape: bf16[128,64], index: 9, kind: output, shape index: {}]  }
   0x1   :  { %v32_v0 = vld [vmem:[%s871_s0] sm:$0xf]  ;;  %v33_v6 = vld [vmem:[%s871_s0 + $0x4] sm:$0xf]  ;;  %v34_v15 = vld [vmem:[%s871_s0 + $0x8] sm:$0xf] }
   0x2   :  { %v48_v1 = vld [vmem:[%s872_s1] sm:$0xf]  ;;  %v49_v7 = vld [vmem:[%s872_s1 + $0x4] sm:$0xf]  ;;  %v50_v16 = vld [vmem:[%s872_s1 + $0x8] sm:$0xf] }
   0x3   :  { %v80_v2 = vld [vmem:[%s873_s2] sm:$0xf]  ;;  %v64_v3 = vmax.bf16 %v48_v1, %v32_v0  ;;  %v81_v8 = vld [vmem:[%s873_s2 + $0x4] sm:$0xf]  ;;  %v65_v10 = vmax.bf16 %v49_v7, %v33_v6  ;;  %v82_v17 = vld [vmem:[%s873_s2 + $0x8] sm:$0xf]  ;;  %v66_v20 = vmax.bf16 %v50_v16, %v34_v15 }
   0x4   :  { %v112_v4 = vld [vmem:[%s874_s3] sm:$0xf]  ;;  %v113_v13 = vld [vmem:[%s874_s3 + $0x4] sm:$0xf]  ;;  %v114_v24 = vld [vmem:[%s874_s3 + $0x8] sm:$0xf] }
   0x5   :  { %v96_v5 = vmax.bf16 %v80_v2, %v64_v3  ;;  %v144_v9 = vld [vmem:[%s875_s4] sm:$0xf]  ;;  %v97_v14 = vmax.bf16 %v81_v8, %v65_v10  ;;  %v145_v19 = vld [vmem:[%s875_s4 + $0x4] sm:$0xf]  ;;  %v98_v26 = vmax.bf16 %v82_v17, %v66_v20  ;;  %v35_v27 = vld [vmem:[%s871_s0 + $0xc] sm:$0xf] }
   0x6   :  { %v176_v12 = vld [vmem:[%s876_s5] sm:$0xf]  ;;  %v177_v23 = vld [vmem:[%s876_s5 + $0x4] sm:$0xf]  ;;  %v51_v28 = vld [vmem:[%s872_s1 + $0xc] sm:$0xf] }
   0x7   :  { %v128_v11 = vmax.bf16 %v112_v4, %v96_v5  ;;  %v208_v21 = vld [vmem:[%s877_s6] sm:$0xf]  ;;  %v129_v22 = vmax.bf16 %v113_v13, %v97_v14  ;;  %v83_v29 = vld [vmem:[%s873_s2 + $0xc] sm:$0xf]  ;;  %v146_v33 = vld [vmem:[%s875_s4 + $0x8] sm:$0xf]  ;;  %v67_v34 = vmax.bf16 %v51_v28, %v35_v27  ;;  %v130_v37 = vmax.bf16 %v114_v24, %v98_v26 }
   0x8   :  { %v240_v30 = vld [vmem:[%s878_s7] sm:$0xf]  ;;  %v209_v36 = vld [vmem:[%s877_s6 + $0x4] sm:$0xf]  ;;  %v178_v38 = vld [vmem:[%s876_s5 + $0x8] sm:$0xf] }
   0x9   :  { %v160_v18 = vmax.bf16 %v144_v9, %v128_v11  ;;  %v272_v31 = vld [vmem:[%s879_s8] sm:$0xf]  ;;  %v161_v32 = vmax.bf16 %v145_v19, %v129_v22  ;;  %v115_v39 = vld [vmem:[%s874_s3 + $0xc] sm:$0xf]  ;;  %v99_v41 = vmax.bf16 %v83_v29, %v67_v34  ;;  %v36_v42 = vld [vmem:[%s871_s0 + $0x10] sm:$0xf]  ;;  %v162_v48 = vmax.bf16 %v146_v33, %v130_v37 }
   0xa   :  { %v52_v43 = vld [vmem:[%s872_s1 + $0x10] sm:$0xf]  ;;  %v241_v46 = vld [vmem:[%s878_s7 + $0x4] sm:$0xf]  ;;  %v147_v49 = vld [vmem:[%s875_s4 + $0xc] sm:$0xf] }
   0xb   :  { %v192_v25 = vmax.bf16 %v176_v12, %v160_v18  ;;  %v193_v40 = vmax.bf16 %v177_v23, %v161_v32  ;;  %v84_v44 = vld [vmem:[%s873_s2 + $0x10] sm:$0xf]  ;;  %v273_v47 = vld [vmem:[%s879_s8 + $0x4] sm:$0xf]  ;;  %v68_v50 = vmax.bf16 %v52_v43, %v36_v42  ;;  %v210_v52 = vld [vmem:[%s877_s6 + $0x8] sm:$0xf]  ;;  %v131_v53 = vmax.bf16 %v115_v39, %v99_v41 }
   0xc   :  { %v179_v54 = vld [vmem:[%s876_s5 + $0xc] sm:$0xf]  ;;  %v116_v55 = vld [vmem:[%s874_s3 + $0x10] sm:$0xf]  ;;  %v194_v57 = vmax.bf16 %v178_v38, %v162_v48  ;;  %v37_v59 = vld [vmem:[%s871_s0 + $0x14] sm:$0xf] }
   0xd   :  { %v224_v35 = vmax.bf16 %v208_v21, %v192_v25  ;;  %v225_v51 = vmax.bf16 %v209_v36, %v193_v40  ;;  %v100_v58 = vmax.bf16 %v84_v44, %v68_v50  ;;  %v53_v60 = vld [vmem:[%s872_s1 + $0x14] sm:$0xf]  ;;  %v242_v63 = vld [vmem:[%s878_s7 + $0x8] sm:$0xf]  ;;  %v163_v1 = vmax.bf16 %v147_v49, %v131_v53  ;;  %v148_v2 = vld [vmem:[%s875_s4 + $0x10] sm:$0xf] }
   0xe   :  { %v85_v61 = vld [vmem:[%s873_s2 + $0x14] sm:$0xf]  ;;  %v274_v0 = vld [vmem:[%s879_s8 + $0x8] sm:$0xf]  ;;  %v69_v3 = vmax.bf16 %v53_v60, %v37_v59  ;;  %v226_v4 = vmax.bf16 %v210_v52, %v194_v57  ;;  %v211_v5 = vld [vmem:[%s877_s6 + $0xc] sm:$0xf] }
   0xf   :  { %v256_v45 = vmax.bf16 %v240_v30, %v224_v35  ;;  %v257_v62 = vmax.bf16 %v241_v46, %v225_v51  ;;  %v132_v6 = vmax.bf16 %v116_v55, %v100_v58  ;;  %v180_v7 = vld [vmem:[%s876_s5 + $0x10] sm:$0xf]  ;;  %v117_v8 = vld [vmem:[%s874_s3 + $0x14] sm:$0xf]  ;;  %v195_v10 = vmax.bf16 %v179_v54, %v163_v1  ;;  %v38_v12 = vld [vmem:[%s871_s0 + $0x18] sm:$0xf] }
  0x10   :  { %v101_v11 = vmax.bf16 %v85_v61, %v69_v3  ;;  %v54_v13 = vld [vmem:[%s872_s1 + $0x18] sm:$0xf]  ;;  %v258_v15 = vmax.bf16 %v242_v63, %v226_v4  ;;  %v243_v16 = vld [vmem:[%s878_s7 + $0xc] sm:$0xf]  ;;  %v149_v19 = vld [vmem:[%s875_s4 + $0x14] sm:$0xf] }
  0x11   :  { %v288_v56 = vmax.bf16 %v272_v31, %v256_v45  ;;  %v289_v9 = vmax.bf16 %v273_v47, %v257_v62  ;;  %v86_v14 = vld [vmem:[%s873_s2 + $0x18] sm:$0xf]  ;;  %v275_v17 = vld [vmem:[%s879_s8 + $0xc] sm:$0xf]  ;;  %v164_v18 = vmax.bf16 %v148_v2, %v132_v6  ;;  %v70_v20 = vmax.bf16 %v54_v13, %v38_v12  ;;  %v212_v22 = vld [vmem:[%s877_s6 + $0x10] sm:$0xf] }
  0x12   :  { %v227_v21 = vmax.bf16 %v211_v5, %v195_v10  ;;  %v133_v23 = vmax.bf16 %v117_v8, %v101_v11  ;;  %v181_v24 = vld [vmem:[%s876_s5 + $0x14] sm:$0xf]  ;;  %v118_v25 = vld [vmem:[%s874_s3 + $0x18] sm:$0xf]  ;;  %v290_v26 = vmax.bf16 %v274_v0, %v258_v15  ;;  %v39_v29 = vld [vmem:[%s871_s0 + $0x1c] sm:$0xf] }
  0x13   :  { %305 = vst.msk [vmem:[%s880_s9] sm:$0xf] %vm304_vm0, %v288_v56  ;;  %306 = vst.msk [vmem:[%s880_s9 + $0x4] sm:$0xf] %vm304_vm0, %v289_v9  ;;  %v196_v27 = vmax.bf16 %v180_v7, %v164_v18  ;;  %v102_v28 = vmax.bf16 %v86_v14, %v70_v20  ;;  %v55_v30 = vld [vmem:[%s872_s1 + $0x1c] sm:$0xf] }
  0x14   :  { %v87_v31 = vld [vmem:[%s873_s2 + $0x1c] sm:$0xf]  ;;  %v259_v32 = vmax.bf16 %v243_v16, %v227_v21  ;;  %v244_v33 = vld [vmem:[%s878_s7 + $0x10] sm:$0xf]  ;;  %v165_v35 = vmax.bf16 %v149_v19, %v133_v23  ;;  %v150_v36 = vld [vmem:[%s875_s4 + $0x18] sm:$0xf]  ;;  %v71_v37 = vmax.bf16 %v55_v30, %v39_v29 }
  0x15   :  { %v276_v34 = vld [vmem:[%s879_s8 + $0x10] sm:$0xf]  ;;  %307 = vst.msk [vmem:[%s880_s9 + $0x8] sm:$0xf] %vm304_vm0, %v290_v26  ;;  %v228_v38 = vmax.bf16 %v212_v22, %v196_v27  ;;  %v213_v39 = vld [vmem:[%s877_s6 + $0x14] sm:$0xf]  ;;  %v134_v40 = vmax.bf16 %v118_v25, %v102_v28 }
  0x16   :  { %v182_v41 = vld [vmem:[%s876_s5 + $0x18] sm:$0xf]  ;;  %v119_v42 = vld [vmem:[%s874_s3 + $0x1c] sm:$0xf]  ;;  %v291_v43 = vmax.bf16 %v275_v17, %v259_v32  ;;  %v197_v44 = vmax.bf16 %v181_v24, %v165_v35  ;;  %v103_v45 = vmax.bf16 %v87_v31, %v71_v37  ;;  %v40_v46 = vld [vmem:[%s871_s0 + $0x20] sm:$0xf] }
  0x17   :  { %v56_v47 = vld [vmem:[%s872_s1 + $0x20] sm:$0xf]  ;;  %v260_v49 = vmax.bf16 %v244_v33, %v228_v38  ;;  %v245_v50 = vld [vmem:[%s878_s7 + $0x14] sm:$0xf]  ;;  %v166_v52 = vmax.bf16 %v150_v36, %v134_v40  ;;  %v151_v53 = vld [vmem:[%s875_s4 + $0x1c] sm:$0xf] }
  0x18   :  { %v88_v48 = vld [vmem:[%s873_s2 + $0x20] sm:$0xf]  ;;  %v277_v51 = vld [vmem:[%s879_s8 + $0x14] sm:$0xf]  ;;  %v72_v54 = vmax.bf16 %v56_v47, %v40_v46  ;;  %308 = vst.msk [vmem:[%s880_s9 + $0xc] sm:$0xf] %vm304_vm0, %v291_v43  ;;  %v229_v55 = vmax.bf16 %v213_v39, %v197_v44  ;;  %v135_v57 = vmax.bf16 %v119_v42, %v103_v45 }
  0x19   :  { %v214_v56 = vld [vmem:[%s877_s6 + $0x18] sm:$0xf]  ;;  %v183_v58 = vld [vmem:[%s876_s5 + $0x1c] sm:$0xf]  ;;  %v120_v59 = vld [vmem:[%s874_s3 + $0x20] sm:$0xf]  ;;  %v292_v60 = vmax.bf16 %v276_v34, %v260_v49  ;;  %v198_v61 = vmax.bf16 %v182_v41, %v166_v52 }
  0x1a   :  { %v104_v62 = vmax.bf16 %v88_v48, %v72_v54  ;;  %v41_v63 = vld [vmem:[%s871_s0 + $0x24] sm:$0xf]  ;;  %v261_v2 = vmax.bf16 %v245_v50, %v229_v55  ;;  %v246_v3 = vld [vmem:[%s878_s7 + $0x18] sm:$0xf]  ;;  %v167_v5 = vmax.bf16 %v151_v53, %v135_v57  ;;  %v152_v6 = vld [vmem:[%s875_s4 + $0x20] sm:$0xf] }
  0x1b   :  { %v57_v0 = vld [vmem:[%s872_s1 + $0x24] sm:$0xf]  ;;  %v278_v4 = vld [vmem:[%s879_s8 + $0x18] sm:$0xf]  ;;  %309 = vst.msk [vmem:[%s880_s9 + $0x10] sm:$0xf] %vm304_vm0, %v292_v60  ;;  %v230_v8 = vmax.bf16 %v214_v56, %v198_v61 }
  0x1c   :  { %v89_v1 = vld [vmem:[%s873_s2 + $0x24] sm:$0xf]  ;;  %v73_v7 = vmax.bf16 %v57_v0, %v41_v63  ;;  %v215_v9 = vld [vmem:[%s877_s6 + $0x1c] sm:$0xf]  ;;  %v136_v10 = vmax.bf16 %v120_v59, %v104_v62  ;;  %v184_v11 = vld [vmem:[%s876_s5 + $0x20] sm:$0xf]  ;;  %v293_v13 = vmax.bf16 %v277_v51, %v261_v2  ;;  %v199_v14 = vmax.bf16 %v183_v58, %v167_v5 }
  0x1d   :  { %v121_v12 = vld [vmem:[%s874_s3 + $0x24] sm:$0xf]  ;;  %v42_v16 = vld [vmem:[%s871_s0 + $0x28] sm:$0xf]  ;;  %v262_v19 = vmax.bf16 %v246_v3, %v230_v8  ;;  %v247_v20 = vld [vmem:[%s878_s7 + $0x1c] sm:$0xf] }
  0x1e   :  { %v105_v15 = vmax.bf16 %v89_v1, %v73_v7  ;;  %v58_v17 = vld [vmem:[%s872_s1 + $0x28] sm:$0xf]  ;;  %v279_v21 = vld [vmem:[%s879_s8 + $0x1c] sm:$0xf]  ;;  %v168_v22 = vmax.bf16 %v152_v6, %v136_v10  ;;  %v153_v23 = vld [vmem:[%s875_s4 + $0x24] sm:$0xf]  ;;  %v231_v25 = vmax.bf16 %v215_v9, %v199_v14 }
  0x1f   :  { %v90_v18 = vld [vmem:[%s873_s2 + $0x28] sm:$0xf]  ;;  %v74_v24 = vmax.bf16 %v58_v17, %v42_v16  ;;  %310 = vst.msk [vmem:[%s880_s9 + $0x14] sm:$0xf] %vm304_vm0, %v293_v13  ;;  %v216_v26 = vld [vmem:[%s877_s6 + $0x20] sm:$0xf]  ;;  %v294_v30 = vmax.bf16 %v278_v4, %v262_v19 }
  0x20   :  { %v137_v27 = vmax.bf16 %v121_v12, %v105_v15  ;;  %v185_v28 = vld [vmem:[%s876_s5 + $0x24] sm:$0xf]  ;;  %v122_v29 = vld [vmem:[%s874_s3 + $0x28] sm:$0xf]  ;;  %v200_v31 = vmax.bf16 %v184_v11, %v168_v22  ;;  %v43_v33 = vld [vmem:[%s871_s0 + $0x2c] sm:$0xf]  ;;  %v263_v36 = vmax.bf16 %v247_v20, %v231_v25 }
  0x21   :  { %v106_v32 = vmax.bf16 %v90_v18, %v74_v24  ;;  %v59_v34 = vld [vmem:[%s872_s1 + $0x2c] sm:$0xf]  ;;  %v248_v37 = vld [vmem:[%s878_s7 + $0x20] sm:$0xf]  ;;  %v154_v40 = vld [vmem:[%s875_s4 + $0x28] sm:$0xf] }
  0x22   :  { %v91_v35 = vld [vmem:[%s873_s2 + $0x2c] sm:$0xf]  ;;  %v280_v38 = vld [vmem:[%s879_s8 + $0x20] sm:$0xf]  ;;  %v169_v39 = vmax.bf16 %v153_v23, %v137_v27  ;;  %v75_v41 = vmax.bf16 %v59_v34, %v43_v33  ;;  %311 = vst.msk [vmem:[%s880_s9 + $0x18] sm:$0xf] %vm304_vm0, %v294_v30  ;;  %v232_v42 = vmax.bf16 %v216_v26, %v200_v31  ;;  %v295_v47 = vmax.bf16 %v279_v21, %v263_v36 }
  0x23   :  { %v217_v43 = vld [vmem:[%s877_s6 + $0x24] sm:$0xf]  ;;  %v138_v44 = vmax.bf16 %v122_v29, %v106_v32  ;;  %v186_v45 = vld [vmem:[%s876_s5 + $0x28] sm:$0xf]  ;;  %v123_v46 = vld [vmem:[%s874_s3 + $0x2c] sm:$0xf] }
  0x24   :  { %v201_v48 = vmax.bf16 %v185_v28, %v169_v39  ;;  %v107_v49 = vmax.bf16 %v91_v35, %v75_v41  ;;  %v44_v50 = vld [vmem:[%s871_s0 + $0x30] sm:$0xf]  ;;  %v264_v53 = vmax.bf16 %v248_v37, %v232_v42  ;;  %v249_v54 = vld [vmem:[%s878_s7 + $0x24] sm:$0xf]  ;;  %v155_v57 = vld [vmem:[%s875_s4 + $0x2c] sm:$0xf] }
  0x25   :  { %v60_v51 = vld [vmem:[%s872_s1 + $0x30] sm:$0xf]  ;;  %v281_v55 = vld [vmem:[%s879_s8 + $0x24] sm:$0xf]  ;;  %v170_v56 = vmax.bf16 %v154_v40, %v138_v44  ;;  %312 = vst.msk [vmem:[%s880_s9 + $0x1c] sm:$0xf] %vm304_vm0, %v295_v47 }
  0x26   :  { %v92_v52 = vld [vmem:[%s873_s2 + $0x30] sm:$0xf]  ;;  %v76_v58 = vmax.bf16 %v60_v51, %v44_v50  ;;  %v233_v59 = vmax.bf16 %v217_v43, %v201_v48  ;;  %v218_v60 = vld [vmem:[%s877_s6 + $0x28] sm:$0xf]  ;;  %v139_v61 = vmax.bf16 %v123_v46, %v107_v49  ;;  %v187_v62 = vld [vmem:[%s876_s5 + $0x2c] sm:$0xf]  ;;  %v296_v0 = vmax.bf16 %v280_v38, %v264_v53 }
  0x27   :  { %v124_v63 = vld [vmem:[%s874_s3 + $0x30] sm:$0xf]  ;;  %v202_v1 = vmax.bf16 %v186_v45, %v170_v56  ;;  %v45_v3 = vld [vmem:[%s871_s0 + $0x34] sm:$0xf]  ;;  %v250_v7 = vld [vmem:[%s878_s7 + $0x28] sm:$0xf] }
  0x28   :  { %v108_v2 = vmax.bf16 %v92_v52, %v76_v58  ;;  %v61_v4 = vld [vmem:[%s872_s1 + $0x34] sm:$0xf]  ;;  %v265_v6 = vmax.bf16 %v249_v54, %v233_v59  ;;  %v282_v8 = vld [vmem:[%s879_s8 + $0x28] sm:$0xf]  ;;  %v171_v9 = vmax.bf16 %v155_v57, %v139_v61  ;;  %v156_v10 = vld [vmem:[%s875_s4 + $0x30] sm:$0xf] }
  0x29   :  { %v93_v5 = vld [vmem:[%s873_s2 + $0x34] sm:$0xf]  ;;  %v77_v11 = vmax.bf16 %v61_v4, %v45_v3  ;;  %313 = vst.msk [vmem:[%s880_s9 + $0x20] sm:$0xf] %vm304_vm0, %v296_v0  ;;  %v234_v12 = vmax.bf16 %v218_v60, %v202_v1  ;;  %v219_v13 = vld [vmem:[%s877_s6 + $0x2c] sm:$0xf] }
  0x2a   :  { %v140_v14 = vmax.bf16 %v124_v63, %v108_v2  ;;  %v188_v15 = vld [vmem:[%s876_s5 + $0x30] sm:$0xf]  ;;  %v125_v16 = vld [vmem:[%s874_s3 + $0x34] sm:$0xf]  ;;  %v297_v17 = vmax.bf16 %v281_v55, %v265_v6  ;;  %v203_v18 = vmax.bf16 %v187_v62, %v171_v9  ;;  %v46_v20 = vld [vmem:[%s871_s0 + $0x38] sm:$0xf] }
  0x2b   :  { %v109_v19 = vmax.bf16 %v93_v5, %v77_v11  ;;  %v62_v21 = vld [vmem:[%s872_s1 + $0x38] sm:$0xf]  ;;  %v266_v23 = vmax.bf16 %v250_v7, %v234_v12  ;;  %v251_v24 = vld [vmem:[%s878_s7 + $0x2c] sm:$0xf]  ;;  %v157_v27 = vld [vmem:[%s875_s4 + $0x34] sm:$0xf] }
  0x2c   :  { %v94_v22 = vld [vmem:[%s873_s2 + $0x38] sm:$0xf]  ;;  %v283_v25 = vld [vmem:[%s879_s8 + $0x2c] sm:$0xf]  ;;  %v172_v26 = vmax.bf16 %v156_v10, %v140_v14  ;;  %v78_v28 = vmax.bf16 %v62_v21, %v46_v20  ;;  %314 = vst.msk [vmem:[%s880_s9 + $0x24] sm:$0xf] %vm304_vm0, %v297_v17  ;;  %v235_v29 = vmax.bf16 %v219_v13, %v203_v18 }
  0x2d   :  { %v220_v30 = vld [vmem:[%s877_s6 + $0x30] sm:$0xf]  ;;  %v141_v31 = vmax.bf16 %v125_v16, %v109_v19  ;;  %v189_v32 = vld [vmem:[%s876_s5 + $0x34] sm:$0xf]  ;;  %v126_v33 = vld [vmem:[%s874_s3 + $0x38] sm:$0xf]  ;;  %v298_v34 = vmax.bf16 %v282_v8, %v266_v23 }
  0x2e   :  { %v204_v35 = vmax.bf16 %v188_v15, %v172_v26  ;;  %v110_v36 = vmax.bf16 %v94_v22, %v78_v28  ;;  %v47_v37 = vld [vmem:[%s871_s0 + $0x3c] sm:$0xf]  ;;  %v267_v40 = vmax.bf16 %v251_v24, %v235_v29  ;;  %v252_v41 = vld [vmem:[%s878_s7 + $0x30] sm:$0xf]  ;;  %v158_v43 = vld [vmem:[%s875_s4 + $0x38] sm:$0xf] }
  0x2f   :  { %v63_v38 = vld [vmem:[%s872_s1 + $0x3c] sm:$0xf]  ;;  %v173_v42 = vmax.bf16 %v157_v27, %v141_v31  ;;  %315 = vst.msk [vmem:[%s880_s9 + $0x28] sm:$0xf] %vm304_vm0, %v298_v34  ;;  %v221_v46 = vld [vmem:[%s877_s6 + $0x34] sm:$0xf] }
  0x30   :  { %v95_v39 = vld [vmem:[%s873_s2 + $0x3c] sm:$0xf]  ;;  %v79_v44 = vmax.bf16 %v63_v38, %v47_v37  ;;  %v236_v45 = vmax.bf16 %v220_v30, %v204_v35  ;;  %v142_v47 = vmax.bf16 %v126_v33, %v110_v36  ;;  %v299_v49 = vmax.bf16 %v283_v25, %v267_v40  ;;  %v284_v50 = vld [vmem:[%s879_s8 + $0x30] sm:$0xf]  ;;  %v190_v52 = vld [vmem:[%s876_s5 + $0x38] sm:$0xf] }
  0x31   :  { %v127_v48 = vld [vmem:[%s874_s3 + $0x3c] sm:$0xf]  ;;  %v205_v51 = vmax.bf16 %v189_v32, %v173_v42  ;;  %v253_v55 = vld [vmem:[%s878_s7 + $0x34] sm:$0xf]  ;;  %v222_v59 = vld [vmem:[%s877_s6 + $0x38] sm:$0xf] }
  0x32   :  { %v111_v53 = vmax.bf16 %v95_v39, %v79_v44  ;;  %v268_v54 = vmax.bf16 %v252_v41, %v236_v45  ;;  %v174_v56 = vmax.bf16 %v158_v43, %v142_v47  ;;  %v159_v57 = vld [vmem:[%s875_s4 + $0x3c] sm:$0xf]  ;;  %316 = vst.msk [vmem:[%s880_s9 + $0x2c] sm:$0xf] %vm304_vm0, %v299_v49  ;;  %v285_v62 = vld [vmem:[%s879_s8 + $0x34] sm:$0xf] }
  0x33   :  { %v237_v58 = vmax.bf16 %v221_v46, %v205_v51  ;;  %v191_v0 = vld [vmem:[%s876_s5 + $0x3c] sm:$0xf]  ;;  %v254_v2 = vld [vmem:[%s878_s7 + $0x38] sm:$0xf] }
  0x34   :  { %v143_v60 = vmax.bf16 %v127_v48, %v111_v53  ;;  %v300_v61 = vmax.bf16 %v284_v50, %v268_v54  ;;  %v206_v63 = vmax.bf16 %v190_v52, %v174_v56  ;;  %v223_v5 = vld [vmem:[%s877_s6 + $0x3c] sm:$0xf]  ;;  %v286_v7 = vld [vmem:[%s879_s8 + $0x38] sm:$0xf] }
  0x35   :  { %v269_v1 = vmax.bf16 %v253_v55, %v237_v58  ;;  %v255_v10 = vld [vmem:[%s878_s7 + $0x3c] sm:$0xf] }
  0x36   :  { %v175_v3 = vmax.bf16 %v159_v57, %v143_v60  ;;  %317 = vst.msk [vmem:[%s880_s9 + $0x30] sm:$0xf] %vm304_vm0, %v300_v61  ;;  %v238_v4 = vmax.bf16 %v222_v59, %v206_v63  ;;  %v287_v13 = vld [vmem:[%s879_s8 + $0x3c] sm:$0xf] }
  0x37   :  { %v301_v6 = vmax.bf16 %v285_v62, %v269_v1 }
  0x38   :  { %v207_v8 = vmax.bf16 %v191_v0, %v175_v3  ;;  %v270_v9 = vmax.bf16 %v254_v2, %v238_v4 }
  0x39   :  { %318 = vst.msk [vmem:[%s880_s9 + $0x34] sm:$0xf] %vm304_vm0, %v301_v6 }
  0x3a   :  { %v239_v11 = vmax.bf16 %v223_v5, %v207_v8  ;;  %v302_v12 = vmax.bf16 %v286_v7, %v270_v9 }
  0x3c   :  { %v271_v14 = vmax.bf16 %v255_v10, %v239_v11  ;;  %319 = vst.msk [vmem:[%s880_s9 + $0x38] sm:$0xf] %vm304_vm0, %v302_v12 }
  0x3e   :  { %v303_v15 = vmax.bf16 %v287_v13, %v271_v14 }
  0x40   :  { %320 = vst.msk [vmem:[%s880_s9 + $0x3c] sm:$0xf] %vm304_vm0, %v303_v15 }

// kernel: resnet_forward.16
= control target key start
LH: loop header
LB: loop body
LE: loop exit
PB: predicated region body
PF: predicated region fallthrough
CT: control target
= control target key end

     0   :  { %s1843_s15 = smov 0   ;;  %s1845_s16 = smov 0   ;;  %s2054_s0 = inlined_call_operand.vmem [shape: bf16[512,256], index: 0, kind: input, shape index: {}]   ;;  %s2055_s1 = inlined_call_operand.vmem [shape: bf16[256,128], index: 1, kind: input, shape index: {}]   ;;  %s2056_s2 = inlined_call_operand.vmem [shape: f32[1,128], index: 2, kind: input, shape index: {}]   ;;  %s2057_s3 = inlined_call_operand.vmem [shape: f32[1,128], index: 3, kind: input, shape index: {}]   ;;  %s2058_s4 = inlined_call_operand.vmem [shape: bf16[512,128], index: 4, kind: output, shape index: {}]  }
   0x1   :  { %s1847_s17 = smov 0  }
   0x2 LB: > { %s33_s18 = sadd.s32 1, %s1812_s16  ;;  %p1360_p0 = scmp.ge.s32.totalorder %s1816_s17, 1  ;;  %s1816_s17 = sphi %s1847_s17, %s14_s17   ;;  %s1812_s16 = sphi %s1845_s16, %s2060_s16   ;;  %s1808_s15 = sphi %s1843_s15, %s2059_s15  }
   0x3   : > { %p35_p1 = scmp.ge.s32.totalorder %s33_s18, 2  ;;  %p224_p2 = scmp.lt.s32.totalorder %s1816_s17, 3 }
   0x5   : > { %s2062_s18 = smov (%p35_p1, %s33_s18), 0  ;;  %p225_p3 = pnand %p1360_p0, %p224_p2 }
   0x6   : > { %v1730_v0 = vld [vmem:[%s2055_s1 + $0x40] sm:$0xff] (!%p225_p3)   ;;  %s1361_s21 = sshll.u32 (!%p225_p3), %s1808_s15, 5  ;;  %v1732_v2 = vld [vmem:[%s2055_s1 + $0x48] sm:$0xff] (!%p225_p3)   ;;  %v1734_v4 = vld [vmem:[%s2055_s1 + $0x50] sm:$0xff] (!%p225_p3)  }
   0x7   : > { %228 = sbr.rel (%p225_p3) target bundleno = 322 (0x142), region = 36  ;;  %v1731_v1 = vld [vmem:[%s2055_s1] sm:$0xff] (!%p225_p3)   ;;  %1578 = vmatprep.subr.bf16.mxu0 (!%p225_p3), %v1730_v0  ;;  %1690 = vmatprep.subr.bf16.mxu1 (!%p225_p3), %v1730_v0  ;;  %v1733_v3 = vld [vmem:[%s2055_s1 + $0x8] sm:$0xff] (!%p225_p3)   ;;  %p274_p4 = scmp.lt.s32.totalorder (!%p225_p3), %s1361_s21, 63  ;;  %v1735_v5 = vld [vmem:[%s2055_s1 + $0x10] sm:$0xff] (!%p225_p3)  }
   0x8   : > { %1579 = vmatpush3.bf16.msra.mxu0 (!%p225_p3), %v1731_v1  ;;  %1698 = vmatpush3.bf16.msra.mxu1 (!%p225_p3), %v1731_v1  ;;  %v1736_v6 = vld [vmem:[%s2055_s1 + $0x58] sm:$0xff] (!%p225_p3)   ;;  %v1738_v8 = vld [vmem:[%s2055_s1 + $0x60] sm:$0xff] (!%p225_p3)   ;;  %v1740_v10 = vld [vmem:[%s2055_s1 + $0x68] sm:$0xff] (!%p225_p3)  }
   0x9   : > { %1580 = vmatprep.subr.bf16.mxu0 (!%p225_p3), %v1732_v2  ;;  %1691 = vmatprep.subr.bf16.mxu1 (!%p225_p3), %v1732_v2  ;;  %v1737_v7 = vld [vmem:[%s2055_s1 + $0x18] sm:$0xff] (!%p225_p3)   ;;  %v1739_v9 = vld [vmem:[%s2055_s1 + $0x20] sm:$0xff] (!%p225_p3)   ;;  %v1741_v13 = vld [vmem:[%s2055_s1 + $0x28] sm:$0xff] (!%p225_p3)  }
   0xa   : > { %v1742_v14 = vld [vmem:[%s2055_s1 + $0x70] sm:$0xff] (!%p225_p3)   ;;  %v1744_v16 = vld [vmem:[%s2055_s1 + $0x78] sm:$0xff] (!%p225_p3)   ;;  %v1952_v51 = vld [vmem:[%s2056_s2] ss:$0 sm:$0xff] (!%p225_p3) }
   0xb   : > { %v1743_v15 = vld [vmem:[%s2055_s1 + $0x30] sm:$0xff] (!%p225_p3)   ;;  %v1745_v17 = vld [vmem:[%s2055_s1 + $0x38] sm:$0xff] (!%p225_p3)   ;;  %v1957_v57 = vld [vmem:[%s2057_s3] ss:$0 sm:$0xff] (!%p225_p3) }
   0xc   : > { %1581 = vmatpush3.bf16.msra.mxu0 (!%p225_p3), %v1733_v3  ;;  %1699 = vmatpush3.bf16.msra.mxu1 (!%p225_p3), %v1733_v3 }
   0xd   : > { %1582 = vmatprep.subr.bf16.mxu0 (!%p225_p3), %v1734_v4  ;;  %1692 = vmatprep.subr.bf16.mxu1 (!%p225_p3), %v1734_v4 }
   0xe   : > { %s2064_s21 = smov (!%p274_p4, %s1361_s21), 63 }
   0xf   : > { %s1450_s10 = sshll.u32 %s2064_s21, 3  ;;  %s1365_s12 = sshll.u32 %s2064_s21, 2 }
  0x10   : > { %1583 = vmatpush3.bf16.msra.mxu0 %v1735_v5  ;;  %1700 = vmatpush3.bf16.msra.mxu1 %v1735_v5  ;;  %s1894_s15 = scalar_lea.vmem %s2054_s0, %s1450_s10  ;;  %s1971_s21 = scalar_lea.vmem %s2058_s4, %s1365_s12 }
  0x11   : > { %1584 = vmatprep.subr.bf16.mxu0 %v1736_v6  ;;  %1693 = vmatprep.subr.bf16.mxu1 %v1736_v6  ;;  %v1748_v11 = vld [vmem:[%s1894_s15 + $0x4] ss:$8 sps:$4 sm:$0xff]   ;;  %v1746_v18 = vld [vmem:[%s1894_s15] ss:$8 sps:$4 sm:$0xff]   ;;  %v1752_v20 = vld [vmem:[%s1894_s15 + $0x14] ss:$8 sps:$4 sm:$0xff]  }
  0x12   : > { %v1751_v12 = vld [vmem:[%s1894_s15 + $0x84] ss:$8 sps:$4 sm:$0xff]   ;;  %729 = vmatprep.mubr.bf16.mxu0 %v1748_v11  ;;  %v1749_v19 = vld [vmem:[%s1894_s15 + $0x80] ss:$8 sps:$4 sm:$0xff]   ;;  %v1754_v21 = vld [vmem:[%s1894_s15 + $0x94] ss:$8 sps:$4 sm:$0xff]  }
  0x13   : > { %793 = vmatprep.mubr.bf16.mxu1 %v1751_v12  ;;  %v1756_v22 = vld [vmem:[%s1894_s15 + $0x10] ss:$8 sps:$4 sm:$0xff]   ;;  %v1758_v24 = vld [vmem:[%s1894_s15 + $0x24] ss:$8 sps:$4 sm:$0xff]   ;;  %v1762_v26 = vld [vmem:[%s1894_s15 + $0x20] ss:$8 sps:$4 sm:$0xff]  }
  0x14   : > { %1585 = vmatpush3.bf16.msra.mxu0 %v1737_v7  ;;  %1701 = vmatpush3.bf16.msra.mxu1 %v1737_v7  ;;  %v1757_v23 = vld [vmem:[%s1894_s15 + $0x90] ss:$8 sps:$4 sm:$0xff]   ;;  %v1760_v25 = vld [vmem:[%s1894_s15 + $0xa4] ss:$8 sps:$4 sm:$0xff]   ;;  %v1763_v27 = vld [vmem:[%s1894_s15 + $0xa0] ss:$8 sps:$4 sm:$0xff]  }
  0x15   : > { %1586 = vmatprep.subr.bf16.mxu0 %v1738_v8  ;;  %1694 = vmatprep.subr.bf16.mxu1 %v1738_v8  ;;  %v1764_v28 = vld [vmem:[%s1894_s15 + $0x34] ss:$8 sps:$4 sm:$0xff]   ;;  %v1768_v30 = vld [vmem:[%s1894_s15 + $0x30] ss:$8 sps:$4 sm:$0xff]   ;;  %v1770_v32 = vld [vmem:[%s1894_s15 + $0x44] ss:$8 sps:$4 sm:$0xff]  }
  0x16   : > { %v1766_v29 = vld [vmem:[%s1894_s15 + $0xb4] ss:$8 sps:$4 sm:$0xff]   ;;  %v1769_v31 = vld [vmem:[%s1894_s15 + $0xb0] ss:$8 sps:$4 sm:$0xff]   ;;  %v1772_v33 = vld [vmem:[%s1894_s15 + $0xc4] ss:$8 sps:$4 sm:$0xff]  }
  0x17   : > { %v1774_v34 = vld [vmem:[%s1894_s15 + $0x40] ss:$8 sps:$4 sm:$0xff]   ;;  %v1776_v36 = vld [vmem:[%s1894_s15 + $0x54] ss:$8 sps:$4 sm:$0xff]   ;;  %v1780_v38 = vld [vmem:[%s1894_s15 + $0x50] ss:$8 sps:$4 sm:$0xff]  }
  0x18   : > { %1587 = vmatpush3.bf16.msra.mxu0 %v1739_v9  ;;  %1702 = vmatpush3.bf16.msra.mxu1 %v1739_v9  ;;  %v1775_v35 = vld [vmem:[%s1894_s15 + $0xc0] ss:$8 sps:$4 sm:$0xff]   ;;  %v1778_v37 = vld [vmem:[%s1894_s15 + $0xd4] ss:$8 sps:$4 sm:$0xff]   ;;  %v1781_v39 = vld [vmem:[%s1894_s15 + $0xd0] ss:$8 sps:$4 sm:$0xff]  }
  0x19   : > { %1588 = vmatprep.subr.bf16.mxu0 %v1740_v10  ;;  %1695 = vmatprep.subr.bf16.mxu1 %v1740_v10  ;;  %v1782_v40 = vld [vmem:[%s1894_s15 + $0x64] ss:$8 sps:$4 sm:$0xff]   ;;  %v1786_v42 = vld [vmem:[%s1894_s15 + $0x60] ss:$8 sps:$4 sm:$0xff]   ;;  %v1788_v44 = vld [vmem:[%s1894_s15 + $0x74] ss:$8 sps:$4 sm:$0xff]  }
  0x1a   : > { %v1784_v41 = vld [vmem:[%s1894_s15 + $0xe4] ss:$8 sps:$4 sm:$0xff]   ;;  %v1787_v43 = vld [vmem:[%s1894_s15 + $0xe0] ss:$8 sps:$4 sm:$0xff]   ;;  %v1790_v45 = vld [vmem:[%s1894_s15 + $0xf4] ss:$8 sps:$4 sm:$0xff]  }
  0x1b   : > { %v1792_v46 = vld [vmem:[%s1894_s15 + $0x70] ss:$8 sps:$4 sm:$0xff]  }
  0x1c   : > { %1589 = vmatpush3.bf16.msra.mxu0 %v1741_v13  ;;  %1703 = vmatpush3.bf16.msra.mxu1 %v1741_v13  ;;  %v1793_v47 = vld [vmem:[%s1894_s15 + $0xf0] ss:$8 sps:$4 sm:$0xff]  }
  0x1d   : > { %1590 = vmatprep.subr.bf16.mxu0 %v1742_v14  ;;  %1696 = vmatprep.subr.bf16.mxu1 %v1742_v14 }
  0x20   : > { %1591 = vmatpush3.bf16.msra.mxu0 %v1743_v15  ;;  %1704 = vmatpush3.bf16.msra.mxu1 %v1743_v15 }
  0x21   : > { %1592 = vmatprep.subr.bf16.mxu0 %v1744_v16  ;;  %1697 = vmatprep.subr.bf16.mxu1 %v1744_v16 }
  0x24   : > { %1593 = vmatpush3.bf16.msra.mxu0 %v1745_v17  ;;  %1705 = vmatpush3.bf16.msra.mxu1 %v1745_v17 }
  0x27   : > { %730 = vmatmul.mubr.bf16.vlgmr.msra.gmra.mrb[0].mxu0 %v1746_v18  ;;  %794 = vmatmul.mubr.bf16.vlgmr.msra.gmra.mrb[0].mxu1 %v1749_v19 }
  0x28   : > { %737 = vmatprep.mubr.bf16.mxu0 %v1752_v20  ;;  %801 = vmatprep.mubr.bf16.mxu1 %v1754_v21 }
  0x2f   : > { %738 = vmatmul.mubr.bf16.gmra.mrb[4].mxu0 %v1756_v22  ;;  %802 = vmatmul.mubr.bf16.gmra.mrb[4].mxu1 %v1757_v23 }
  0x30   : > { %745 = vmatprep.mubr.bf16.mxu0 %v1758_v24  ;;  %809 = vmatprep.mubr.bf16.mxu1 %v1760_v25 }
  0x37   : > { %746 = vmatmul.mubr.bf16.gmra.mrb[8].mxu0 %v1762_v26  ;;  %810 = vmatmul.mubr.bf16.gmra.mrb[8].mxu1 %v1763_v27 }
  0x38   : > { %753 = vmatprep.mubr.bf16.mxu0 %v1764_v28  ;;  %817 = vmatprep.mubr.bf16.mxu1 %v1766_v29 }
  0x3f   : > { %754 = vmatmul.mubr.bf16.gmra.mrb[12].mxu0 %v1768_v30  ;;  %818 = vmatmul.mubr.bf16.gmra.mrb[12].mxu1 %v1769_v31 }
  0x40   : > { %761 = vmatprep.mubr.bf16.mxu0 %v1770_v32  ;;  %825 = vmatprep.mubr.bf16.mxu1 %v1772_v33 }
  0x47   : > { %762 = vmatmul.mubr.bf16.gmra.mrb[16].mxu0 %v1774_v34  ;;  %826 = vmatmul.mubr.bf16.gmra.mrb[16].mxu1 %v1775_v35 }
  0x48   : > { %769 = vmatprep.mubr.bf16.mxu0 %v1776_v36  ;;  %833 = vmatprep.mubr.bf16.mxu1 %v1778_v37 }
  0x4f   : > { %770 = vmatmul.mubr.bf16.gmra.mrb[20].mxu0 %v1780_v38  ;;  %834 = vmatmul.mubr.bf16.gmra.mrb[20].mxu1 %v1781_v39 }
  0x50   : > { %777 = vmatprep.mubr.bf16.mxu0 %v1782_v40  ;;  %841 = vmatprep.mubr.bf16.mxu1 %v1784_v41 }
  0x57   : > { %778 = vmatmul.mubr.bf16.gmra.mrb[24].mxu0 %v1786_v42  ;;  %842 = vmatmul.mubr.bf16.gmra.mrb[24].mxu1 %v1787_v43 }
  0x58   : > { %785 = vmatprep.mubr.bf16.mxu0 %v1788_v44  ;;  %849 = vmatprep.mubr.bf16.mxu1 %v1790_v45 }
  0x5f   : > { %786 = vmatmul.mubr.bf16.gmra.mrb[28].mxu0 %v1792_v46  ;;  %850 = vmatmul.mubr.bf16.gmra.mrb[28].mxu1 %v1793_v47 }
  0xfa   : > { %v1594_v48 = vpop.f32.mrb[0].mxu0  ;;  %v1642_v49 = vpop.f32.mrb[0].mxu1 }
  0xfb   : > { %v1595_v50 = vpop.f32.mrb[1].mxu0  ;;  %v1643_v52 = vpop.f32.mrb[1].mxu1 }
  0xfc   : > { %v1596_v53 = vadd.f32 %v1595_v50, %v1594_v48  ;;  %v1644_v54 = vadd.f32 %v1643_v52, %v1642_v49  ;;  %v1597_v55 = vpop.f32.mrb[2].mxu0  ;;  %v1645_v56 = vpop.f32.mrb[2].mxu1 }
  0xfd   : > { %v1598_v58 = vpop.f32.mrb[3].mxu0  ;;  %v1646_v59 = vpop.f32.mrb[3].mxu1 }
  0xfe   : > { %v964_v60 = vmul.f32 %v1596_v53, %v1952_v51  ;;  %v980_v61 = vmul.f32 %v1644_v54, %v1952_v51  ;;  %v1599_v62 = vadd.f32 %v1598_v58, %v1597_v55  ;;  %v1647_v63 = vadd.f32 %v1646_v59, %v1645_v56 }
 0x100   : > { %v1003_v0 = vadd.f32 %v1957_v57, %v964_v60  ;;  %v1019_v1 = vadd.f32 %v1957_v57, %v980_v61  ;;  %v965_v2 = vmul.f32 %v1599_v62, %v1952_v51  ;;  %v981_v3 = vmul.f32 %v1647_v63, %v1952_v51 }
 0x102   : > { %v1004_v4 = vadd.f32 %v1957_v57, %v965_v2  ;;  %v1020_v5 = vadd.f32 %v1957_v57, %v981_v3  ;;  %v1600_v6 = vpop.f32.mrb[4].mxu0  ;;  %v1648_v7 = vpop.f32.mrb[4].mxu1  ;;  %v1035_v8 = vmax.f32 %v1003_v0, 0.0  ;;  %v1051_v9 = vmax.f32 %v1019_v1, 0.0 }
 0x103   : > { %v1601_v10 = vpop.f32.mrb[5].mxu0  ;;  %v1649_v11 = vpop.f32.mrb[5].mxu1 }
 0x104   : > { %v1036_v12 = vmax.f32 %v1004_v4, 0.0  ;;  %v1052_v13 = vmax.f32 %v1020_v5, 0.0  ;;  %v1602_v14 = vadd.f32 %v1601_v10, %v1600_v6  ;;  %v1650_v15 = vadd.f32 %v1649_v11, %v1648_v7  ;;  %v1603_v16 = vpop.f32.mrb[6].mxu0  ;;  %v1651_v17 = vpop.f32.mrb[6].mxu1 }
 0x105   : > { %v1604_v18 = vpop.f32.mrb[7].mxu0  ;;  %v1652_v19 = vpop.f32.mrb[7].mxu1 }
 0x106   : > { %v1486_v20 = vpack.c.bf16 %v1036_v12, %v1035_v8  ;;  %v1526_v21 = vpack.c.bf16 %v1052_v13, %v1051_v9  ;;  %v966_v22 = vmul.f32 %v1602_v14, %v1952_v51  ;;  %v982_v23 = vmul.f32 %v1650_v15, %v1952_v51 }
 0x107   : > { %v1605_v24 = vadd.f32 %v1604_v18, %v1603_v16  ;;  %v1653_v25 = vadd.f32 %v1652_v19, %v1651_v17 }
 0x108   : > { %1487 = vst [vmem:[%s1971_s21] sm:$0xff] %v1486_v20   ;;  %1570 = vst [vmem:[%s1971_s21 + $0x40] sm:$0xff] %v1526_v21   ;;  %v1005_v26 = vadd.f32 %v1957_v57, %v966_v22  ;;  %v1021_v27 = vadd.f32 %v1957_v57, %v982_v23 }
 0x109   : > { %v967_v28 = vmul.f32 %v1605_v24, %v1952_v51  ;;  %v983_v29 = vmul.f32 %v1653_v25, %v1952_v51 }
 0x10a   : > { %v1606_v30 = vpop.f32.mrb[8].mxu0  ;;  %v1654_v31 = vpop.f32.mrb[8].mxu1  ;;  %v1037_v40 = vmax.f32 %v1005_v26, 0.0  ;;  %v1053_v41 = vmax.f32 %v1021_v27, 0.0 }
 0x10b   : > { %v1006_v32 = vadd.f32 %v1957_v57, %v967_v28  ;;  %v1022_v33 = vadd.f32 %v1957_v57, %v983_v29  ;;  %v1607_v34 = vpop.f32.mrb[9].mxu0  ;;  %v1655_v35 = vpop.f32.mrb[9].mxu1 }
 0x10c   : > { %v1608_v36 = vadd.f32 %v1607_v34, %v1606_v30  ;;  %v1656_v37 = vadd.f32 %v1655_v35, %v1654_v31  ;;  %v1609_v38 = vpop.f32.mrb[10].mxu0  ;;  %v1657_v39 = vpop.f32.mrb[10].mxu1 }
 0x10d   : > { %v1038_v42 = vmax.f32 %v1006_v32, 0.0  ;;  %v1054_v43 = vmax.f32 %v1022_v33, 0.0  ;;  %v1610_v44 = vpop.f32.mrb[11].mxu0  ;;  %v1658_v45 = vpop.f32.mrb[11].mxu1 }
 0x10e   : > { %v968_v46 = vmul.f32 %v1608_v36, %v1952_v51  ;;  %v984_v47 = vmul.f32 %v1656_v37, %v1952_v51  ;;  %v1611_v48 = vadd.f32 %v1610_v44, %v1609_v38  ;;  %v1659_v49 = vadd.f32 %v1658_v45, %v1657_v39 }
 0x10f   : > { %v1491_v50 = vpack.c.bf16 %v1038_v42, %v1037_v40  ;;  %v1531_v52 = vpack.c.bf16 %v1054_v43, %v1053_v41 }
 0x110   : > { %v1007_v53 = vadd.f32 %v1957_v57, %v968_v46  ;;  %v1023_v54 = vadd.f32 %v1957_v57, %v984_v47  ;;  %v969_v55 = vmul.f32 %v1611_v48, %v1952_v51  ;;  %v985_v56 = vmul.f32 %v1659_v49, %v1952_v51 }
 0x111   : > { %1563 = vst [vmem:[%s1971_s21 + $0x8] sm:$0xff] %v1491_v50   ;;  %1571 = vst [vmem:[%s1971_s21 + $0x48] sm:$0xff] %v1531_v52  }
 0x112   : > { %v1008_v58 = vadd.f32 %v1957_v57, %v969_v55  ;;  %v1024_v59 = vadd.f32 %v1957_v57, %v985_v56  ;;  %v1612_v60 = vpop.f32.mrb[12].mxu0  ;;  %v1660_v61 = vpop.f32.mrb[12].mxu1  ;;  %v1039_v62 = vmax.f32 %v1007_v53, 0.0  ;;  %v1055_v63 = vmax.f32 %v1023_v54, 0.0 }
 0x113   : > { %v1613_v0 = vpop.f32.mrb[13].mxu0  ;;  %v1661_v1 = vpop.f32.mrb[13].mxu1 }
 0x114   : > { %v1040_v2 = vmax.f32 %v1008_v58, 0.0  ;;  %v1056_v3 = vmax.f32 %v1024_v59, 0.0  ;;  %v1614_v4 = vadd.f32 %v1613_v0, %v1612_v60  ;;  %v1662_v5 = vadd.f32 %v1661_v1, %v1660_v61  ;;  %v1615_v6 = vpop.f32.mrb[14].mxu0  ;;  %v1663_v7 = vpop.f32.mrb[14].mxu1 }
 0x115   : > { %v1616_v8 = vpop.f32.mrb[15].mxu0  ;;  %v1664_v9 = vpop.f32.mrb[15].mxu1 }
 0x116   : > { %v1496_v10 = vpack.c.bf16 %v1040_v2, %v1039_v62  ;;  %v1536_v11 = vpack.c.bf16 %v1056_v3, %v1055_v63  ;;  %v970_v12 = vmul.f32 %v1614_v4, %v1952_v51  ;;  %v986_v13 = vmul.f32 %v1662_v5, %v1952_v51 }
 0x117   : > { %v1617_v14 = vadd.f32 %v1616_v8, %v1615_v6  ;;  %v1665_v15 = vadd.f32 %v1664_v9, %v1663_v7 }
 0x118   : > { %1564 = vst [vmem:[%s1971_s21 + $0x10] sm:$0xff] %v1496_v10   ;;  %1572 = vst [vmem:[%s1971_s21 + $0x50] sm:$0xff] %v1536_v11   ;;  %v1009_v16 = vadd.f32 %v1957_v57, %v970_v12  ;;  %v1025_v17 = vadd.f32 %v1957_v57, %v986_v13 }
 0x119   : > { %v971_v18 = vmul.f32 %v1617_v14, %v1952_v51  ;;  %v987_v19 = vmul.f32 %v1665_v15, %v1952_v51 }
 0x11a   : > { %v1618_v20 = vpop.f32.mrb[16].mxu0  ;;  %v1666_v21 = vpop.f32.mrb[16].mxu1  ;;  %v1041_v30 = vmax.f32 %v1009_v16, 0.0  ;;  %v1057_v31 = vmax.f32 %v1025_v17, 0.0 }
 0x11b   : > { %v1010_v22 = vadd.f32 %v1957_v57, %v971_v18  ;;  %v1026_v23 = vadd.f32 %v1957_v57, %v987_v19  ;;  %v1619_v24 = vpop.f32.mrb[17].mxu0  ;;  %v1667_v25 = vpop.f32.mrb[17].mxu1 }
 0x11c   : > { %v1620_v26 = vadd.f32 %v1619_v24, %v1618_v20  ;;  %v1668_v27 = vadd.f32 %v1667_v25, %v1666_v21  ;;  %v1621_v28 = vpop.f32.mrb[18].mxu0  ;;  %v1669_v29 = vpop.f32.mrb[18].mxu1 }
 0x11d   : > { %v1042_v32 = vmax.f32 %v1010_v22, 0.0  ;;  %v1058_v33 = vmax.f32 %v1026_v23, 0.0  ;;  %v1622_v34 = vpop.f32.mrb[19].mxu0  ;;  %v1670_v35 = vpop.f32.mrb[19].mxu1 }
 0x11e   : > { %v972_v36 = vmul.f32 %v1620_v26, %v1952_v51  ;;  %v988_v37 = vmul.f32 %v1668_v27, %v1952_v51  ;;  %v1623_v38 = vadd.f32 %v1622_v34, %v1621_v28  ;;  %v1671_v39 = vadd.f32 %v1670_v35, %v1669_v29 }
 0x11f   : > { %v1501_v40 = vpack.c.bf16 %v1042_v32, %v1041_v30  ;;  %v1541_v41 = vpack.c.bf16 %v1058_v33, %v1057_v31 }
 0x120   : > { %v1011_v42 = vadd.f32 %v1957_v57, %v972_v36  ;;  %v1027_v43 = vadd.f32 %v1957_v57, %v988_v37  ;;  %v973_v44 = vmul.f32 %v1623_v38, %v1952_v51  ;;  %v989_v45 = vmul.f32 %v1671_v39, %v1952_v51 }
 0x121   : > { %1565 = vst [vmem:[%s1971_s21 + $0x18] sm:$0xff] %v1501_v40   ;;  %1573 = vst [vmem:[%s1971_s21 + $0x58] sm:$0xff] %v1541_v41  }
 0x122   : > { %v1012_v46 = vadd.f32 %v1957_v57, %v973_v44  ;;  %v1028_v47 = vadd.f32 %v1957_v57, %v989_v45  ;;  %v1624_v48 = vpop.f32.mrb[20].mxu0  ;;  %v1672_v49 = vpop.f32.mrb[20].mxu1  ;;  %v1043_v50 = vmax.f32 %v1011_v42, 0.0  ;;  %v1059_v52 = vmax.f32 %v1027_v43, 0.0 }
 0x123   : > { %v1625_v53 = vpop.f32.mrb[21].mxu0  ;;  %v1673_v54 = vpop.f32.mrb[21].mxu1 }
 0x124   : > { %v1044_v55 = vmax.f32 %v1012_v46, 0.0  ;;  %v1060_v56 = vmax.f32 %v1028_v47, 0.0  ;;  %v1626_v58 = vadd.f32 %v1625_v53, %v1624_v48  ;;  %v1674_v59 = vadd.f32 %v1673_v54, %v1672_v49  ;;  %v1627_v60 = vpop.f32.mrb[22].mxu0  ;;  %v1675_v61 = vpop.f32.mrb[22].mxu1 }
 0x125   : > { %v1628_v62 = vpop.f32.mrb[23].mxu0  ;;  %v1676_v63 = vpop.f32.mrb[23].mxu1 }
 0x126   : > { %v1506_v0 = vpack.c.bf16 %v1044_v55, %v1043_v50  ;;  %v1546_v1 = vpack.c.bf16 %v1060_v56, %v1059_v52  ;;  %v974_v2 = vmul.f32 %v1626_v58, %v1952_v51  ;;  %v990_v3 = vmul.f32 %v1674_v59, %v1952_v51 }
 0x127   : > { %v1629_v4 = vadd.f32 %v1628_v62, %v1627_v60  ;;  %v1677_v5 = vadd.f32 %v1676_v63, %v1675_v61 }
 0x128   : > { %1566 = vst [vmem:[%s1971_s21 + $0x20] sm:$0xff] %v1506_v0   ;;  %1574 = vst [vmem:[%s1971_s21 + $0x60] sm:$0xff] %v1546_v1   ;;  %v1013_v6 = vadd.f32 %v1957_v57, %v974_v2  ;;  %v1029_v7 = vadd.f32 %v1957_v57, %v990_v3 }
 0x129   : > { %v975_v8 = vmul.f32 %v1629_v4, %v1952_v51  ;;  %v991_v9 = vmul.f32 %v1677_v5, %v1952_v51 }
 0x12a   : > { %v1630_v10 = vpop.f32.mrb[24].mxu0  ;;  %v1678_v11 = vpop.f32.mrb[24].mxu1  ;;  %v1045_v20 = vmax.f32 %v1013_v6, 0.0  ;;  %v1061_v21 = vmax.f32 %v1029_v7, 0.0 }
 0x12b   : > { %v1014_v12 = vadd.f32 %v1957_v57, %v975_v8  ;;  %v1030_v13 = vadd.f32 %v1957_v57, %v991_v9  ;;  %v1631_v14 = vpop.f32.mrb[25].mxu0  ;;  %v1679_v15 = vpop.f32.mrb[25].mxu1 }
 0x12c   : > { %v1632_v16 = vadd.f32 %v1631_v14, %v1630_v10  ;;  %v1680_v17 = vadd.f32 %v1679_v15, %v1678_v11  ;;  %v1633_v18 = vpop.f32.mrb[26].mxu0  ;;  %v1681_v19 = vpop.f32.mrb[26].mxu1 }
 0x12d   : > { %v1046_v22 = vmax.f32 %v1014_v12, 0.0  ;;  %v1062_v23 = vmax.f32 %v1030_v13, 0.0  ;;  %v1634_v24 = vpop.f32.mrb[27].mxu0  ;;  %v1682_v25 = vpop.f32.mrb[27].mxu1 }
 0x12e   : > { %v976_v26 = vmul.f32 %v1632_v16, %v1952_v51  ;;  %v992_v27 = vmul.f32 %v1680_v17, %v1952_v51  ;;  %v1635_v28 = vadd.f32 %v1634_v24, %v1633_v18  ;;  %v1683_v29 = vadd.f32 %v1682_v25, %v1681_v19 }
 0x12f   : > { %v1511_v30 = vpack.c.bf16 %v1046_v22, %v1045_v20  ;;  %v1551_v31 = vpack.c.bf16 %v1062_v23, %v1061_v21 }
 0x130   : > { %v1015_v32 = vadd.f32 %v1957_v57, %v976_v26  ;;  %v1031_v33 = vadd.f32 %v1957_v57, %v992_v27  ;;  %v977_v34 = vmul.f32 %v1635_v28, %v1952_v51  ;;  %v993_v35 = vmul.f32 %v1683_v29, %v1952_v51 }
 0x131   : > { %1567 = vst [vmem:[%s1971_s21 + $0x28] sm:$0xff] %v1511_v30   ;;  %1575 = vst [vmem:[%s1971_s21 + $0x68] sm:$0xff] %v1551_v31  }
 0x132   : > { %v1016_v36 = vadd.f32 %v1957_v57, %v977_v34  ;;  %v1032_v37 = vadd.f32 %v1957_v57, %v993_v35  ;;  %v1636_v38 = vpop.f32.mrb[28].mxu0  ;;  %v1684_v39 = vpop.f32.mrb[28].mxu1  ;;  %v1047_v40 = vmax.f32 %v1015_v32, 0.0  ;;  %v1063_v41 = vmax.f32 %v1031_v33, 0.0 }
 0x133   : > { %v1637_v42 = vpop.f32.mrb[29].mxu0  ;;  %v1685_v43 = vpop.f32.mrb[29].mxu1 }
 0x134   : > { %v1048_v44 = vmax.f32 %v1016_v36, 0.0  ;;  %v1064_v45 = vmax.f32 %v1032_v37, 0.0  ;;  %v1638_v46 = vadd.f32 %v1637_v42, %v1636_v38  ;;  %v1686_v47 = vadd.f32 %v1685_v43, %v1684_v39  ;;  %v1639_v48 = vpop.f32.mrb[30].mxu0  ;;  %v1687_v49 = vpop.f32.mrb[30].mxu1 }
 0x135   : > { %v1640_v50 = vpop.f32.mrb[31].mxu0  ;;  %v1688_v52 = vpop.f32.mrb[31].mxu1 }
 0x136   : > { %v1516_v53 = vpack.c.bf16 %v1048_v44, %v1047_v40  ;;  %v1556_v54 = vpack.c.bf16 %v1064_v45, %v1063_v41  ;;  %v978_v55 = vmul.f32 %v1638_v46, %v1952_v51  ;;  %v994_v56 = vmul.f32 %v1686_v47, %v1952_v51 }
 0x137   : > { %v1641_v58 = vadd.f32 %v1640_v50, %v1639_v48  ;;  %v1689_v59 = vadd.f32 %v1688_v52, %v1687_v49 }
 0x138   : > { %1568 = vst [vmem:[%s1971_s21 + $0x30] sm:$0xff] %v1516_v53   ;;  %1576 = vst [vmem:[%s1971_s21 + $0x70] sm:$0xff] %v1556_v54   ;;  %v1017_v60 = vadd.f32 %v1957_v57, %v978_v55  ;;  %v1033_v61 = vadd.f32 %v1957_v57, %v994_v56 }
 0x139   : > { %v979_v62 = vmul.f32 %v1641_v58, %v1952_v51  ;;  %v995_v63 = vmul.f32 %v1689_v59, %v1952_v51 }
 0x13a   : > { %v1049_v2 = vmax.f32 %v1017_v60, 0.0  ;;  %v1065_v3 = vmax.f32 %v1033_v61, 0.0 }
 0x13b   : > { %v1018_v0 = vadd.f32 %v1957_v57, %v979_v62  ;;  %v1034_v1 = vadd.f32 %v1957_v57, %v995_v63 }
 0x13d   : > { %v1050_v4 = vmax.f32 %v1018_v0, 0.0  ;;  %v1066_v5 = vmax.f32 %v1034_v1, 0.0 }
 0x13f   : > { %v1521_v6 = vpack.c.bf16 %v1050_v4, %v1049_v2  ;;  %v1561_v7 = vpack.c.bf16 %v1066_v5, %v1065_v3 }
 0x141   : > { %1569 = vst [vmem:[%s1971_s21 + $0x38] sm:$0xff] %v1521_v6   ;;  %1577 = vst [vmem:[%s1971_s21 + $0x78] sm:$0xff] %v1561_v7  }
 0x142 PF: > { %s14_s17 = sadd.s32 1, %s1816_s17   ;;  %s2059_s15 = smov %s1812_s16 }
 0x143   : > { %p11_p5 = scmp.ge.s32.totalorder %s14_s17, 4   ;;  %s2060_s16 = smov %s2062_s18 }
 0x145   :  { %13 = sbr.rel (!%p11_p5) target bundleno = 2 (0x2), region = 83 }

// kernel: resnet_forward.18
= control target key start
LH: loop header
LB: loop body
LE: loop exit
PB: predicated region body
PF: predicated region fallthrough
CT: control target
= control target key end

     0   :  { %s1273_s15 = smov 0   ;;  %s1275_s16 = smov 0   ;;  %s1444_s0 = inlined_call_operand.vmem [shape: bf16[128,640], index: 0, kind: input, shape index: {}]   ;;  %s1445_s1 = inlined_call_operand.vmem [shape: bf16[640,128], index: 1, kind: input, shape index: {}]   ;;  %s1446_s2 = inlined_call_operand.vmem [shape: f32[1,128], index: 2, kind: input, shape index: {}]   ;;  %s1447_s3 = inlined_call_operand.vmem [shape: f32[1,128], index: 3, kind: input, shape index: {}]   ;;  %s1448_s4 = inlined_call_operand.vmem [shape: bf16[128,128], index: 4, kind: output, shape index: {}]  }
   0x1   :  { %s1277_s17 = smov 0   ;;  %s1279_s18 = smov 0  }
   0x2   :  { %s1281_s19 = smov 0  }
   0x3 LB: > { %s26_s20 = sadd.s32 1, %s1241_s18  ;;  %p49_p1 = scmp.ne.s32.totalorder %s1233_s16, %s1229_s15  ;;  %s1245_s19 = sphi %s1281_s19, %s14_s19   ;;  %s1241_s18 = sphi %s1279_s18, %s1452_s18   ;;  %s1237_s17 = sphi %s1277_s17, %s1451_s17   ;;  %s1233_s16 = sphi %s1275_s16, %s1450_s16   ;;  %s1229_s15 = sphi %s1273_s15, %s1449_s15  }
   0x4   : > { %p27_p0 = scmp.ge.s32.totalorder %s26_s20, 5  ;;  %p50_p2 = scmp.eq.s32.totalorder %s1245_s19, 0 }
   0x5   : > { %s42_s22 = sadd.s32 1, %s1233_s16  ;;  %p976_p5 = scmp.ge.s32.totalorder %s1245_s19, 5 }
   0x6   : > { %s1454_s20 = smov (%p27_p0, %s26_s20), 0  ;;  %p51_p3 = por %p50_p2, %p49_p1 }
   0x7   : > { %s38_s21 = ssub.s32 %s1241_s18, %s1454_s20  ;;  %195 = sbr.rel (%p976_p5) target bundleno = 28 (0x1c), region = 24 }
   0x8   : > { %p40_p4 = scmp.eq.s32.totalorder %s38_s21, 0 }
   0xa   : > { %s1308_s23 = scalar_select %p40_p4, %s1233_s16, %s42_s22  }
   0xe   : > { %198 = sbr.rel (!%p51_p3) target bundleno = 28 (0x1c), region = 28  ;;  %s200_s24 = sand.u32 (%p51_p3), 1, %s1233_s16  }
   0xf   : > { %s978_s25 = sshll.u32 (%p51_p3), %s1241_s18, 2  ;;  %s977_s26 = sshll.u32 (%p51_p3), %s200_s24, 6 }
  0x10   : > { %s1316_s29 = scalar_lea.vmem (%p51_p3), %s1444_s0, %s978_s25  ;;  %s202_s30 = scalar_lea.vmem (%p51_p3), [#allocation3], %s977_s26 }
  0x11   : > { %v223_v0 = vld [vmem:[%s1316_s29] sm:$0xf] (%p51_p3)  ;;  %v225_v1 = vld [vmem:[%s1316_s29 + $0x14] sm:$0xf] (%p51_p3)  ;;  %v227_v2 = vld [vmem:[%s1316_s29 + $0x28] sm:$0xf] (%p51_p3) }
  0x12   : > { %224 = vst [vmem:[%s202_s30] sm:$0xf] (%p51_p3), %v223_v0  ;;  %226 = vst [vmem:[%s202_s30 + $0x4] sm:$0xf] (%p51_p3), %v225_v1  ;;  %v229_v3 = vld [vmem:[%s1316_s29 + $0x3c] sm:$0xf] (%p51_p3) }
  0x13   : > { %v231_v4 = vld [vmem:[%s1316_s29 + $0x50] sm:$0xf] (%p51_p3)  ;;  %228 = vst [vmem:[%s202_s30 + $0x8] sm:$0xf] (%p51_p3), %v227_v2  ;;  %230 = vst [vmem:[%s202_s30 + $0xc] sm:$0xf] (%p51_p3), %v229_v3 }
  0x14   : > { %232 = vst [vmem:[%s202_s30 + $0x10] sm:$0xf] (%p51_p3), %v231_v4  ;;  %v233_v5 = vld [vmem:[%s1316_s29 + $0x64] sm:$0xf] (%p51_p3)  ;;  %v235_v6 = vld [vmem:[%s1316_s29 + $0x78] sm:$0xf] (%p51_p3) }
  0x15   : > { %v237_v7 = vld [vmem:[%s1316_s29 + $0x8c] sm:$0xf]  ;;  %234 = vst [vmem:[%s202_s30 + $0x14] sm:$0xf] %v233_v5  ;;  %236 = vst [vmem:[%s202_s30 + $0x18] sm:$0xf] %v235_v6 }
  0x16   : > { %238 = vst [vmem:[%s202_s30 + $0x1c] sm:$0xf] %v237_v7  ;;  %v239_v8 = vld [vmem:[%s1316_s29 + $0xa0] sm:$0xf]  ;;  %v241_v9 = vld [vmem:[%s1316_s29 + $0xb4] sm:$0xf] }
  0x17   : > { %v243_v10 = vld [vmem:[%s1316_s29 + $0xc8] sm:$0xf]  ;;  %240 = vst [vmem:[%s202_s30 + $0x20] sm:$0xf] %v239_v8  ;;  %242 = vst [vmem:[%s202_s30 + $0x24] sm:$0xf] %v241_v9 }
  0x18   : > { %244 = vst [vmem:[%s202_s30 + $0x28] sm:$0xf] %v243_v10  ;;  %v245_v11 = vld [vmem:[%s1316_s29 + $0xdc] sm:$0xf]  ;;  %v247_v12 = vld [vmem:[%s1316_s29 + $0xf0] sm:$0xf] }
  0x19   : > { %v249_v13 = vld [vmem:[%s1316_s29 + $0x104] sm:$0xf]  ;;  %246 = vst [vmem:[%s202_s30 + $0x2c] sm:$0xf] %v245_v11  ;;  %248 = vst [vmem:[%s202_s30 + $0x30] sm:$0xf] %v247_v12 }
  0x1a   : > { %250 = vst [vmem:[%s202_s30 + $0x34] sm:$0xf] %v249_v13  ;;  %v251_v14 = vld [vmem:[%s1316_s29 + $0x118] sm:$0xf]  ;;  %v253_v15 = vld [vmem:[%s1316_s29 + $0x12c] sm:$0xf] }
  0x1b   : > { %252 = vst [vmem:[%s202_s30 + $0x38] sm:$0xf] %v251_v14  ;;  %254 = vst [vmem:[%s202_s30 + $0x3c] sm:$0xf] %v253_v15 }
  0x1c PF: > { %p979_p6 = scmp.ge.s32.totalorder %s1245_s19, 1  ;;  %p320_p7 = scmp.lt.s32.totalorder %s1245_s19, 6 }
  0x1e   : > { %p321_p8 = pnand %p979_p6, %p320_p7 }
  0x1f   : > { %s327_s5 = sand.u32 (!%p321_p8), 1, %s1229_s15   ;;  %s981_s6 = sshll.u32 (!%p321_p8), %s1237_s17, 4 }
  0x20   : > { %324 = sbr.rel (%p321_p8) target bundleno = 325 (0x145), region = 73  ;;  %s980_s7 = sshll.u32 (!%p321_p8), %s327_s5, 6 }
  0x21   : > { %p371_p9 = scmp.lt.s32.totalorder (!%p321_p8), %s981_s6, 79  ;;  %s1343_s12 = scalar_lea.vmem (!%p321_p8), [#allocation3], %s980_s7 }
  0x22   : > { %p983_p10 = scmp.ne.s32.totalorder (!%p321_p8), %s1237_s17, 0 }
  0x27   : > { %s1456_s6 = smov (!%p371_p9, %s981_s6), 79  ;;  %398 = sbr.rel (%p983_p10) target bundleno = 49 (0x31), region = 81 }
  0x28   : > { %s982_s8 = sshll.u32 %s1456_s6, 2  ;;  %v1247_v16 = vmov (!%p983_p10), 0.0  }
  0x29   : > { %s1341_s11 = scalar_lea.vmem %s1445_s1, %s982_s8  ;;  %399 = vst [vmem:[#allocation2] sm:$0xff] (!%p983_p10), %v1247_v16  ;;  %400 = vst [vmem:[#allocation2 + $0x8] sm:$0xff] (!%p983_p10), %v1247_v16 }
  0x2a   : > { %401 = vst [vmem:[#allocation2 + $0x10] sm:$0xff] (!%p983_p10), %v1247_v16  ;;  %402 = vst [vmem:[#allocation2 + $0x18] sm:$0xff] (!%p983_p10), %v1247_v16 }
  0x2b   : > { %403 = vst [vmem:[#allocation2 + $0x20] sm:$0xff] (!%p983_p10), %v1247_v16  ;;  %404 = vst [vmem:[#allocation2 + $0x28] sm:$0xff] (!%p983_p10), %v1247_v16 }
  0x2c   : > { %405 = vst [vmem:[#allocation2 + $0x30] sm:$0xff] (!%p983_p10), %v1247_v16  ;;  %406 = vst [vmem:[#allocation2 + $0x38] sm:$0xff] (!%p983_p10), %v1247_v16 }
  0x2d   : > { %407 = vst [vmem:[#allocation2 + $0x40] sm:$0xff] (!%p983_p10), %v1247_v16  ;;  %408 = vst [vmem:[#allocation2 + $0x48] sm:$0xff] (!%p983_p10), %v1247_v16 }
  0x2e   : > { %409 = vst [vmem:[#allocation2 + $0x50] sm:$0xff] %v1247_v16  ;;  %410 = vst [vmem:[#allocation2 + $0x58] sm:$0xff] %v1247_v16 }
  0x2f   : > { %411 = vst [vmem:[#allocation2 + $0x60] sm:$0xff] %v1247_v16  ;;  %412 = vst [vmem:[#allocation2 + $0x68] sm:$0xff] %v1247_v16 }
  0x30   : > { %413 = vst [vmem:[#allocation2 + $0x70] sm:$0xff] %v1247_v16  ;;  %414 = vst [vmem:[#allocation2 + $0x78] sm:$0xff] %v1247_v16 }
  0x31 PF: > { %v1191_v17 = vld [vmem:[%s1341_s11] sm:$0xff]   ;;  %v1192_v18 = vld [vmem:[%s1341_s11 + $0x8] sm:$0xff]   ;;  %v1193_v19 = vld [vmem:[%s1341_s11 + $0x10] sm:$0xff]   ;;  %p1000_p11 = scmp.ne.s32.totalorder %s1237_s17, 4 }
  0x32   : > { %1102 = vmatprep.subr.bf16.mxu0 %v1191_v17  ;;  %1134 = vmatprep.subr.bf16.mxu1 %v1191_v17  ;;  %v1194_v20 = vld [vmem:[%s1341_s11 + $0x18] sm:$0xff]   ;;  %v1199_v21 = vld [vmem:[%s1343_s12] sm:$0xff]   ;;  %v1196_v24 = vld [vmem:[%s1341_s11 + $0x28] sm:$0xff]  }
  0x33   : > { %1103 = vmatpush3.bf16.msra.mxu0 %v1191_v17  ;;  %1142 = vmatpush3.bf16.msra.mxu1 %v1191_v17  ;;  %v1200_v22 = vld [vmem:[%s1343_s12 + $0x20] sm:$0xff]   ;;  %v1197_v25 = vld [vmem:[%s1341_s11 + $0x30] sm:$0xff]   ;;  %v1198_v26 = vld [vmem:[%s1341_s11 + $0x38] sm:$0xff]  }
  0x34   : > { %1104 = vmatprep.subr.bf16.mxu0 %v1192_v18  ;;  %1135 = vmatprep.subr.bf16.mxu1 %v1192_v18  ;;  %v1195_v23 = vld [vmem:[%s1341_s11 + $0x20] sm:$0xff]   ;;  %v1201_v27 = vld [vmem:[%s1343_s12 + $0x8] sm:$0xff]   ;;  %v1203_v29 = vld [vmem:[%s1343_s12 + $0x10] sm:$0xff]  }
  0x35   : > { %1118 = vmatprep.mubr.bf16.mxu0 %v1199_v21  ;;  %1126 = vmatprep.mubr.bf16.mxu1 %v1200_v22  ;;  %v1202_v28 = vld [vmem:[%s1343_s12 + $0x28] sm:$0xff]   ;;  %v1204_v30 = vld [vmem:[%s1343_s12 + $0x30] sm:$0xff]   ;;  %v1205_v31 = vld [vmem:[%s1343_s12 + $0x18] sm:$0xff]  }
  0x36   : > { %v1206_v32 = vld [vmem:[%s1343_s12 + $0x38] sm:$0xff]   ;;  %v417_v33 = vld [vmem:[#allocation2 + $0x10] sm:$0xff]  ;;  %v415_v35 = vld [vmem:[#allocation2] sm:$0xff] }
  0x37   : > { %1105 = vmatpush3.bf16.msra.mxu0 %v1192_v18  ;;  %1143 = vmatpush3.bf16.msra.mxu1 %v1192_v18  ;;  %v425_v34 = vld [vmem:[#allocation2 + $0x50] sm:$0xff]  ;;  %v423_v36 = vld [vmem:[#allocation2 + $0x40] sm:$0xff]  ;;  %v418_v39 = vld [vmem:[#allocation2 + $0x18] sm:$0xff] }
  0x38   : > { %1106 = vmatprep.subr.bf16.mxu0 %v1193_v19  ;;  %1136 = vmatprep.subr.bf16.mxu1 %v1193_v19  ;;  %v426_v40 = vld [vmem:[#allocation2 + $0x58] sm:$0xff]  ;;  %v416_v45 = vld [vmem:[#allocation2 + $0x8] sm:$0xff]  ;;  %v421_v57 = vld [vmem:[#allocation2 + $0x30] sm:$0xff] }
  0x39   : > { %v424_v46 = vld [vmem:[#allocation2 + $0x48] sm:$0xff]  ;;  %v429_v58 = vld [vmem:[#allocation2 + $0x70] sm:$0xff]  ;;  %v419_v59 = vld [vmem:[#allocation2 + $0x20] sm:$0xff] }
  0x3a   : > { %v427_v60 = vld [vmem:[#allocation2 + $0x60] sm:$0xff]  ;;  %v422_v63 = vld [vmem:[#allocation2 + $0x38] sm:$0xff]  ;;  %v420_v5 = vld [vmem:[#allocation2 + $0x28] sm:$0xff] }
  0x3b   : > { %1107 = vmatpush3.bf16.msra.mxu0 %v1193_v19  ;;  %1144 = vmatpush3.bf16.msra.mxu1 %v1193_v19  ;;  %v430_v0 = vld [vmem:[#allocation2 + $0x78] sm:$0xff]  ;;  %v428_v6 = vld [vmem:[#allocation2 + $0x68] sm:$0xff]  ;;  %v1366_v19 = vld [vmem:[%s1446_s2] ss:$0 sm:$0xff] (!%p1000_p11) }
  0x3c   : > { %1108 = vmatprep.subr.bf16.mxu0 %v1194_v20  ;;  %1137 = vmatprep.subr.bf16.mxu1 %v1194_v20  ;;  %v1373_v22 = vld [vmem:[%s1447_s3] ss:$0 sm:$0xff] (!%p1000_p11) }
  0x3f   : > { %1109 = vmatpush3.bf16.msra.mxu0 %v1194_v20  ;;  %1145 = vmatpush3.bf16.msra.mxu1 %v1194_v20 }
  0x40   : > { %1110 = vmatprep.subr.bf16.mxu0 %v1195_v23  ;;  %1138 = vmatprep.subr.bf16.mxu1 %v1195_v23 }
  0x43   : > { %1111 = vmatpush3.bf16.msra.mxu0 %v1195_v23  ;;  %1146 = vmatpush3.bf16.msra.mxu1 %v1195_v23 }
  0x44   : > { %1112 = vmatprep.subr.bf16.mxu0 %v1196_v24  ;;  %1139 = vmatprep.subr.bf16.mxu1 %v1196_v24 }
  0x47   : > { %1113 = vmatpush3.bf16.msra.mxu0 %v1196_v24  ;;  %1147 = vmatpush3.bf16.msra.mxu1 %v1196_v24 }
  0x48   : > { %1114 = vmatprep.subr.bf16.mxu0 %v1197_v25  ;;  %1140 = vmatprep.subr.bf16.mxu1 %v1197_v25 }
  0x4b   : > { %1115 = vmatpush3.bf16.msra.mxu0 %v1197_v25  ;;  %1148 = vmatpush3.bf16.msra.mxu1 %v1197_v25 }
  0x4c   : > { %1116 = vmatprep.subr.bf16.mxu0 %v1198_v26  ;;  %1141 = vmatprep.subr.bf16.mxu1 %v1198_v26 }
  0x4f   : > { %1117 = vmatpush3.bf16.msra.mxu0 %v1198_v26  ;;  %1149 = vmatpush3.bf16.msra.mxu1 %v1198_v26 }
  0x52   : > { %1119 = vmatmul.mubr.bf16.vlgmr.msra.gmra.mrb[0].mxu0 %v1201_v27  ;;  %1127 = vmatmul.mubr.bf16.vlgmr.msra.gmra.mrb[0].mxu1 %v1202_v28 }
  0x53   : > { %1122 = vmatprep.mubr.bf16.mxu0 %v1203_v29  ;;  %1130 = vmatprep.mubr.bf16.mxu1 %v1204_v30 }
  0x5a   : > { %1123 = vmatmul.mubr.bf16.gmra.mrb[4].mxu0 %v1205_v31  ;;  %1131 = vmatmul.mubr.bf16.gmra.mrb[4].mxu1 %v1206_v32 }
 0x125   : > { %v1120_v37 = vpop.f32.mrb[0].mxu0  ;;  %v1128_v38 = vpop.f32.mrb[0].mxu1 }
 0x126   : > { %v658_v41 = vadd.f32 %v1120_v37, %v417_v33  ;;  %v666_v42 = vadd.f32 %v1128_v38, %v425_v34  ;;  %v593_v43 = vpop.f32.mrb[1].mxu0  ;;  %v625_v44 = vpop.f32.mrb[1].mxu1 }
 0x127   : > { %v656_v47 = vadd.f32 %v593_v43, %v415_v35  ;;  %v664_v48 = vadd.f32 %v625_v44, %v423_v36  ;;  %v1121_v49 = vpop.f32.mrb[2].mxu0  ;;  %v1129_v50 = vpop.f32.mrb[2].mxu1 }
 0x128   : > { %674 = vst [vmem:[#allocation2 + $0x10] sm:$0xff] %v658_v41  ;;  %682 = vst [vmem:[#allocation2 + $0x50] sm:$0xff] %v666_v42  ;;  %v659_v51 = vadd.f32 %v1121_v49, %v418_v39  ;;  %v667_v52 = vadd.f32 %v1129_v50, %v426_v40  ;;  %v596_v53 = vpop.f32.mrb[3].mxu0  ;;  %v628_v54 = vpop.f32.mrb[3].mxu1 }
 0x129   : > { %672 = vst [vmem:[#allocation2] sm:$0xff] %v656_v47  ;;  %680 = vst [vmem:[#allocation2 + $0x40] sm:$0xff] %v664_v48  ;;  %v657_v55 = vadd.f32 %v596_v53, %v416_v45  ;;  %v665_v56 = vadd.f32 %v628_v54, %v424_v46 }
 0x12a   : > { %675 = vst [vmem:[#allocation2 + $0x18] sm:$0xff] %v659_v51  ;;  %683 = vst [vmem:[#allocation2 + $0x58] sm:$0xff] %v667_v52 }
 0x12b   : > { %673 = vst [vmem:[#allocation2 + $0x8] sm:$0xff] %v657_v55  ;;  %681 = vst [vmem:[#allocation2 + $0x48] sm:$0xff] %v665_v56 }
 0x12d   : > { %v1124_v61 = vpop.f32.mrb[4].mxu0  ;;  %v1132_v62 = vpop.f32.mrb[4].mxu1  ;;  %691 = sbr.rel (%p1000_p11) target bundleno = 325 (0x145), region = 85 }
 0x12e   : > { %v662_v1 = vadd.f32 %v1124_v61, %v421_v57  ;;  %v670_v2 = vadd.f32 %v1132_v62, %v429_v58  ;;  %v609_v3 = vpop.f32.mrb[5].mxu0  ;;  %v641_v4 = vpop.f32.mrb[5].mxu1 }
 0x12f   : > { %v660_v7 = vadd.f32 %v609_v3, %v419_v59  ;;  %v668_v8 = vadd.f32 %v641_v4, %v427_v60  ;;  %v1125_v9 = vpop.f32.mrb[6].mxu0  ;;  %v1133_v10 = vpop.f32.mrb[6].mxu1  ;;  %v694_v23 = vld [vmem:[#allocation2 + $0x10] sm:$0xff] (!%p1000_p11) }
 0x130   : > { %678 = vst [vmem:[#allocation2 + $0x30] sm:$0xff] %v662_v1  ;;  %686 = vst [vmem:[#allocation2 + $0x70] sm:$0xff] %v670_v2  ;;  %v663_v11 = vadd.f32 %v1125_v9, %v422_v63  ;;  %v671_v12 = vadd.f32 %v1133_v10, %v430_v0  ;;  %v612_v13 = vpop.f32.mrb[7].mxu0  ;;  %v644_v14 = vpop.f32.mrb[7].mxu1  ;;  %v692_v17 = vld [vmem:[#allocation2] sm:$0xff] (!%p1000_p11)  ;;  %v717_v25 = vmul.f32 (!%p1000_p11), %v1366_v19, %v694_v23  ;;  %v702_v49 = vld [vmem:[#allocation2 + $0x50] sm:$0xff] (!%p1000_p11) }
 0x131   : > { %676 = vst [vmem:[#allocation2 + $0x20] sm:$0xff] %v660_v7  ;;  %684 = vst [vmem:[#allocation2 + $0x60] sm:$0xff] %v668_v8  ;;  %v661_v15 = vadd.f32 %v612_v13, %v420_v5  ;;  %v669_v16 = vadd.f32 %v644_v14, %v428_v6  ;;  %v715_v20 = vmul.f32 (!%p1000_p11), %v1366_v19, %v692_v17  ;;  %v695_v24 = vld [vmem:[#allocation2 + $0x18] sm:$0xff] (!%p1000_p11)  ;;  %v700_v39 = vld [vmem:[#allocation2 + $0x40] sm:$0xff] (!%p1000_p11) }
 0x132   : > { %679 = vst [vmem:[#allocation2 + $0x38] sm:$0xff] %v663_v11  ;;  %687 = vst [vmem:[#allocation2 + $0x78] sm:$0xff] %v671_v12  ;;  %v693_v18 = vld [vmem:[#allocation2 + $0x8] sm:$0xff] (!%p1000_p11)  ;;  %v718_v26 = vmul.f32 (!%p1000_p11), %v1366_v19, %v695_v24  ;;  %v740_v35 = vadd.f32 (!%p1000_p11), %v1373_v22, %v717_v25  ;;  %v703_v50 = vld [vmem:[#allocation2 + $0x58] sm:$0xff] (!%p1000_p11)  ;;  %v723_v54 = vmul.f32 (!%p1000_p11), %v1366_v19, %v700_v39 }
 0x133   : > { %677 = vst [vmem:[#allocation2 + $0x28] sm:$0xff] %v661_v15  ;;  %685 = vst [vmem:[#allocation2 + $0x68] sm:$0xff] %v669_v16  ;;  %v716_v21 = vmul.f32 (!%p1000_p11), %v1366_v19, %v693_v18  ;;  %v738_v30 = vadd.f32 (!%p1000_p11), %v1373_v22, %v715_v20  ;;  %v701_v44 = vld [vmem:[#allocation2 + $0x48] sm:$0xff] (!%p1000_p11)  ;;  %v725_v0 = vmul.f32 (!%p1000_p11), %v1366_v19, %v702_v49 }
 0x134   : > { %v741_v36 = vadd.f32 %v1373_v22, %v718_v26  ;;  %v756_v45 = vmax.f32 %v740_v35, 0.0  ;;  %v724_v60 = vmul.f32 %v1366_v19, %v701_v44  ;;  %v746_v63 = vadd.f32 %v1373_v22, %v723_v54 }
 0x135   : > { %v739_v31 = vadd.f32 %v1373_v22, %v716_v21  ;;  %v754_v40 = vmax.f32 %v738_v30, 0.0  ;;  %v726_v1 = vmul.f32 %v1366_v19, %v703_v50  ;;  %v748_v8 = vadd.f32 %v1373_v22, %v725_v0 }
 0x136   : > { %v757_v46 = vmax.f32 %v741_v36, 0.0  ;;  %v747_v4 = vadd.f32 %v1373_v22, %v724_v60  ;;  %v762_v7 = vmax.f32 %v746_v63, 0.0 }
 0x137   : > { %v698_v29 = vld [vmem:[#allocation2 + $0x30] sm:$0xff]  ;;  %v755_v41 = vmax.f32 %v739_v31, 0.0  ;;  %v749_v9 = vadd.f32 %v1373_v22, %v726_v1  ;;  %v764_v15 = vmax.f32 %v748_v8, 0.0 }
 0x138   : > { %v696_v27 = vld [vmem:[#allocation2 + $0x20] sm:$0xff]  ;;  %v721_v37 = vmul.f32 %v1366_v19, %v698_v29  ;;  %v1047_v57 = vpack.c.bf16 %v757_v46, %v756_v45  ;;  %v706_v61 = vld [vmem:[#allocation2 + $0x70] sm:$0xff]  ;;  %v763_v11 = vmax.f32 %v747_v4, 0.0 }
 0x139   : > { %v719_v32 = vmul.f32 %v1366_v19, %v696_v27  ;;  %v699_v34 = vld [vmem:[#allocation2 + $0x38] sm:$0xff]  ;;  %v1042_v51 = vpack.c.bf16 %v755_v41, %v754_v40  ;;  %v704_v55 = vld [vmem:[#allocation2 + $0x60] sm:$0xff]  ;;  %v729_v10 = vmul.f32 %v1366_v19, %v706_v61  ;;  %v765_v16 = vmax.f32 %v749_v9, 0.0 }
 0x13a   : > { %v697_v28 = vld [vmem:[#allocation2 + $0x28] sm:$0xff]  ;;  %v722_v38 = vmul.f32 %v1366_v19, %v699_v34  ;;  %v744_v47 = vadd.f32 %v1373_v22, %v721_v37  ;;  %v707_v2 = vld [vmem:[#allocation2 + $0x78] sm:$0xff]  ;;  %1079 = vst [vmem:[%s1448_s4 + $0x8] sm:$0xff] %v1047_v57   ;;  %v727_v5 = vmul.f32 %v1366_v19, %v704_v55  ;;  %v1062_v18 = vpack.c.bf16 %v763_v11, %v762_v7 }
 0x13b   : > { %v720_v33 = vmul.f32 %v1366_v19, %v697_v28  ;;  %v742_v42 = vadd.f32 %v1373_v22, %v719_v32  ;;  %v705_v56 = vld [vmem:[#allocation2 + $0x68] sm:$0xff]  ;;  %1043 = vst [vmem:[%s1448_s4] sm:$0xff] %v1042_v51   ;;  %v730_v14 = vmul.f32 %v1366_v19, %v707_v2  ;;  %v752_v17 = vadd.f32 %v1373_v22, %v729_v10 }
 0x13c   : > { %v745_v48 = vadd.f32 %v1373_v22, %v722_v38  ;;  %v760_v58 = vmax.f32 %v744_v47, 0.0  ;;  %v728_v6 = vmul.f32 %v1366_v19, %v705_v56  ;;  %v750_v12 = vadd.f32 %v1373_v22, %v727_v5  ;;  %1082 = vst [vmem:[%s1448_s4 + $0x20] sm:$0xff] %v1062_v18  }
 0x13d   : > { %v743_v43 = vadd.f32 %v1373_v22, %v720_v33  ;;  %v758_v52 = vmax.f32 %v742_v42, 0.0  ;;  %v753_v23 = vadd.f32 %v1373_v22, %v730_v14  ;;  %v1067_v24 = vpack.c.bf16 %v765_v16, %v764_v15 }
 0x13e   : > { %v761_v59 = vmax.f32 %v745_v48, 0.0  ;;  %v751_v13 = vadd.f32 %v1373_v22, %v728_v6  ;;  %v766_v20 = vmax.f32 %v750_v12, 0.0  ;;  %v768_v25 = vmax.f32 %v752_v17, 0.0 }
 0x13f   : > { %v759_v53 = vmax.f32 %v743_v43, 0.0  ;;  %v769_v27 = vmax.f32 %v753_v23, 0.0  ;;  %1083 = vst [vmem:[%s1448_s4 + $0x28] sm:$0xff] %v1067_v24  }
 0x140   : > { %v1057_v3 = vpack.c.bf16 %v761_v59, %v760_v58  ;;  %v767_v21 = vmax.f32 %v751_v13, 0.0 }
 0x141   : > { %v1052_v62 = vpack.c.bf16 %v759_v53, %v758_v52  ;;  %v1077_v19 = vpack.c.bf16 %v769_v27, %v768_v25 }
 0x142   : > { %1081 = vst [vmem:[%s1448_s4 + $0x18] sm:$0xff] %v1057_v3   ;;  %v1072_v26 = vpack.c.bf16 %v767_v21, %v766_v20 }
 0x143   : > { %1080 = vst [vmem:[%s1448_s4 + $0x10] sm:$0xff] %v1052_v62   ;;  %1085 = vst [vmem:[%s1448_s4 + $0x38] sm:$0xff] %v1077_v19  }
 0x144   : > { %1084 = vst [vmem:[%s1448_s4 + $0x30] sm:$0xff] %v1072_v26  }
 0x145 PF: > { %s14_s19 = sadd.s32 1, %s1245_s19   ;;  %s1449_s15 = smov %s1233_s16 }
 0x146   : > { %p11_p12 = scmp.ge.s32.totalorder %s14_s19, 7   ;;  %s1450_s16 = smov %s1308_s23 }
 0x147   : > { %s1451_s17 = smov %s1241_s18  ;;  %s1452_s18 = smov %s1454_s20 }
 0x148   :  { %13 = sbr.rel (!%p11_p12) target bundleno = 3 (0x3), region = 129 }

// kernel: resnet_forward.19
= control target key start
LH: loop header
LB: loop body
LE: loop exit
PB: predicated region body
PF: predicated region fallthrough
CT: control target
= control target key end

     0   :  { %s1444_s18 = smov 0   ;;  %s1446_s19 = smov 0   ;;  %s1639_s0 = inlined_call_operand.vmem [shape: bf16[128,640], index: 0, kind: input, shape index: {}]   ;;  %s1640_s1 = inlined_call_operand.vmem [shape: bf16[640,128], index: 1, kind: input, shape index: {}]   ;;  %s1641_s2 = inlined_call_operand.vmem [shape: f32[1,128], index: 2, kind: input, shape index: {}]   ;;  %s1642_s3 = inlined_call_operand.vmem [shape: f32[1,128], index: 3, kind: input, shape index: {}]   ;;  %s1643_s4 = inlined_call_operand.vmem [shape: bf16[128,128], index: 4, kind: input, shape index: {}]   ;;  %s1644_s5 = inlined_call_operand.vmem [shape: bf16[128,128], index: 5, kind: output, shape index: {}]  }
   0x1   :  { %s1448_s20 = smov 0   ;;  %s1450_s21 = smov 0  }
   0x2   :  { %s1452_s22 = smov 0  }
   0x3 LB: > { %s27_s23 = sadd.s32 1, %s1407_s21  ;;  %p50_p1 = scmp.ne.s32.totalorder %s1399_s19, %s1395_s18  ;;  %s1411_s22 = sphi %s1452_s22, %s15_s22   ;;  %s1407_s21 = sphi %s1450_s21, %s1648_s21   ;;  %s1403_s20 = sphi %s1448_s20, %s1647_s20   ;;  %s1399_s19 = sphi %s1446_s19, %s1646_s19   ;;  %s1395_s18 = sphi %s1444_s18, %s1645_s18  }
   0x4   : > { %p28_p0 = scmp.ge.s32.totalorder %s27_s23, 5  ;;  %p51_p2 = scmp.eq.s32.totalorder %s1411_s22, 0 }
   0x5   : > { %s43_s25 = sadd.s32 1, %s1399_s19  ;;  %p1103_p5 = scmp.ge.s32.totalorder %s1411_s22, 5 }
   0x6   : > { %s1650_s23 = smov (%p28_p0, %s27_s23), 0  ;;  %p52_p3 = por %p51_p2, %p50_p1 }
   0x7   : > { %s39_s24 = ssub.s32 %s1407_s21, %s1650_s23  ;;  %236 = sbr.rel (%p1103_p5) target bundleno = 28 (0x1c), region = 28 }
   0x8   : > { %p41_p4 = scmp.eq.s32.totalorder %s39_s24, 0 }
   0xa   : > { %s1479_s26 = scalar_select %p41_p4, %s1399_s19, %s43_s25  }
   0xe   : > { %239 = sbr.rel (!%p52_p3) target bundleno = 28 (0x1c), region = 32  ;;  %s241_s27 = sand.u32 (%p52_p3), 1, %s1399_s19  }
   0xf   : > { %s1105_s28 = sshll.u32 (%p52_p3), %s1407_s21, 2  ;;  %s1104_s29 = sshll.u32 (%p52_p3), %s241_s27, 6 }
  0x10   : > { %s1487_s7 = scalar_lea.vmem (%p52_p3), %s1639_s0, %s1105_s28  ;;  %s243_s8 = scalar_lea.vmem (%p52_p3), [#allocation3], %s1104_s29 }
  0x11   : > { %v264_v0 = vld [vmem:[%s1487_s7] sm:$0xf] (%p52_p3)  ;;  %v266_v1 = vld [vmem:[%s1487_s7 + $0x14] sm:$0xf] (%p52_p3)  ;;  %v268_v2 = vld [vmem:[%s1487_s7 + $0x28] sm:$0xf] (%p52_p3) }
  0x12   : > { %265 = vst [vmem:[%s243_s8] sm:$0xf] (%p52_p3), %v264_v0  ;;  %267 = vst [vmem:[%s243_s8 + $0x4] sm:$0xf] (%p52_p3), %v266_v1  ;;  %v270_v3 = vld [vmem:[%s1487_s7 + $0x3c] sm:$0xf] (%p52_p3) }
  0x13   : > { %v272_v4 = vld [vmem:[%s1487_s7 + $0x50] sm:$0xf] (%p52_p3)  ;;  %269 = vst [vmem:[%s243_s8 + $0x8] sm:$0xf] (%p52_p3), %v268_v2  ;;  %271 = vst [vmem:[%s243_s8 + $0xc] sm:$0xf] (%p52_p3), %v270_v3 }
  0x14   : > { %273 = vst [vmem:[%s243_s8 + $0x10] sm:$0xf] (%p52_p3), %v272_v4  ;;  %v274_v5 = vld [vmem:[%s1487_s7 + $0x64] sm:$0xf] (%p52_p3)  ;;  %v276_v6 = vld [vmem:[%s1487_s7 + $0x78] sm:$0xf] (%p52_p3) }
  0x15   : > { %v278_v7 = vld [vmem:[%s1487_s7 + $0x8c] sm:$0xf]  ;;  %275 = vst [vmem:[%s243_s8 + $0x14] sm:$0xf] %v274_v5  ;;  %277 = vst [vmem:[%s243_s8 + $0x18] sm:$0xf] %v276_v6 }
  0x16   : > { %279 = vst [vmem:[%s243_s8 + $0x1c] sm:$0xf] %v278_v7  ;;  %v280_v8 = vld [vmem:[%s1487_s7 + $0xa0] sm:$0xf]  ;;  %v282_v9 = vld [vmem:[%s1487_s7 + $0xb4] sm:$0xf] }
  0x17   : > { %v284_v10 = vld [vmem:[%s1487_s7 + $0xc8] sm:$0xf]  ;;  %281 = vst [vmem:[%s243_s8 + $0x20] sm:$0xf] %v280_v8  ;;  %283 = vst [vmem:[%s243_s8 + $0x24] sm:$0xf] %v282_v9 }
  0x18   : > { %285 = vst [vmem:[%s243_s8 + $0x28] sm:$0xf] %v284_v10  ;;  %v286_v11 = vld [vmem:[%s1487_s7 + $0xdc] sm:$0xf]  ;;  %v288_v12 = vld [vmem:[%s1487_s7 + $0xf0] sm:$0xf] }
  0x19   : > { %v290_v13 = vld [vmem:[%s1487_s7 + $0x104] sm:$0xf]  ;;  %287 = vst [vmem:[%s243_s8 + $0x2c] sm:$0xf] %v286_v11  ;;  %289 = vst [vmem:[%s243_s8 + $0x30] sm:$0xf] %v288_v12 }
  0x1a   : > { %291 = vst [vmem:[%s243_s8 + $0x34] sm:$0xf] %v290_v13  ;;  %v292_v14 = vld [vmem:[%s1487_s7 + $0x118] sm:$0xf]  ;;  %v294_v15 = vld [vmem:[%s1487_s7 + $0x12c] sm:$0xf] }
  0x1b   : > { %293 = vst [vmem:[%s243_s8 + $0x38] sm:$0xf] %v292_v14  ;;  %295 = vst [vmem:[%s243_s8 + $0x3c] sm:$0xf] %v294_v15 }
  0x1c PF: > { %p1106_p6 = scmp.ge.s32.totalorder %s1411_s22, 1  ;;  %p361_p7 = scmp.lt.s32.totalorder %s1411_s22, 6 }
  0x1e   : > { %p362_p8 = pnand %p1106_p6, %p361_p7 }
  0x1f   : > { %s368_s9 = sand.u32 (!%p362_p8), 1, %s1395_s18   ;;  %s1108_s10 = sshll.u32 (!%p362_p8), %s1403_s20, 4 }
  0x20   : > { %365 = sbr.rel (%p362_p8) target bundleno = 332 (0x14c), region = 77  ;;  %s1107_s11 = sshll.u32 (!%p362_p8), %s368_s9, 6 }
  0x21   : > { %p422_p9 = scmp.lt.s32.totalorder (!%p362_p8), %s1108_s10, 79  ;;  %s1514_s16 = scalar_lea.vmem (!%p362_p8), [#allocation3], %s1107_s11 }
  0x22   : > { %p1110_p10 = scmp.ne.s32.totalorder (!%p362_p8), %s1403_s20, 0 }
  0x27   : > { %s1652_s10 = smov (!%p422_p9, %s1108_s10), 79  ;;  %458 = sbr.rel (%p1110_p10) target bundleno = 49 (0x31), region = 85 }
  0x28   : > { %s1109_s12 = sshll.u32 %s1652_s10, 2  ;;  %v1413_v16 = vmov (!%p1110_p10), 0.0  }
  0x29   : > { %s1512_s15 = scalar_lea.vmem %s1640_s1, %s1109_s12  ;;  %459 = vst [vmem:[#allocation2] sm:$0xff] (!%p1110_p10), %v1413_v16  ;;  %460 = vst [vmem:[#allocation2 + $0x8] sm:$0xff] (!%p1110_p10), %v1413_v16 }
  0x2a   : > { %461 = vst [vmem:[#allocation2 + $0x10] sm:$0xff] (!%p1110_p10), %v1413_v16  ;;  %462 = vst [vmem:[#allocation2 + $0x18] sm:$0xff] (!%p1110_p10), %v1413_v16 }
  0x2b   : > { %463 = vst [vmem:[#allocation2 + $0x20] sm:$0xff] (!%p1110_p10), %v1413_v16  ;;  %464 = vst [vmem:[#allocation2 + $0x28] sm:$0xff] (!%p1110_p10), %v1413_v16 }
  0x2c   : > { %465 = vst [vmem:[#allocation2 + $0x30] sm:$0xff] (!%p1110_p10), %v1413_v16  ;;  %466 = vst [vmem:[#allocation2 + $0x38] sm:$0xff] (!%p1110_p10), %v1413_v16 }
  0x2d   : > { %467 = vst [vmem:[#allocation2 + $0x40] sm:$0xff] (!%p1110_p10), %v1413_v16  ;;  %468 = vst [vmem:[#allocation2 + $0x48] sm:$0xff] (!%p1110_p10), %v1413_v16 }
  0x2e   : > { %469 = vst [vmem:[#allocation2 + $0x50] sm:$0xff] %v1413_v16  ;;  %470 = vst [vmem:[#allocation2 + $0x58] sm:$0xff] %v1413_v16 }
  0x2f   : > { %471 = vst [vmem:[#allocation2 + $0x60] sm:$0xff] %v1413_v16  ;;  %472 = vst [vmem:[#allocation2 + $0x68] sm:$0xff] %v1413_v16 }
  0x30   : > { %473 = vst [vmem:[#allocation2 + $0x70] sm:$0xff] %v1413_v16  ;;  %474 = vst [vmem:[#allocation2 + $0x78] sm:$0xff] %v1413_v16 }
  0x31 PF: > { %v1357_v17 = vld [vmem:[%s1512_s15] sm:$0xff]   ;;  %v1358_v18 = vld [vmem:[%s1512_s15 + $0x8] sm:$0xff]   ;;  %v1359_v19 = vld [vmem:[%s1512_s15 + $0x10] sm:$0xff]   ;;  %p1127_p11 = scmp.ne.s32.totalorder %s1403_s20, 4 }
  0x32   : > { %1268 = vmatprep.subr.bf16.mxu0 %v1357_v17  ;;  %1300 = vmatprep.subr.bf16.mxu1 %v1357_v17  ;;  %v1360_v20 = vld [vmem:[%s1512_s15 + $0x18] sm:$0xff]   ;;  %v1365_v21 = vld [vmem:[%s1514_s16] sm:$0xff]   ;;  %v1362_v24 = vld [vmem:[%s1512_s15 + $0x28] sm:$0xff]  }
  0x33   : > { %1269 = vmatpush3.bf16.msra.mxu0 %v1357_v17  ;;  %1308 = vmatpush3.bf16.msra.mxu1 %v1357_v17  ;;  %v1366_v22 = vld [vmem:[%s1514_s16 + $0x20] sm:$0xff]   ;;  %v1363_v25 = vld [vmem:[%s1512_s15 + $0x30] sm:$0xff]   ;;  %v1364_v26 = vld [vmem:[%s1512_s15 + $0x38] sm:$0xff]  }
  0x34   : > { %1270 = vmatprep.subr.bf16.mxu0 %v1358_v18  ;;  %1301 = vmatprep.subr.bf16.mxu1 %v1358_v18  ;;  %v1361_v23 = vld [vmem:[%s1512_s15 + $0x20] sm:$0xff]   ;;  %v1367_v27 = vld [vmem:[%s1514_s16 + $0x8] sm:$0xff]   ;;  %v1369_v29 = vld [vmem:[%s1514_s16 + $0x10] sm:$0xff]  }
  0x35   : > { %1284 = vmatprep.mubr.bf16.mxu0 %v1365_v21  ;;  %1292 = vmatprep.mubr.bf16.mxu1 %v1366_v22  ;;  %v1368_v28 = vld [vmem:[%s1514_s16 + $0x28] sm:$0xff]   ;;  %v1370_v30 = vld [vmem:[%s1514_s16 + $0x30] sm:$0xff]   ;;  %v1371_v31 = vld [vmem:[%s1514_s16 + $0x18] sm:$0xff]  }
  0x36   : > { %v1372_v32 = vld [vmem:[%s1514_s16 + $0x38] sm:$0xff]   ;;  %v477_v33 = vld [vmem:[#allocation2 + $0x10] sm:$0xff]  ;;  %v475_v35 = vld [vmem:[#allocation2] sm:$0xff] }
  0x37   : > { %1271 = vmatpush3.bf16.msra.mxu0 %v1358_v18  ;;  %1309 = vmatpush3.bf16.msra.mxu1 %v1358_v18  ;;  %v485_v34 = vld [vmem:[#allocation2 + $0x50] sm:$0xff]  ;;  %v483_v36 = vld [vmem:[#allocation2 + $0x40] sm:$0xff]  ;;  %v478_v39 = vld [vmem:[#allocation2 + $0x18] sm:$0xff] }
  0x38   : > { %1272 = vmatprep.subr.bf16.mxu0 %v1359_v19  ;;  %1302 = vmatprep.subr.bf16.mxu1 %v1359_v19  ;;  %v486_v40 = vld [vmem:[#allocation2 + $0x58] sm:$0xff]  ;;  %v476_v45 = vld [vmem:[#allocation2 + $0x8] sm:$0xff]  ;;  %v481_v57 = vld [vmem:[#allocation2 + $0x30] sm:$0xff] }
  0x39   : > { %v484_v46 = vld [vmem:[#allocation2 + $0x48] sm:$0xff]  ;;  %v489_v58 = vld [vmem:[#allocation2 + $0x70] sm:$0xff]  ;;  %v479_v59 = vld [vmem:[#allocation2 + $0x20] sm:$0xff] }
  0x3a   : > { %v487_v60 = vld [vmem:[#allocation2 + $0x60] sm:$0xff]  ;;  %v482_v63 = vld [vmem:[#allocation2 + $0x38] sm:$0xff]  ;;  %v480_v5 = vld [vmem:[#allocation2 + $0x28] sm:$0xff] }
  0x3b   : > { %1273 = vmatpush3.bf16.msra.mxu0 %v1359_v19  ;;  %1310 = vmatpush3.bf16.msra.mxu1 %v1359_v19  ;;  %v490_v0 = vld [vmem:[#allocation2 + $0x78] sm:$0xff]  ;;  %v488_v6 = vld [vmem:[#allocation2 + $0x68] sm:$0xff]  ;;  %v1537_v19 = vld [vmem:[%s1641_s2] ss:$0 sm:$0xff] (!%p1127_p11) }
  0x3c   : > { %1274 = vmatprep.subr.bf16.mxu0 %v1360_v20  ;;  %1303 = vmatprep.subr.bf16.mxu1 %v1360_v20  ;;  %v1544_v22 = vld [vmem:[%s1642_s3] ss:$0 sm:$0xff] (!%p1127_p11) }
  0x3f   : > { %1275 = vmatpush3.bf16.msra.mxu0 %v1360_v20  ;;  %1311 = vmatpush3.bf16.msra.mxu1 %v1360_v20 }
  0x40   : > { %1276 = vmatprep.subr.bf16.mxu0 %v1361_v23  ;;  %1304 = vmatprep.subr.bf16.mxu1 %v1361_v23 }
  0x43   : > { %1277 = vmatpush3.bf16.msra.mxu0 %v1361_v23  ;;  %1312 = vmatpush3.bf16.msra.mxu1 %v1361_v23  ;;  %v1167_v23 = vld [vmem:[%s1643_s4] sm:$0xff] (!%p1127_p11)  }
  0x44   : > { %1278 = vmatprep.subr.bf16.mxu0 %v1362_v24  ;;  %1305 = vmatprep.subr.bf16.mxu1 %v1362_v24 }
  0x47   : > { %1279 = vmatpush3.bf16.msra.mxu0 %v1362_v24  ;;  %1313 = vmatpush3.bf16.msra.mxu1 %v1362_v24 }
  0x48   : > { %1280 = vmatprep.subr.bf16.mxu0 %v1363_v25  ;;  %1306 = vmatprep.subr.bf16.mxu1 %v1363_v25 }
  0x4b   : > { %1281 = vmatpush3.bf16.msra.mxu0 %v1363_v25  ;;  %1314 = vmatpush3.bf16.msra.mxu1 %v1363_v25  ;;  %v1168_v25 = vunpack.c.l.bf16 (!%p1127_p11), %v1167_v23 }
  0x4c   : > { %1282 = vmatprep.subr.bf16.mxu0 %v1364_v26  ;;  %1307 = vmatprep.subr.bf16.mxu1 %v1364_v26 }
  0x4f   : > { %1283 = vmatpush3.bf16.msra.mxu0 %v1364_v26  ;;  %1315 = vmatpush3.bf16.msra.mxu1 %v1364_v26  ;;  %v1169_v26 = vunpack.c.h.bf16 (!%p1127_p11), %v1167_v23 }
  0x52   : > { %1285 = vmatmul.mubr.bf16.vlgmr.msra.gmra.mrb[0].mxu0 %v1367_v27  ;;  %1293 = vmatmul.mubr.bf16.vlgmr.msra.gmra.mrb[0].mxu1 %v1368_v28 }
  0x53   : > { %1288 = vmatprep.mubr.bf16.mxu0 %v1369_v29  ;;  %1296 = vmatprep.mubr.bf16.mxu1 %v1370_v30  ;;  %v1238_v29 = vld [vmem:[%s1643_s4 + $0x8] sm:$0xff] (!%p1127_p11)  }
  0x5a   : > { %1289 = vmatmul.mubr.bf16.gmra.mrb[4].mxu0 %v1371_v31  ;;  %1297 = vmatmul.mubr.bf16.gmra.mrb[4].mxu1 %v1372_v32 }
 0x125   : > { %v1286_v37 = vpop.f32.mrb[0].mxu0  ;;  %v1294_v38 = vpop.f32.mrb[0].mxu1 }
 0x126   : > { %v718_v41 = vadd.f32 %v1286_v37, %v477_v33  ;;  %v726_v42 = vadd.f32 %v1294_v38, %v485_v34  ;;  %v653_v43 = vpop.f32.mrb[1].mxu0  ;;  %v685_v44 = vpop.f32.mrb[1].mxu1  ;;  %v1172_v34 = vunpack.c.l.bf16 (!%p1127_p11), %v1238_v29  ;;  %v1173_v38 = vunpack.c.h.bf16 (!%p1127_p11), %v1238_v29 }
 0x127   : > { %v716_v47 = vadd.f32 %v653_v43, %v475_v35  ;;  %v724_v48 = vadd.f32 %v685_v44, %v483_v36  ;;  %v1287_v49 = vpop.f32.mrb[2].mxu0  ;;  %v1295_v50 = vpop.f32.mrb[2].mxu1  ;;  %v1239_v36 = vld [vmem:[%s1643_s4 + $0x10] sm:$0xff] (!%p1127_p11)  }
 0x128   : > { %734 = vst [vmem:[#allocation2 + $0x10] sm:$0xff] %v718_v41  ;;  %742 = vst [vmem:[#allocation2 + $0x50] sm:$0xff] %v726_v42  ;;  %v719_v51 = vadd.f32 %v1287_v49, %v478_v39  ;;  %v727_v52 = vadd.f32 %v1295_v50, %v486_v40  ;;  %v656_v53 = vpop.f32.mrb[3].mxu0  ;;  %v688_v54 = vpop.f32.mrb[3].mxu1  ;;  %v1177_v50 = vunpack.c.h.bf16 (!%p1127_p11), %v1239_v36 }
 0x129   : > { %732 = vst [vmem:[#allocation2] sm:$0xff] %v716_v47  ;;  %740 = vst [vmem:[#allocation2 + $0x40] sm:$0xff] %v724_v48  ;;  %v717_v55 = vadd.f32 %v656_v53, %v476_v45  ;;  %v725_v56 = vadd.f32 %v688_v54, %v484_v46  ;;  %v1176_v45 = vunpack.c.l.bf16 (!%p1127_p11), %v1239_v36 }
 0x12a   : > { %735 = vst [vmem:[#allocation2 + $0x18] sm:$0xff] %v719_v51  ;;  %743 = vst [vmem:[#allocation2 + $0x58] sm:$0xff] %v727_v52  ;;  %v1240_v51 = vld [vmem:[%s1643_s4 + $0x18] sm:$0xff] (!%p1127_p11)  }
 0x12b   : > { %733 = vst [vmem:[#allocation2 + $0x8] sm:$0xff] %v717_v55  ;;  %741 = vst [vmem:[#allocation2 + $0x48] sm:$0xff] %v725_v56 }
 0x12d   : > { %v1290_v61 = vpop.f32.mrb[4].mxu0  ;;  %v1298_v62 = vpop.f32.mrb[4].mxu1  ;;  %751 = sbr.rel (%p1127_p11) target bundleno = 332 (0x14c), region = 89 }
 0x12e   : > { %v722_v1 = vadd.f32 %v1290_v61, %v481_v57  ;;  %v730_v2 = vadd.f32 %v1298_v62, %v489_v58  ;;  %v669_v3 = vpop.f32.mrb[5].mxu0  ;;  %v701_v4 = vpop.f32.mrb[5].mxu1 }
 0x12f   : > { %v720_v7 = vadd.f32 %v669_v3, %v479_v59  ;;  %v728_v8 = vadd.f32 %v701_v4, %v487_v60  ;;  %v1291_v9 = vpop.f32.mrb[6].mxu0  ;;  %v1299_v10 = vpop.f32.mrb[6].mxu1  ;;  %v754_v24 = vld [vmem:[#allocation2 + $0x10] sm:$0xff] (!%p1127_p11) }
 0x130   : > { %738 = vst [vmem:[#allocation2 + $0x30] sm:$0xff] %v722_v1  ;;  %746 = vst [vmem:[#allocation2 + $0x70] sm:$0xff] %v730_v2  ;;  %v723_v11 = vadd.f32 %v1291_v9, %v482_v63  ;;  %v731_v12 = vadd.f32 %v1299_v10, %v490_v0  ;;  %v672_v13 = vpop.f32.mrb[7].mxu0  ;;  %v704_v14 = vpop.f32.mrb[7].mxu1  ;;  %v752_v17 = vld [vmem:[#allocation2] sm:$0xff] (!%p1127_p11)  ;;  %v777_v28 = vmul.f32 (!%p1127_p11), %v1537_v19, %v754_v24  ;;  %v1180_v1 = vunpack.c.l.bf16 (!%p1127_p11), %v1240_v51 }
 0x131   : > { %736 = vst [vmem:[#allocation2 + $0x20] sm:$0xff] %v720_v7  ;;  %744 = vst [vmem:[#allocation2 + $0x60] sm:$0xff] %v728_v8  ;;  %v721_v15 = vadd.f32 %v672_v13, %v480_v5  ;;  %v729_v16 = vadd.f32 %v704_v14, %v488_v6  ;;  %v775_v20 = vmul.f32 (!%p1127_p11), %v1537_v19, %v752_v17  ;;  %v755_v27 = vld [vmem:[#allocation2 + $0x18] sm:$0xff] (!%p1127_p11)  ;;  %v760_v60 = vld [vmem:[#allocation2 + $0x40] sm:$0xff] (!%p1127_p11)  ;;  %v1181_v6 = vunpack.c.h.bf16 (!%p1127_p11), %v1240_v51 }
 0x132   : > { %739 = vst [vmem:[#allocation2 + $0x38] sm:$0xff] %v723_v11  ;;  %747 = vst [vmem:[#allocation2 + $0x78] sm:$0xff] %v731_v12  ;;  %v753_v18 = vld [vmem:[#allocation2 + $0x8] sm:$0xff] (!%p1127_p11)  ;;  %v778_v33 = vmul.f32 (!%p1127_p11), %v1537_v19, %v755_v27  ;;  %v800_v37 = vadd.f32 (!%p1127_p11), %v1544_v22, %v777_v28  ;;  %v1241_v2 = vld [vmem:[%s1643_s4 + $0x20] sm:$0xff] (!%p1127_p11)   ;;  %v783_v10 = vmul.f32 (!%p1127_p11), %v1537_v19, %v760_v60 }
 0x133   : > { %737 = vst [vmem:[#allocation2 + $0x28] sm:$0xff] %v721_v15  ;;  %745 = vst [vmem:[#allocation2 + $0x68] sm:$0xff] %v729_v16  ;;  %v776_v21 = vmul.f32 (!%p1127_p11), %v1537_v19, %v753_v18  ;;  %v798_v31 = vadd.f32 (!%p1127_p11), %v1544_v22, %v775_v20  ;;  %v761_v61 = vld [vmem:[#allocation2 + $0x48] sm:$0xff] (!%p1127_p11)  ;;  %v762_v7 = vld [vmem:[#allocation2 + $0x50] sm:$0xff] (!%p1127_p11)  ;;  %v1184_v16 = vunpack.c.l.bf16 (!%p1127_p11), %v1241_v2  ;;  %v1185_v17 = vunpack.c.h.bf16 (!%p1127_p11), %v1241_v2 }
 0x134   : > { %v801_v44 = vadd.f32 %v1544_v22, %v778_v33  ;;  %v848_v47 = vadd.f32 %v1172_v34, %v800_v37  ;;  %v784_v11 = vmul.f32 %v1537_v19, %v761_v61  ;;  %v763_v12 = vld [vmem:[#allocation2 + $0x58] sm:$0xff]  ;;  %v1242_v13 = vld [vmem:[%s1643_s4 + $0x28] sm:$0xff]   ;;  %v785_v24 = vmul.f32 %v1537_v19, %v762_v7 }
 0x135   : > { %v799_v32 = vadd.f32 %v1544_v22, %v776_v21  ;;  %v846_v42 = vadd.f32 %v1168_v25, %v798_v31  ;;  %v806_v21 = vadd.f32 %v1544_v22, %v783_v10  ;;  %v786_v28 = vmul.f32 %v1537_v19, %v763_v12 }
 0x136   : > { %v849_v54 = vadd.f32 %v1173_v38, %v801_v44  ;;  %v864_v56 = vmax.f32 %v848_v47, 0.0  ;;  %v807_v23 = vadd.f32 %v1544_v22, %v784_v11  ;;  %v1188_v29 = vunpack.c.l.bf16 %v1242_v13 }
 0x137   : > { %v758_v41 = vld [vmem:[#allocation2 + $0x30] sm:$0xff]  ;;  %v847_v43 = vadd.f32 %v1169_v26, %v799_v32  ;;  %v862_v52 = vmax.f32 %v846_v42, 0.0  ;;  %v854_v31 = vadd.f32 %v1184_v16, %v806_v21  ;;  %v808_v33 = vadd.f32 %v1544_v22, %v785_v24 }
 0x138   : > { %v756_v30 = vld [vmem:[#allocation2 + $0x20] sm:$0xff]  ;;  %v781_v55 = vmul.f32 %v1537_v19, %v758_v41  ;;  %v865_v63 = vmax.f32 %v849_v54, 0.0  ;;  %v1243_v26 = vld [vmem:[%s1643_s4 + $0x30] sm:$0xff]   ;;  %v855_v32 = vadd.f32 %v1185_v17, %v807_v23  ;;  %v809_v37 = vadd.f32 %v1544_v22, %v786_v28 }
 0x139   : > { %v779_v39 = vmul.f32 %v1537_v19, %v756_v30  ;;  %v759_v46 = vld [vmem:[#allocation2 + $0x38] sm:$0xff]  ;;  %v863_v53 = vmax.f32 %v847_v43, 0.0  ;;  %v764_v18 = vld [vmem:[#allocation2 + $0x60] sm:$0xff]  ;;  %v1189_v30 = vunpack.c.h.bf16 %v1242_v13  ;;  %v870_v41 = vmax.f32 %v854_v31, 0.0 }
 0x13a   : > { %v757_v35 = vld [vmem:[#allocation2 + $0x28] sm:$0xff]  ;;  %v782_v59 = vmul.f32 %v1537_v19, %v759_v46  ;;  %v804_v0 = vadd.f32 %v1544_v22, %v781_v55  ;;  %v1206_v8 = vpack.c.bf16 %v865_v63, %v864_v56  ;;  %v787_v34 = vmul.f32 %v1537_v19, %v764_v18 }
 0x13b   : > { %v780_v40 = vmul.f32 %v1537_v19, %v757_v35  ;;  %v802_v48 = vadd.f32 %v1544_v22, %v779_v39  ;;  %v1201_v62 = vpack.c.bf16 %v863_v53, %v862_v52  ;;  %v765_v25 = vld [vmem:[#allocation2 + $0x68] sm:$0xff]  ;;  %v766_v35 = vld [vmem:[#allocation2 + $0x70] sm:$0xff]  ;;  %v1192_v39 = vunpack.c.l.bf16 %v1243_v26 }
 0x13c   : > { %v805_v5 = vadd.f32 %v1544_v22, %v782_v59  ;;  %v852_v9 = vadd.f32 %v1180_v1, %v804_v0  ;;  %1245 = vst [vmem:[%s1644_s5 + $0x8] sm:$0xff] %v1206_v8   ;;  %v788_v38 = vmul.f32 %v1537_v19, %v765_v25  ;;  %v871_v42 = vmax.f32 %v855_v32, 0.0 }
 0x13d   : > { %v803_v49 = vadd.f32 %v1544_v22, %v780_v40  ;;  %v850_v57 = vadd.f32 %v1176_v45, %v802_v48  ;;  %1202 = vst [vmem:[%s1644_s5] sm:$0xff] %v1201_v62   ;;  %v767_v40 = vld [vmem:[#allocation2 + $0x78] sm:$0xff]  ;;  %v856_v43 = vadd.f32 %v1188_v29, %v808_v33  ;;  %v810_v44 = vadd.f32 %v1544_v22, %v787_v34 }
 0x13e   : > { %v853_v15 = vadd.f32 %v1181_v6, %v805_v5  ;;  %v868_v20 = vmax.f32 %v852_v9, 0.0  ;;  %v1244_v45 = vld [vmem:[%s1643_s4 + $0x38] sm:$0xff]   ;;  %v857_v46 = vadd.f32 %v1189_v30, %v809_v37  ;;  %v811_v47 = vadd.f32 %v1544_v22, %v788_v38 }
 0x13f   : > { %v851_v58 = vadd.f32 %v1177_v50, %v803_v49  ;;  %v866_v3 = vmax.f32 %v850_v57, 0.0  ;;  %v1193_v48 = vunpack.c.h.bf16 %v1243_v26  ;;  %v789_v49 = vmul.f32 %v1537_v19, %v766_v35 }
 0x140   : > { %v869_v27 = vmax.f32 %v853_v15, 0.0  ;;  %v1221_v50 = vpack.c.bf16 %v871_v42, %v870_v41  ;;  %v872_v51 = vmax.f32 %v856_v43, 0.0  ;;  %v858_v52 = vadd.f32 %v1192_v39, %v810_v44 }
 0x141   : > { %v867_v4 = vmax.f32 %v851_v58, 0.0  ;;  %v790_v53 = vmul.f32 %v1537_v19, %v767_v40  ;;  %v873_v54 = vmax.f32 %v857_v46, 0.0  ;;  %v859_v55 = vadd.f32 %v1193_v48, %v811_v47 }
 0x142   : > { %v1216_v36 = vpack.c.bf16 %v869_v27, %v868_v20  ;;  %v812_v56 = vadd.f32 %v1544_v22, %v789_v49  ;;  %v1196_v57 = vunpack.c.l.bf16 %v1244_v45  ;;  %1248 = vst [vmem:[%s1644_s5 + $0x20] sm:$0xff] %v1221_v50   ;;  %v874_v58 = vmax.f32 %v858_v52, 0.0 }
 0x143   : > { %v1211_v14 = vpack.c.bf16 %v867_v4, %v866_v3  ;;  %v813_v59 = vadd.f32 %v1544_v22, %v790_v53  ;;  %v1197_v60 = vunpack.c.h.bf16 %v1244_v45  ;;  %v1226_v61 = vpack.c.bf16 %v873_v54, %v872_v51 }
 0x144   : > { %1247 = vst [vmem:[%s1644_s5 + $0x18] sm:$0xff] %v1216_v36   ;;  %v875_v62 = vmax.f32 %v859_v55, 0.0  ;;  %v860_v63 = vadd.f32 %v1196_v57, %v812_v56 }
 0x145   : > { %1246 = vst [vmem:[%s1644_s5 + $0x10] sm:$0xff] %v1211_v14   ;;  %v861_v0 = vadd.f32 %v1197_v60, %v813_v59  ;;  %1249 = vst [vmem:[%s1644_s5 + $0x28] sm:$0xff] %v1226_v61  }
 0x146   : > { %v1231_v19 = vpack.c.bf16 %v875_v62, %v874_v58  ;;  %v876_v1 = vmax.f32 %v860_v63, 0.0 }
 0x147   : > { %v877_v2 = vmax.f32 %v861_v0, 0.0 }
 0x148   : > { %1250 = vst [vmem:[%s1644_s5 + $0x30] sm:$0xff] %v1231_v19  }
 0x149   : > { %v1236_v3 = vpack.c.bf16 %v877_v2, %v876_v1 }
 0x14b   : > { %1251 = vst [vmem:[%s1644_s5 + $0x38] sm:$0xff] %v1236_v3  }
 0x14c PF: > { %s15_s22 = sadd.s32 1, %s1411_s22   ;;  %s1645_s18 = smov %s1399_s19 }
 0x14d   : > { %p12_p12 = scmp.ge.s32.totalorder %s15_s22, 7   ;;  %s1646_s19 = smov %s1479_s26 }
 0x14e   : > { %s1647_s20 = smov %s1407_s21  ;;  %s1648_s21 = smov %s1650_s23 }
 0x14f   :  { %14 = sbr.rel (!%p12_p12) target bundleno = 3 (0x3), region = 136 }

// kernel: resnet_forward.22
= control target key start
LH: loop header
LB: loop body
LE: loop exit
PB: predicated region body
PF: predicated region fallthrough
CT: control target
= control target key end

     0   :  { %s867_s15 = smov 0   ;;  %s869_s16 = smov 0   ;;  %s963_s0 = inlined_call_operand.vmem [shape: bf16[32,640], index: 0, kind: input, shape index: {}]   ;;  %s964_s1 = inlined_call_operand.vmem [shape: bf16[640,128], index: 1, kind: input, shape index: {}]   ;;  %s965_s2 = inlined_call_operand.vmem [shape: f32[1,128], index: 2, kind: input, shape index: {}]   ;;  %s966_s3 = inlined_call_operand.vmem [shape: f32[1,128], index: 3, kind: input, shape index: {}]   ;;  %s967_s4 = inlined_call_operand.vmem [shape: bf16[32,128], index: 4, kind: output, shape index: {}]  }
   0x1   :  { %s871_s17 = smov 0   ;;  %s873_s18 = smov 0  }
   0x2   :  { %s875_s19 = smov 0  }
   0x3 LB: > { %s26_s20 = sadd.s32 1, %s835_s18  ;;  %p49_p1 = scmp.ne.s32.totalorder %s827_s16, %s823_s15  ;;  %s839_s19 = sphi %s875_s19, %s14_s19   ;;  %s835_s18 = sphi %s873_s18, %s971_s18   ;;  %s831_s17 = sphi %s871_s17, %s970_s17   ;;  %s827_s16 = sphi %s869_s16, %s969_s16   ;;  %s823_s15 = sphi %s867_s15, %s968_s15  }
   0x4   : > { %p27_p0 = scmp.ge.s32.totalorder %s26_s20, 5  ;;  %p50_p2 = scmp.eq.s32.totalorder %s839_s19, 0 }
   0x5   : > { %s42_s22 = sadd.s32 1, %s827_s16  ;;  %p676_p5 = scmp.ge.s32.totalorder %s839_s19, 5 }
   0x6   : > { %s973_s20 = smov (%p27_p0, %s26_s20), 0  ;;  %p51_p3 = por %p50_p2, %p49_p1 }
   0x7   : > { %s38_s21 = ssub.s32 %s835_s18, %s973_s20  ;;  %195 = sbr.rel (%p676_p5) target bundleno = 21 (0x15), region = 24 }
   0x8   : > { %p40_p4 = scmp.eq.s32.totalorder %s38_s21, 0 }
   0xa   : > { %s902_s23 = scalar_select %p40_p4, %s827_s16, %s42_s22  }
   0xe   : > { %198 = sbr.rel (!%p51_p3) target bundleno = 21 (0x15), region = 28  ;;  %s200_s24 = sand.u32 (%p51_p3), 1, %s827_s16  }
   0xf   : > { %s678_s25 = sshll.u32 (%p51_p3), %s835_s18, 2  ;;  %s677_s26 = sshll.u32 (%p51_p3), %s200_s24, 4 }
  0x10   : > { %s207_s29 = scalar_lea.vmem (%p51_p3), %s963_s0, %s678_s25  ;;  %s202_s30 = scalar_lea.vmem (%p51_p3), [#allocation3], %s677_s26 }
  0x11   : > { %v223_v0 = vld [vmem:[%s207_s29] sm:$0xf] (%p51_p3)  ;;  %v225_v1 = vld [vmem:[%s207_s29 + $0x14] sm:$0xf] (%p51_p3)  ;;  %v227_v2 = vld [vmem:[%s207_s29 + $0x28] sm:$0xf] (%p51_p3) }
  0x12   : > { %224 = vst [vmem:[%s202_s30] sm:$0xf] (%p51_p3), %v223_v0  ;;  %226 = vst [vmem:[%s202_s30 + $0x4] sm:$0xf] (%p51_p3), %v225_v1  ;;  %v229_v3 = vld [vmem:[%s207_s29 + $0x3c] sm:$0xf] (%p51_p3) }
  0x13   : > { %228 = vst [vmem:[%s202_s30 + $0x8] sm:$0xf] (%p51_p3), %v227_v2  ;;  %230 = vst [vmem:[%s202_s30 + $0xc] sm:$0xf] (%p51_p3), %v229_v3 }
  0x15 PF: > { %p679_p6 = scmp.ge.s32.totalorder %s839_s19, 1  ;;  %p272_p7 = scmp.lt.s32.totalorder %s839_s19, 6 }
  0x17   : > { %p273_p8 = pnand %p679_p6, %p272_p7 }
  0x18   : > { %s279_s5 = sand.u32 (!%p273_p8), 1, %s823_s15   ;;  %s681_s6 = sshll.u32 (!%p273_p8), %s831_s17, 4 }
  0x19   : > { %276 = sbr.rel (%p273_p8) target bundleno = 306 (0x132), region = 73  ;;  %s914_s7 = sshll.u32 (!%p273_p8), %s279_s5, 4 }
  0x1a   : > { %p323_p9 = scmp.lt.s32.totalorder (!%p273_p8), %s681_s6, 79  ;;  %s281_s12 = scalar_lea.vmem (!%p273_p8), [#allocation3], %s914_s7 }
  0x1b   : > { %p683_p10 = scmp.ne.s32.totalorder (!%p273_p8), %s831_s17, 0 }
  0x20   : > { %s975_s6 = smov (!%p323_p9, %s681_s6), 79  ;;  %350 = sbr.rel (%p683_p10) target bundleno = 39 (0x27), region = 81 }
  0x21   : > { %s682_s8 = sshll.u32 %s975_s6, 2  ;;  %v841_v4 = vmov (!%p683_p10), 0.0  }
  0x22   : > { %s919_s11 = scalar_lea.vmem %s964_s1, %s682_s8  ;;  %351 = vst [vmem:[#allocation2] sm:$0xff] (!%p683_p10), %v841_v4  ;;  %352 = vst [vmem:[#allocation2 + $0x8] sm:$0xff] (!%p683_p10), %v841_v4 }
  0x23   : > { %353 = vst [vmem:[#allocation2 + $0x10] sm:$0xff] (!%p683_p10), %v841_v4  ;;  %354 = vst [vmem:[#allocation2 + $0x18] sm:$0xff] (!%p683_p10), %v841_v4 }
  0x27 PF: > { %v791_v5 = vld [vmem:[%s919_s11] sm:$0xff]   ;;  %v792_v6 = vld [vmem:[%s919_s11 + $0x8] sm:$0xff]   ;;  %v793_v7 = vld [vmem:[%s919_s11 + $0x10] sm:$0xff]   ;;  %p694_p11 = scmp.ne.s32.totalorder %s831_s17, 4 }
  0x28   : > { %730 = vmatprep.subr.bf16.mxu0 %v791_v5  ;;  %v794_v8 = vld [vmem:[%s919_s11 + $0x18] sm:$0xff]   ;;  %v799_v9 = vld [vmem:[%s281_s12] sm:$0xff]   ;;  %v796_v11 = vld [vmem:[%s919_s11 + $0x28] sm:$0xff]  }
  0x29   : > { %731 = vmatpush3.bf16.msra.mxu0 %v791_v5  ;;  %746 = vmatprep.mubr.bf16.mxu0 %v799_v9  ;;  %v795_v10 = vld [vmem:[%s919_s11 + $0x20] sm:$0xff]   ;;  %v797_v12 = vld [vmem:[%s919_s11 + $0x30] sm:$0xff]   ;;  %v798_v13 = vld [vmem:[%s919_s11 + $0x38] sm:$0xff]  }
  0x2a   : > { %732 = vmatprep.subr.bf16.mxu0 %v792_v6  ;;  %v800_v14 = vld [vmem:[%s281_s12 + $0x8] sm:$0xff]   ;;  %v357_v15 = vld [vmem:[#allocation2 + $0x10] sm:$0xff]  ;;  %v355_v16 = vld [vmem:[#allocation2] sm:$0xff] }
  0x2b   : > { %v358_v18 = vld [vmem:[#allocation2 + $0x18] sm:$0xff]  ;;  %v356_v21 = vld [vmem:[#allocation2 + $0x8] sm:$0xff]  ;;  %v695_v29 = vld [vmem:[%s965_s2] ss:$0 sm:$0xff] (!%p694_p11) }
  0x2c   : > { %v696_v32 = vld [vmem:[%s966_s3] ss:$0 sm:$0xff] (!%p694_p11) }
  0x2d   : > { %733 = vmatpush3.bf16.msra.mxu0 %v792_v6 }
  0x2e   : > { %734 = vmatprep.subr.bf16.mxu0 %v793_v7 }
  0x31   : > { %735 = vmatpush3.bf16.msra.mxu0 %v793_v7 }
  0x32   : > { %736 = vmatprep.subr.bf16.mxu0 %v794_v8 }
  0x35   : > { %737 = vmatpush3.bf16.msra.mxu0 %v794_v8 }
  0x36   : > { %738 = vmatprep.subr.bf16.mxu0 %v795_v10 }
  0x39   : > { %739 = vmatpush3.bf16.msra.mxu0 %v795_v10 }
  0x3a   : > { %740 = vmatprep.subr.bf16.mxu0 %v796_v11 }
  0x3d   : > { %741 = vmatpush3.bf16.msra.mxu0 %v796_v11 }
  0x3e   : > { %742 = vmatprep.subr.bf16.mxu0 %v797_v12 }
  0x41   : > { %743 = vmatpush3.bf16.msra.mxu0 %v797_v12 }
  0x42   : > { %744 = vmatprep.subr.bf16.mxu0 %v798_v13 }
  0x45   : > { %745 = vmatpush3.bf16.msra.mxu0 %v798_v13 }
  0x48   : > { %747 = vmatmul.mubr.bf16.vlgmr.msra.gmra.mrb[0].mxu0 %v800_v14 }
 0x11b   : > { %v748_v17 = vpop.f32.mrb[0].mxu0  ;;  %499 = sbr.rel (%p694_p11) target bundleno = 306 (0x132), region = 85 }
 0x11c   : > { %v490_v19 = vadd.f32 %v748_v17, %v357_v15  ;;  %v473_v20 = vpop.f32.mrb[1].mxu0 }
 0x11d   : > { %v488_v22 = vadd.f32 %v473_v20, %v355_v16  ;;  %v749_v23 = vpop.f32.mrb[2].mxu0 }
 0x11e   : > { %494 = vst [vmem:[#allocation2 + $0x10] sm:$0xff] %v490_v19  ;;  %v491_v24 = vadd.f32 %v749_v23, %v358_v18  ;;  %v476_v25 = vpop.f32.mrb[3].mxu0 }
 0x11f   : > { %492 = vst [vmem:[#allocation2] sm:$0xff] %v488_v22  ;;  %v489_v26 = vadd.f32 %v476_v25, %v356_v21 }
 0x120   : > { %495 = vst [vmem:[#allocation2 + $0x18] sm:$0xff] %v491_v24 }
 0x121   : > { %493 = vst [vmem:[#allocation2 + $0x8] sm:$0xff] %v489_v26 }
 0x125   : > { %v502_v33 = vld [vmem:[#allocation2 + $0x10] sm:$0xff] }
 0x126   : > { %v500_v27 = vld [vmem:[#allocation2] sm:$0xff]  ;;  %v513_v35 = vmul.f32 %v695_v29, %v502_v33 }
 0x127   : > { %v511_v30 = vmul.f32 %v695_v29, %v500_v27  ;;  %v503_v34 = vld [vmem:[#allocation2 + $0x18] sm:$0xff] }
 0x128   : > { %v501_v28 = vld [vmem:[#allocation2 + $0x8] sm:$0xff]  ;;  %v514_v36 = vmul.f32 %v695_v29, %v503_v34  ;;  %v524_v39 = vadd.f32 %v696_v32, %v513_v35 }
 0x129   : > { %v512_v31 = vmul.f32 %v695_v29, %v501_v28  ;;  %v522_v37 = vadd.f32 %v696_v32, %v511_v30 }
 0x12a   : > { %v525_v40 = vadd.f32 %v696_v32, %v514_v36  ;;  %v528_v43 = vmax.f32 %v524_v39, 0.0 }
 0x12b   : > { %v523_v38 = vadd.f32 %v696_v32, %v512_v31  ;;  %v526_v41 = vmax.f32 %v522_v37, 0.0 }
 0x12c   : > { %v529_v44 = vmax.f32 %v525_v40, 0.0 }
 0x12d   : > { %v527_v42 = vmax.f32 %v523_v38, 0.0 }
 0x12e   : > { %v717_v46 = vpack.c.bf16 %v529_v44, %v528_v43 }
 0x12f   : > { %v712_v45 = vpack.c.bf16 %v527_v42, %v526_v41 }
 0x130   : > { %719 = vst [vmem:[%s967_s4 + $0x8] sm:$0xff] %v717_v46  }
 0x131   : > { %713 = vst [vmem:[%s967_s4] sm:$0xff] %v712_v45  }
 0x132 PF: > { %s14_s19 = sadd.s32 1, %s839_s19   ;;  %s968_s15 = smov %s827_s16 }
 0x133   : > { %p11_p12 = scmp.ge.s32.totalorder %s14_s19, 7   ;;  %s969_s16 = smov %s902_s23 }
 0x134   : > { %s970_s17 = smov %s835_s18  ;;  %s971_s18 = smov %s973_s20 }
 0x135   :  { %13 = sbr.rel (!%p11_p12) target bundleno = 3 (0x3), region = 129 }

// kernel: resnet_forward.23
= control target key start
LH: loop header
LB: loop body
LE: loop exit
PB: predicated region body
PF: predicated region fallthrough
CT: control target
= control target key end

     0   :  { %s358_s1 = inlined_call_operand.vmem [shape: bf16[128,128], index: 1, kind: input, shape index: {}]   ;;  %s359_s0 = inlined_call_operand.vmem [shape: bf16[32,128], index: 0, kind: input, shape index: {}]   ;;  %s360_s2 = inlined_call_operand.vmem [shape: f32[1,128], index: 2, kind: input, shape index: {}]   ;;  %s361_s3 = inlined_call_operand.vmem [shape: f32[1,128], index: 3, kind: input, shape index: {}]   ;;  %s362_s4 = inlined_call_operand.vmem [shape: bf16[32,128], index: 4, kind: output, shape index: {}]  }
   0x1   :  { %v281_v0 = vld [vmem:[%s358_s1] sm:$0xff]   ;;  %v282_v1 = vld [vmem:[%s358_s1 + $0x8] sm:$0xff]   ;;  %v283_v2 = vld [vmem:[%s358_s1 + $0x10] sm:$0xff]  }
   0x2   :  { %261 = vmatprep.subr.bf16.mxu0 %v281_v0  ;;  %v284_v3 = vld [vmem:[%s358_s1 + $0x18] sm:$0xff]   ;;  %v289_v4 = vld [vmem:[%s359_s0] sm:$0xff]   ;;  %v286_v6 = vld [vmem:[%s358_s1 + $0x28] sm:$0xff]  }
   0x3   :  { %262 = vmatpush3.bf16.msra.mxu0 %v281_v0  ;;  %277 = vmatprep.mubr.bf16.mxu0 %v289_v4  ;;  %v285_v5 = vld [vmem:[%s358_s1 + $0x20] sm:$0xff]   ;;  %v287_v7 = vld [vmem:[%s358_s1 + $0x30] sm:$0xff]   ;;  %v288_v8 = vld [vmem:[%s358_s1 + $0x38] sm:$0xff]  }
   0x4   :  { %263 = vmatprep.subr.bf16.mxu0 %v282_v1  ;;  %v290_v9 = vld [vmem:[%s359_s0 + $0x8] sm:$0xff]   ;;  %v230_v10 = vld [vmem:[%s360_s2] ss:$0 sm:$0xff] }
   0x5   :  { %v231_v14 = vld [vmem:[%s361_s3] ss:$0 sm:$0xff] }
   0x7   :  { %264 = vmatpush3.bf16.msra.mxu0 %v282_v1 }
   0x8   :  { %265 = vmatprep.subr.bf16.mxu0 %v283_v2 }
   0xb   :  { %266 = vmatpush3.bf16.msra.mxu0 %v283_v2 }
   0xc   :  { %267 = vmatprep.subr.bf16.mxu0 %v284_v3 }
   0xf   :  { %268 = vmatpush3.bf16.msra.mxu0 %v284_v3 }
  0x10   :  { %269 = vmatprep.subr.bf16.mxu0 %v285_v5 }
  0x13   :  { %270 = vmatpush3.bf16.msra.mxu0 %v285_v5 }
  0x14   :  { %271 = vmatprep.subr.bf16.mxu0 %v286_v6 }
  0x17   :  { %272 = vmatpush3.bf16.msra.mxu0 %v286_v6 }
  0x18   :  { %273 = vmatprep.subr.bf16.mxu0 %v287_v7 }
  0x1b   :  { %274 = vmatpush3.bf16.msra.mxu0 %v287_v7 }
  0x1c   :  { %275 = vmatprep.subr.bf16.mxu0 %v288_v8 }
  0x1f   :  { %276 = vmatpush3.bf16.msra.mxu0 %v288_v8 }
  0x22   :  { %278 = vmatmul.mubr.bf16.vlgmr.msra.gmra.mrb[0].mxu0 %v290_v9 }
  0xf5   :  { %v279_v11 = vpop.f32.mrb[0].mxu0 }
  0xf6   :  { %v183_v12 = vmul.f32 %v279_v11, %v230_v10  ;;  %v144_v13 = vpop.f32.mrb[1].mxu0 }
  0xf7   :  { %v181_v15 = vmul.f32 %v230_v10, %v144_v13  ;;  %v280_v16 = vpop.f32.mrb[2].mxu0 }
  0xf8   :  { %v184_v17 = vmul.f32 %v280_v16, %v230_v10  ;;  %v147_v18 = vpop.f32.mrb[3].mxu0  ;;  %v194_v20 = vadd.f32 %v231_v14, %v183_v12 }
  0xf9   :  { %v182_v19 = vmul.f32 %v230_v10, %v147_v18  ;;  %v192_v22 = vadd.f32 %v231_v14, %v181_v15 }
  0xfa   :  { %v195_v21 = vadd.f32 %v231_v14, %v184_v17 }
  0xfb   :  { %v193_v23 = vadd.f32 %v231_v14, %v182_v19 }
  0xfc   :  { %v248_v24 = vpack.c.bf16 %v195_v21, %v194_v20 }
  0xfd   :  { %v243_v25 = vpack.c.bf16 %v193_v23, %v192_v22 }
  0xfe   :  { %250 = vst [vmem:[%s362_s4 + $0x8] sm:$0xff] %v248_v24  }
  0xff   :  { %244 = vst [vmem:[%s362_s4] sm:$0xff] %v243_v25  }

// kernel: resnet_forward.24
= control target key start
LH: loop header
LB: loop body
LE: loop exit
PB: predicated region body
PF: predicated region fallthrough
CT: control target
= control target key end

     0   :  { %s1247_s18 = smov 0   ;;  %s1249_s19 = smov 0   ;;  %s1366_s0 = inlined_call_operand.vmem [shape: bf16[32,1152], index: 0, kind: input, shape index: {}]   ;;  %s1367_s1 = inlined_call_operand.vmem [shape: bf16[1152,128], index: 1, kind: input, shape index: {}]   ;;  %s1368_s2 = inlined_call_operand.vmem [shape: f32[1,128], index: 2, kind: input, shape index: {}]   ;;  %s1369_s3 = inlined_call_operand.vmem [shape: f32[1,128], index: 3, kind: input, shape index: {}]   ;;  %s1370_s4 = inlined_call_operand.vmem [shape: bf16[32,128], index: 4, kind: input, shape index: {}]   ;;  %s1371_s5 = inlined_call_operand.vmem [shape: bf16[32,128], index: 5, kind: output, shape index: {}]  }
   0x1   :  { %s1251_s20 = smov 0   ;;  %s1253_s21 = smov 0  }
   0x2   :  { %s1255_s22 = smov 0  }
   0x3 LB: > { %s27_s23 = sadd.s32 1, %s1210_s21  ;;  %p50_p1 = scmp.ne.s32.totalorder %s1202_s19, %s1198_s18  ;;  %s1214_s22 = sphi %s1255_s22, %s15_s22   ;;  %s1210_s21 = sphi %s1253_s21, %s1375_s21   ;;  %s1206_s20 = sphi %s1251_s20, %s1374_s20   ;;  %s1202_s19 = sphi %s1249_s19, %s1373_s19   ;;  %s1198_s18 = sphi %s1247_s18, %s1372_s18  }
   0x4   : > { %p28_p0 = scmp.ge.s32.totalorder %s27_s23, 3  ;;  %p51_p2 = scmp.eq.s32.totalorder %s1214_s22, 0 }
   0x5   : > { %s43_s25 = sadd.s32 1, %s1202_s19  ;;  %p964_p5 = scmp.ge.s32.totalorder %s1214_s22, 3 }
   0x6   : > { %s1377_s23 = smov (%p28_p0, %s27_s23), 0  ;;  %p52_p3 = por %p51_p2, %p50_p1 }
   0x7   : > { %s39_s24 = ssub.s32 %s1210_s21, %s1377_s23  ;;  %236 = sbr.rel (%p964_p5) target bundleno = 23 (0x17), region = 28 }
   0x8   : > { %p41_p4 = scmp.eq.s32.totalorder %s39_s24, 0 }
   0xa   : > { %s1282_s26 = scalar_select %p41_p4, %s1202_s19, %s43_s25  }
   0xe   : > { %239 = sbr.rel (!%p52_p3) target bundleno = 23 (0x17), region = 32  ;;  %s241_s27 = sand.u32 (%p52_p3), 1, %s1202_s19  }
   0xf   : > { %s1018_s28 = smul.u32 (%p52_p3), 12, %s1210_s21 }
  0x10   : > { %s1101_s29 = smul.u32 (%p52_p3), 48, %s241_s27 }
  0x11   : > { %s249_s7 = scalar_lea.vmem (%p52_p3), %s1366_s0, %s1018_s28 }
  0x12   : > { %v264_v0 = vld [vmem:[%s249_s7] sm:$0xff] (%p52_p3)  ;;  %v268_v2 = vld [vmem:[%s249_s7 + $0x48] sm:$0xff] (%p52_p3)  ;;  %s243_s8 = scalar_lea.vmem (%p52_p3), [#allocation3], %s1101_s29  ;;  %v970_v6 = vld [vmem:[%s249_s7 + $0x50] sm:$0xf] (%p52_p3) }
  0x13   : > { %v266_v1 = vld [vmem:[%s249_s7 + $0x24] sm:$0xff] (%p52_p3)  ;;  %265 = vst [vmem:[%s243_s8] sm:$0xff] (%p52_p3), %v264_v0  ;;  %269 = vst [vmem:[%s243_s8 + $0x18] sm:$0xff] (%p52_p3), %v268_v2  ;;  %v270_v3 = vld [vmem:[%s249_s7 + $0x6c] sm:$0xff] (%p52_p3) }
  0x14   : > { %267 = vst [vmem:[%s243_s8 + $0xc] sm:$0xff] (%p52_p3), %v266_v1  ;;  %v966_v4 = vld [vmem:[%s249_s7 + $0x8] sm:$0xf] (%p52_p3)  ;;  %v968_v5 = vld [vmem:[%s249_s7 + $0x2c] sm:$0xf] (%p52_p3)  ;;  %271 = vst [vmem:[%s243_s8 + $0x24] sm:$0xff] (%p52_p3), %v270_v3 }
  0x15   : > { %967 = vst [vmem:[%s243_s8 + $0x8] sm:$0xf] %v966_v4  ;;  %969 = vst [vmem:[%s243_s8 + $0x14] sm:$0xf] %v968_v5  ;;  %v972_v7 = vld [vmem:[%s249_s7 + $0x74] sm:$0xf] }
  0x16   : > { %971 = vst [vmem:[%s243_s8 + $0x20] sm:$0xf] %v970_v6  ;;  %973 = vst [vmem:[%s243_s8 + $0x2c] sm:$0xf] %v972_v7 }
  0x17 PF: > { %p974_p6 = scmp.ge.s32.totalorder %s1214_s22, 1  ;;  %p303_p7 = scmp.lt.s32.totalorder %s1214_s22, 4 }
  0x19   : > { %p304_p8 = pnand %p974_p6, %p303_p7 }
  0x1a   : > { %s310_s9 = sand.u32 (!%p304_p8), 1, %s1198_s18   ;;  %s364_s10 = smul.u32 (!%p304_p8), 48, %s1206_s20 }
  0x1b   : > { %307 = sbr.rel (%p304_p8) target bundleno = 322 (0x142), region = 62  ;;  %p976_p10 = scmp.ne.s32.totalorder (!%p304_p8), %s1206_s20, 0 }
  0x1c   : > { %s1102_s11 = smul.u32 (!%p304_p8), 48, %s310_s9  ;;  %p365_p9 = scmp.lt.s32.totalorder (!%p304_p8), %s364_s10, 143 }
  0x1e   : > { %s1299_s16 = scalar_lea.vmem (!%p304_p8), [#allocation3], %s1102_s11 }
  0x22   : > { %s1379_s10 = smov (!%p365_p9, %s364_s10), 143  ;;  %401 = sbr.rel (%p976_p10) target bundleno = 41 (0x29), region = 70 }
  0x23   : > { %s975_s12 = sshll.u32 %s1379_s10, 2  ;;  %v1216_v8 = vmov (!%p976_p10), 0.0  }
  0x24   : > { %s1297_s15 = scalar_lea.vmem %s1367_s1, %s975_s12  ;;  %402 = vst [vmem:[#allocation2] sm:$0xff] (!%p976_p10), %v1216_v8  ;;  %403 = vst [vmem:[#allocation2 + $0x8] sm:$0xff] (!%p976_p10), %v1216_v8 }
  0x25   : > { %404 = vst [vmem:[#allocation2 + $0x10] sm:$0xff] (!%p976_p10), %v1216_v8  ;;  %405 = vst [vmem:[#allocation2 + $0x18] sm:$0xff] (!%p976_p10), %v1216_v8 }
  0x29 PF: > { %v1144_v9 = vld [vmem:[%s1297_s15 + $0x40] sm:$0xff]   ;;  %v1147_v12 = vld [vmem:[%s1297_s15 + $0x48] sm:$0xff]   ;;  %v1150_v15 = vld [vmem:[%s1297_s15 + $0x50] sm:$0xff]   ;;  %p1007_p11 = scmp.ne.s32.totalorder %s1206_s20, 2 }
  0x2a   : > { %v1145_v10 = vld [vmem:[%s1297_s15] sm:$0xff]   ;;  %1043 = vmatprep.subr.bf16.mxu0 %v1144_v9  ;;  %v1148_v13 = vld [vmem:[%s1297_s15 + $0x8] sm:$0xff]   ;;  %v1151_v16 = vld [vmem:[%s1297_s15 + $0x10] sm:$0xff]  }
  0x2b   : > { %v1146_v11 = vld [vmem:[%s1297_s15 + $0x80] sm:$0xff]   ;;  %1044 = vmatpush3.bf16.msra.mxu0 %v1145_v10  ;;  %v1149_v14 = vld [vmem:[%s1297_s15 + $0x88] sm:$0xff]   ;;  %v1152_v17 = vld [vmem:[%s1297_s15 + $0x90] sm:$0xff]  }
  0x2c   : > { %1081 = vmatprep.subr.bf16.mxu1 %v1146_v11  ;;  %1045 = vmatprep.subr.bf16.mxu0 %v1147_v12  ;;  %v1153_v18 = vld [vmem:[%s1297_s15 + $0x58] sm:$0xff]   ;;  %v1156_v21 = vld [vmem:[%s1297_s15 + $0x60] sm:$0xff]   ;;  %v1159_v24 = vld [vmem:[%s1297_s15 + $0x68] sm:$0xff]  }
  0x2d   : > { %1082 = vmatpush3.bf16.msra.mxu1 %v1146_v11  ;;  %v1154_v19 = vld [vmem:[%s1297_s15 + $0x18] sm:$0xff]   ;;  %v1158_v22 = vld [vmem:[%s1297_s15 + $0xa0] sm:$0xff]   ;;  %v1161_v25 = vld [vmem:[%s1297_s15 + $0xa8] sm:$0xff]  }
  0x2e   : > { %1083 = vmatprep.subr.bf16.mxu1 %v1149_v14  ;;  %v1155_v20 = vld [vmem:[%s1297_s15 + $0x98] sm:$0xff]   ;;  %v1157_v23 = vld [vmem:[%s1297_s15 + $0x20] sm:$0xff]   ;;  %v1160_v26 = vld [vmem:[%s1297_s15 + $0x28] sm:$0xff]  }
  0x2f   : > { %1046 = vmatpush3.bf16.msra.mxu0 %v1148_v13  ;;  %v1162_v27 = vld [vmem:[%s1297_s15 + $0x70] sm:$0xff]   ;;  %v1165_v30 = vld [vmem:[%s1297_s15 + $0x78] sm:$0xff]   ;;  %v406_v45 = vld [vmem:[#allocation2] sm:$0xff] }
  0x30   : > { %1047 = vmatprep.subr.bf16.mxu0 %v1150_v15  ;;  %v1163_v28 = vld [vmem:[%s1297_s15 + $0x30] sm:$0xff]   ;;  %v1167_v31 = vld [vmem:[%s1297_s15 + $0xb8] sm:$0xff]   ;;  %v407_v50 = vld [vmem:[#allocation2 + $0x8] sm:$0xff] }
  0x31   : > { %1084 = vmatpush3.bf16.msra.mxu1 %v1149_v14  ;;  %v1164_v29 = vld [vmem:[%s1297_s15 + $0xb0] sm:$0xff]   ;;  %v1166_v34 = vld [vmem:[%s1297_s15 + $0x38] sm:$0xff]   ;;  %v1008_v5 = vld [vmem:[%s1368_s2] ss:$0 sm:$0xff] (!%p1007_p11) }
  0x32   : > { %1085 = vmatprep.subr.bf16.mxu1 %v1152_v17  ;;  %v1170_v32 = vld [vmem:[%s1299_s16 + $0x4] ss:$12 sps:$4 sm:$0xff]   ;;  %v1171_v33 = vld [vmem:[%s1299_s16 + $0x8] ss:$12 sps:$4 sm:$0xff]   ;;  %v1168_v35 = vld [vmem:[%s1299_s16] ss:$12 sps:$4 sm:$0xff]  }
  0x33   : > { %1048 = vmatpush3.bf16.msra.mxu0 %v1151_v16  ;;  %674 = vmatprep.mubr.bf16.mxu0 %v1170_v32  ;;  %v1173_v36 = vld [vmem:[%s1299_s16 + $0x1c] ss:$12 sps:$4 sm:$0xff]   ;;  %v1172_v37 = vld [vmem:[%s1299_s16 + $0x20] ss:$12 sps:$4 sm:$0xff]   ;;  %v1175_v38 = vld [vmem:[%s1299_s16 + $0x18] ss:$12 sps:$4 sm:$0xff]  }
  0x34   : > { %1049 = vmatprep.subr.bf16.mxu0 %v1153_v18  ;;  %1097 = vmatprep.mubr.bf16.mxu1 %v1171_v33  ;;  %v408_v59 = vld [vmem:[#allocation2 + $0x10] sm:$0xff]  ;;  %v409_v63 = vld [vmem:[#allocation2 + $0x18] sm:$0xff]  ;;  %v1009_v8 = vld [vmem:[%s1369_s3] ss:$0 sm:$0xff] (!%p1007_p11) }
  0x35   : > { %1086 = vmatpush3.bf16.msra.mxu1 %v1152_v17  ;;  %v1024_v9 = vld [vmem:[%s1370_s4] sm:$0xff] (!%p1007_p11)   ;;  %v1041_v15 = vld [vmem:[%s1370_s4 + $0x8] sm:$0xff] (!%p1007_p11)  }
  0x36   : > { %1087 = vmatprep.subr.bf16.mxu1 %v1155_v20  ;;  %v1025_v11 = vunpack.c.l.bf16 (!%p1007_p11), %v1024_v9  ;;  %v1026_v12 = vunpack.c.h.bf16 (!%p1007_p11), %v1024_v9 }
  0x37   : > { %1050 = vmatpush3.bf16.msra.mxu0 %v1154_v19  ;;  %v1029_v19 = vunpack.c.l.bf16 (!%p1007_p11), %v1041_v15 }
  0x38   : > { %1051 = vmatprep.subr.bf16.mxu0 %v1156_v21  ;;  %v1030_v21 = vunpack.c.h.bf16 (!%p1007_p11), %v1041_v15 }
  0x39   : > { %1088 = vmatpush3.bf16.msra.mxu1 %v1155_v20 }
  0x3a   : > { %1089 = vmatprep.subr.bf16.mxu1 %v1158_v22 }
  0x3b   : > { %1052 = vmatpush3.bf16.msra.mxu0 %v1157_v23 }
  0x3c   : > { %1053 = vmatprep.subr.bf16.mxu0 %v1159_v24 }
  0x3d   : > { %1090 = vmatpush3.bf16.msra.mxu1 %v1158_v22 }
  0x3e   : > { %1091 = vmatprep.subr.bf16.mxu1 %v1161_v25 }
  0x3f   : > { %1054 = vmatpush3.bf16.msra.mxu0 %v1160_v26 }
  0x40   : > { %1055 = vmatprep.subr.bf16.mxu0 %v1162_v27 }
  0x41   : > { %1092 = vmatpush3.bf16.msra.mxu1 %v1161_v25 }
  0x42   : > { %1093 = vmatprep.subr.bf16.mxu1 %v1164_v29 }
  0x43   : > { %1056 = vmatpush3.bf16.msra.mxu0 %v1163_v28 }
  0x44   : > { %1057 = vmatprep.subr.bf16.mxu0 %v1165_v30 }
  0x45   : > { %1094 = vmatpush3.bf16.msra.mxu1 %v1164_v29 }
  0x46   : > { %1095 = vmatprep.subr.bf16.mxu1 %v1167_v31 }
  0x47   : > { %1058 = vmatpush3.bf16.msra.mxu0 %v1166_v34 }
  0x49   : > { %1096 = vmatpush3.bf16.msra.mxu1 %v1167_v31 }
  0x4a   : > { %675 = vmatmul.mubr.bf16.vlgmr.msra.gmra.mrb[0].mxu0 %v1168_v35 }
  0x4b   : > { %682 = vmatprep.mubr.bf16.mxu0 %v1173_v36 }
  0x4c   : > { %1098 = vmatmul.mubr.bf16.vlgmr.msra.gmra.mrb[0].mxu1 %v1172_v37 }
  0x52   : > { %683 = vmatmul.mubr.bf16.gmra.mrb[4].mxu0 %v1175_v38 }
 0x11d   : > { %v1059_v39 = vpop.f32.mrb[0].mxu0 }
 0x11e   : > { %v1060_v40 = vpop.f32.mrb[1].mxu0 }
 0x11f   : > { %v1061_v41 = vadd.f32 %v1060_v40, %v1059_v39  ;;  %v1062_v42 = vpop.f32.mrb[2].mxu0  ;;  %v1099_v43 = vpop.f32.mrb[0].mxu1 }
 0x120   : > { %v1063_v44 = vpop.f32.mrb[3].mxu0  ;;  %v725_v46 = vpop.f32.mrb[1].mxu1 }
 0x121   : > { %v1064_v47 = vadd.f32 %v1063_v44, %v1062_v42  ;;  %v726_v48 = vadd.f32 %v1061_v41, %v725_v46  ;;  %v1100_v49 = vpop.f32.mrb[2].mxu1 }
 0x122   : > { %v728_v51 = vpop.f32.mrb[3].mxu1 }
 0x123   : > { %v740_v52 = vadd.f32 %v726_v48, %v406_v45  ;;  %v729_v53 = vadd.f32 %v1064_v47, %v728_v51 }
 0x125   : > { %744 = vst [vmem:[#allocation2] sm:$0xff] %v740_v52  ;;  %v741_v54 = vadd.f32 %v729_v53, %v407_v50  ;;  %v1065_v55 = vpop.f32.mrb[4].mxu0 }
 0x126   : > { %v1066_v56 = vpop.f32.mrb[5].mxu0 }
 0x127   : > { %745 = vst [vmem:[#allocation2 + $0x8] sm:$0xff] %v741_v54  ;;  %v1067_v57 = vadd.f32 %v1066_v56, %v1065_v55  ;;  %v1068_v58 = vpop.f32.mrb[6].mxu0 }
 0x128   : > { %v1069_v60 = vpop.f32.mrb[7].mxu0 }
 0x129   : > { %v734_v61 = vadd.f32 %v1099_v43, %v1067_v57  ;;  %v1070_v62 = vadd.f32 %v1069_v60, %v1068_v58  ;;  %751 = sbr.rel (%p1007_p11) target bundleno = 322 (0x142), region = 74 }
 0x12b   : > { %v742_v0 = vadd.f32 %v734_v61, %v408_v59  ;;  %v737_v1 = vadd.f32 %v1100_v49, %v1070_v62 }
 0x12c   : > { %v752_v3 = vld [vmem:[#allocation2] sm:$0xff] (!%p1007_p11) }
 0x12d   : > { %746 = vst [vmem:[#allocation2 + $0x10] sm:$0xff] %v742_v0  ;;  %v743_v2 = vadd.f32 %v737_v1, %v409_v63  ;;  %v763_v6 = vmul.f32 (!%p1007_p11), %v1008_v5, %v752_v3 }
 0x12e   : > { %v753_v4 = vld [vmem:[#allocation2 + $0x8] sm:$0xff] (!%p1007_p11) }
 0x12f   : > { %747 = vst [vmem:[#allocation2 + $0x18] sm:$0xff] %v743_v2  ;;  %v764_v7 = vmul.f32 (!%p1007_p11), %v1008_v5, %v753_v4  ;;  %v774_v16 = vadd.f32 (!%p1007_p11), %v1009_v8, %v763_v6 }
 0x131   : > { %v775_v17 = vadd.f32 %v1009_v8, %v764_v7  ;;  %v786_v22 = vadd.f32 %v1025_v11, %v774_v16 }
 0x133   : > { %v787_v23 = vadd.f32 %v1026_v12, %v775_v17  ;;  %v790_v26 = vmax.f32 %v786_v22, 0.0 }
 0x134   : > { %v754_v10 = vld [vmem:[#allocation2 + $0x10] sm:$0xff] }
 0x135   : > { %v765_v14 = vmul.f32 %v1008_v5, %v754_v10  ;;  %v791_v27 = vmax.f32 %v787_v23, 0.0 }
 0x136   : > { %v755_v13 = vld [vmem:[#allocation2 + $0x18] sm:$0xff] }
 0x137   : > { %v766_v18 = vmul.f32 %v1008_v5, %v755_v13  ;;  %v776_v20 = vadd.f32 %v1009_v8, %v765_v14  ;;  %v1034_v30 = vpack.c.bf16 %v791_v27, %v790_v26 }
 0x139   : > { %v777_v24 = vadd.f32 %v1009_v8, %v766_v18  ;;  %v788_v25 = vadd.f32 %v1029_v19, %v776_v20  ;;  %1035 = vst [vmem:[%s1371_s5] sm:$0xff] %v1034_v30  }
 0x13b   : > { %v789_v28 = vadd.f32 %v1030_v21, %v777_v24  ;;  %v792_v29 = vmax.f32 %v788_v25, 0.0 }
 0x13d   : > { %v793_v31 = vmax.f32 %v789_v28, 0.0 }
 0x13f   : > { %v1039_v32 = vpack.c.bf16 %v793_v31, %v792_v29 }
 0x141   : > { %1042 = vst [vmem:[%s1371_s5 + $0x8] sm:$0xff] %v1039_v32  }
 0x142 PF: > { %s15_s22 = sadd.s32 1, %s1214_s22   ;;  %s1372_s18 = smov %s1202_s19 }
 0x143   : > { %p12_p12 = scmp.ge.s32.totalorder %s15_s22, 5   ;;  %s1373_s19 = smov %s1282_s26 }
 0x144   : > { %s1374_s20 = smov %s1210_s21  ;;  %s1375_s21 = smov %s1377_s23 }
 0x145   :  { %14 = sbr.rel (!%p12_p12) target bundleno = 3 (0x3), region = 127 }

// kernel: resnet_forward.25
= control target key start
LH: loop header
LB: loop body
LE: loop exit
PB: predicated region body
PF: predicated region fallthrough
CT: control target
= control target key end

     0   :  { %s1142_s15 = smov 0   ;;  %s1144_s16 = smov 0   ;;  %s1255_s0 = inlined_call_operand.vmem [shape: bf16[32,1152], index: 0, kind: input, shape index: {}]   ;;  %s1256_s1 = inlined_call_operand.vmem [shape: bf16[1152,128], index: 1, kind: input, shape index: {}]   ;;  %s1257_s2 = inlined_call_operand.vmem [shape: f32[1,128], index: 2, kind: input, shape index: {}]   ;;  %s1258_s3 = inlined_call_operand.vmem [shape: f32[1,128], index: 3, kind: input, shape index: {}]   ;;  %s1259_s4 = inlined_call_operand.vmem [shape: bf16[32,128], index: 4, kind: output, shape index: {}]  }
   0x1   :  { %s1146_s17 = smov 0   ;;  %s1148_s18 = smov 0  }
   0x2   :  { %s1150_s19 = smov 0  }
   0x3 LB: > { %s26_s20 = sadd.s32 1, %s1110_s18  ;;  %p49_p1 = scmp.ne.s32.totalorder %s1102_s16, %s1098_s15  ;;  %s1114_s19 = sphi %s1150_s19, %s14_s19   ;;  %s1110_s18 = sphi %s1148_s18, %s1263_s18   ;;  %s1106_s17 = sphi %s1146_s17, %s1262_s17   ;;  %s1102_s16 = sphi %s1144_s16, %s1261_s16   ;;  %s1098_s15 = sphi %s1142_s15, %s1260_s15  }
   0x4   : > { %p27_p0 = scmp.ge.s32.totalorder %s26_s20, 3  ;;  %p50_p2 = scmp.eq.s32.totalorder %s1114_s19, 0 }
   0x5   : > { %s42_s22 = sadd.s32 1, %s1102_s16  ;;  %p873_p5 = scmp.ge.s32.totalorder %s1114_s19, 3 }
   0x6   : > { %s1265_s20 = smov (%p27_p0, %s26_s20), 0  ;;  %p51_p3 = por %p50_p2, %p49_p1 }
   0x7   : > { %s38_s21 = ssub.s32 %s1110_s18, %s1265_s20  ;;  %195 = sbr.rel (%p873_p5) target bundleno = 23 (0x17), region = 24 }
   0x8   : > { %p40_p4 = scmp.eq.s32.totalorder %s38_s21, 0 }
   0xa   : > { %s1177_s23 = scalar_select %p40_p4, %s1102_s16, %s42_s22  }
   0xe   : > { %198 = sbr.rel (!%p51_p3) target bundleno = 23 (0x17), region = 28  ;;  %s200_s24 = sand.u32 (%p51_p3), 1, %s1102_s16  }
   0xf   : > { %s927_s25 = smul.u32 (%p51_p3), 12, %s1110_s18 }
  0x10   : > { %s1001_s26 = smul.u32 (%p51_p3), 48, %s200_s24 }
  0x11   : > { %s208_s29 = scalar_lea.vmem (%p51_p3), %s1255_s0, %s927_s25 }
  0x12   : > { %v223_v0 = vld [vmem:[%s208_s29] sm:$0xff] (%p51_p3)  ;;  %v227_v2 = vld [vmem:[%s208_s29 + $0x48] sm:$0xff] (%p51_p3)  ;;  %s202_s30 = scalar_lea.vmem (%p51_p3), [#allocation3], %s1001_s26  ;;  %v879_v6 = vld [vmem:[%s208_s29 + $0x50] sm:$0xf] (%p51_p3) }
  0x13   : > { %v225_v1 = vld [vmem:[%s208_s29 + $0x24] sm:$0xff] (%p51_p3)  ;;  %224 = vst [vmem:[%s202_s30] sm:$0xff] (%p51_p3), %v223_v0  ;;  %228 = vst [vmem:[%s202_s30 + $0x18] sm:$0xff] (%p51_p3), %v227_v2  ;;  %v229_v3 = vld [vmem:[%s208_s29 + $0x6c] sm:$0xff] (%p51_p3) }
  0x14   : > { %226 = vst [vmem:[%s202_s30 + $0xc] sm:$0xff] (%p51_p3), %v225_v1  ;;  %v875_v4 = vld [vmem:[%s208_s29 + $0x8] sm:$0xf] (%p51_p3)  ;;  %v877_v5 = vld [vmem:[%s208_s29 + $0x2c] sm:$0xf] (%p51_p3)  ;;  %230 = vst [vmem:[%s202_s30 + $0x24] sm:$0xff] (%p51_p3), %v229_v3 }
  0x15   : > { %876 = vst [vmem:[%s202_s30 + $0x8] sm:$0xf] %v875_v4  ;;  %878 = vst [vmem:[%s202_s30 + $0x14] sm:$0xf] %v877_v5  ;;  %v881_v7 = vld [vmem:[%s208_s29 + $0x74] sm:$0xf] }
  0x16   : > { %880 = vst [vmem:[%s202_s30 + $0x20] sm:$0xf] %v879_v6  ;;  %882 = vst [vmem:[%s202_s30 + $0x2c] sm:$0xf] %v881_v7 }
  0x17 PF: > { %p883_p6 = scmp.ge.s32.totalorder %s1114_s19, 1  ;;  %p262_p7 = scmp.lt.s32.totalorder %s1114_s19, 4 }
  0x19   : > { %p263_p8 = pnand %p883_p6, %p262_p7 }
  0x1a   : > { %s269_s5 = sand.u32 (!%p263_p8), 1, %s1098_s15   ;;  %s313_s6 = smul.u32 (!%p263_p8), 48, %s1106_s17 }
  0x1b   : > { %266 = sbr.rel (%p263_p8) target bundleno = 320 (0x140), region = 58  ;;  %p885_p10 = scmp.ne.s32.totalorder (!%p263_p8), %s1106_s17, 0 }
  0x1c   : > { %s1002_s7 = smul.u32 (!%p263_p8), 48, %s269_s5  ;;  %p314_p9 = scmp.lt.s32.totalorder (!%p263_p8), %s313_s6, 143 }
  0x1e   : > { %s1194_s12 = scalar_lea.vmem (!%p263_p8), [#allocation3], %s1002_s7 }
  0x22   : > { %s1267_s6 = smov (!%p314_p9, %s313_s6), 143  ;;  %341 = sbr.rel (%p885_p10) target bundleno = 41 (0x29), region = 66 }
  0x23   : > { %s884_s8 = sshll.u32 %s1267_s6, 2  ;;  %v1116_v8 = vmov (!%p885_p10), 0.0  }
  0x24   : > { %s1192_s11 = scalar_lea.vmem %s1256_s1, %s884_s8  ;;  %342 = vst [vmem:[#allocation2] sm:$0xff] (!%p885_p10), %v1116_v8  ;;  %343 = vst [vmem:[#allocation2 + $0x8] sm:$0xff] (!%p885_p10), %v1116_v8 }
  0x25   : > { %344 = vst [vmem:[#allocation2 + $0x10] sm:$0xff] (!%p885_p10), %v1116_v8  ;;  %345 = vst [vmem:[#allocation2 + $0x18] sm:$0xff] (!%p885_p10), %v1116_v8 }
  0x29 PF: > { %v1044_v9 = vld [vmem:[%s1192_s11 + $0x40] sm:$0xff]   ;;  %v1047_v12 = vld [vmem:[%s1192_s11 + $0x48] sm:$0xff]   ;;  %v1050_v15 = vld [vmem:[%s1192_s11 + $0x50] sm:$0xff]   ;;  %p916_p11 = scmp.ne.s32.totalorder %s1106_s17, 2 }
  0x2a   : > { %v1045_v10 = vld [vmem:[%s1192_s11] sm:$0xff]   ;;  %943 = vmatprep.subr.bf16.mxu0 %v1044_v9  ;;  %v1048_v13 = vld [vmem:[%s1192_s11 + $0x8] sm:$0xff]   ;;  %v1051_v16 = vld [vmem:[%s1192_s11 + $0x10] sm:$0xff]  }
  0x2b   : > { %v1046_v11 = vld [vmem:[%s1192_s11 + $0x80] sm:$0xff]   ;;  %944 = vmatpush3.bf16.msra.mxu0 %v1045_v10  ;;  %v1049_v14 = vld [vmem:[%s1192_s11 + $0x88] sm:$0xff]   ;;  %v1052_v17 = vld [vmem:[%s1192_s11 + $0x90] sm:$0xff]  }
  0x2c   : > { %981 = vmatprep.subr.bf16.mxu1 %v1046_v11  ;;  %945 = vmatprep.subr.bf16.mxu0 %v1047_v12  ;;  %v1053_v18 = vld [vmem:[%s1192_s11 + $0x58] sm:$0xff]   ;;  %v1056_v21 = vld [vmem:[%s1192_s11 + $0x60] sm:$0xff]   ;;  %v1059_v24 = vld [vmem:[%s1192_s11 + $0x68] sm:$0xff]  }
  0x2d   : > { %982 = vmatpush3.bf16.msra.mxu1 %v1046_v11  ;;  %v1054_v19 = vld [vmem:[%s1192_s11 + $0x18] sm:$0xff]   ;;  %v1058_v22 = vld [vmem:[%s1192_s11 + $0xa0] sm:$0xff]   ;;  %v1061_v25 = vld [vmem:[%s1192_s11 + $0xa8] sm:$0xff]  }
  0x2e   : > { %983 = vmatprep.subr.bf16.mxu1 %v1049_v14  ;;  %v1055_v20 = vld [vmem:[%s1192_s11 + $0x98] sm:$0xff]   ;;  %v1057_v23 = vld [vmem:[%s1192_s11 + $0x20] sm:$0xff]   ;;  %v1060_v26 = vld [vmem:[%s1192_s11 + $0x28] sm:$0xff]  }
  0x2f   : > { %946 = vmatpush3.bf16.msra.mxu0 %v1048_v13  ;;  %v1062_v27 = vld [vmem:[%s1192_s11 + $0x70] sm:$0xff]   ;;  %v1065_v30 = vld [vmem:[%s1192_s11 + $0x78] sm:$0xff]   ;;  %v346_v45 = vld [vmem:[#allocation2] sm:$0xff] }
  0x30   : > { %947 = vmatprep.subr.bf16.mxu0 %v1050_v15  ;;  %v1063_v28 = vld [vmem:[%s1192_s11 + $0x30] sm:$0xff]   ;;  %v1067_v31 = vld [vmem:[%s1192_s11 + $0xb8] sm:$0xff]   ;;  %v347_v50 = vld [vmem:[#allocation2 + $0x8] sm:$0xff] }
  0x31   : > { %984 = vmatpush3.bf16.msra.mxu1 %v1049_v14  ;;  %v1064_v29 = vld [vmem:[%s1192_s11 + $0xb0] sm:$0xff]   ;;  %v1066_v34 = vld [vmem:[%s1192_s11 + $0x38] sm:$0xff]   ;;  %v917_v5 = vld [vmem:[%s1257_s2] ss:$0 sm:$0xff] (!%p916_p11) }
  0x32   : > { %985 = vmatprep.subr.bf16.mxu1 %v1052_v17  ;;  %v1070_v32 = vld [vmem:[%s1194_s12 + $0x4] ss:$12 sps:$4 sm:$0xff]   ;;  %v1071_v33 = vld [vmem:[%s1194_s12 + $0x8] ss:$12 sps:$4 sm:$0xff]   ;;  %v1068_v35 = vld [vmem:[%s1194_s12] ss:$12 sps:$4 sm:$0xff]  }
  0x33   : > { %948 = vmatpush3.bf16.msra.mxu0 %v1051_v16  ;;  %614 = vmatprep.mubr.bf16.mxu0 %v1070_v32  ;;  %v1073_v36 = vld [vmem:[%s1194_s12 + $0x1c] ss:$12 sps:$4 sm:$0xff]   ;;  %v1072_v37 = vld [vmem:[%s1194_s12 + $0x20] ss:$12 sps:$4 sm:$0xff]   ;;  %v1075_v38 = vld [vmem:[%s1194_s12 + $0x18] ss:$12 sps:$4 sm:$0xff]  }
  0x34   : > { %949 = vmatprep.subr.bf16.mxu0 %v1053_v18  ;;  %997 = vmatprep.mubr.bf16.mxu1 %v1071_v33  ;;  %v348_v59 = vld [vmem:[#allocation2 + $0x10] sm:$0xff]  ;;  %v349_v63 = vld [vmem:[#allocation2 + $0x18] sm:$0xff]  ;;  %v918_v8 = vld [vmem:[%s1258_s3] ss:$0 sm:$0xff] (!%p916_p11) }
  0x35   : > { %986 = vmatpush3.bf16.msra.mxu1 %v1052_v17 }
  0x36   : > { %987 = vmatprep.subr.bf16.mxu1 %v1055_v20 }
  0x37   : > { %950 = vmatpush3.bf16.msra.mxu0 %v1054_v19 }
  0x38   : > { %951 = vmatprep.subr.bf16.mxu0 %v1056_v21 }
  0x39   : > { %988 = vmatpush3.bf16.msra.mxu1 %v1055_v20 }
  0x3a   : > { %989 = vmatprep.subr.bf16.mxu1 %v1058_v22 }
  0x3b   : > { %952 = vmatpush3.bf16.msra.mxu0 %v1057_v23 }
  0x3c   : > { %953 = vmatprep.subr.bf16.mxu0 %v1059_v24 }
  0x3d   : > { %990 = vmatpush3.bf16.msra.mxu1 %v1058_v22 }
  0x3e   : > { %991 = vmatprep.subr.bf16.mxu1 %v1061_v25 }
  0x3f   : > { %954 = vmatpush3.bf16.msra.mxu0 %v1060_v26 }
  0x40   : > { %955 = vmatprep.subr.bf16.mxu0 %v1062_v27 }
  0x41   : > { %992 = vmatpush3.bf16.msra.mxu1 %v1061_v25 }
  0x42   : > { %993 = vmatprep.subr.bf16.mxu1 %v1064_v29 }
  0x43   : > { %956 = vmatpush3.bf16.msra.mxu0 %v1063_v28 }
  0x44   : > { %957 = vmatprep.subr.bf16.mxu0 %v1065_v30 }
  0x45   : > { %994 = vmatpush3.bf16.msra.mxu1 %v1064_v29 }
  0x46   : > { %995 = vmatprep.subr.bf16.mxu1 %v1067_v31 }
  0x47   : > { %958 = vmatpush3.bf16.msra.mxu0 %v1066_v34 }
  0x49   : > { %996 = vmatpush3.bf16.msra.mxu1 %v1067_v31 }
  0x4a   : > { %615 = vmatmul.mubr.bf16.vlgmr.msra.gmra.mrb[0].mxu0 %v1068_v35 }
  0x4b   : > { %622 = vmatprep.mubr.bf16.mxu0 %v1073_v36 }
  0x4c   : > { %998 = vmatmul.mubr.bf16.vlgmr.msra.gmra.mrb[0].mxu1 %v1072_v37 }
  0x52   : > { %623 = vmatmul.mubr.bf16.gmra.mrb[4].mxu0 %v1075_v38 }
 0x11d   : > { %v959_v39 = vpop.f32.mrb[0].mxu0 }
 0x11e   : > { %v960_v40 = vpop.f32.mrb[1].mxu0 }
 0x11f   : > { %v961_v41 = vadd.f32 %v960_v40, %v959_v39  ;;  %v962_v42 = vpop.f32.mrb[2].mxu0  ;;  %v999_v43 = vpop.f32.mrb[0].mxu1 }
 0x120   : > { %v963_v44 = vpop.f32.mrb[3].mxu0  ;;  %v665_v46 = vpop.f32.mrb[1].mxu1 }
 0x121   : > { %v964_v47 = vadd.f32 %v963_v44, %v962_v42  ;;  %v666_v48 = vadd.f32 %v961_v41, %v665_v46  ;;  %v1000_v49 = vpop.f32.mrb[2].mxu1 }
 0x122   : > { %v668_v51 = vpop.f32.mrb[3].mxu1 }
 0x123   : > { %v680_v52 = vadd.f32 %v666_v48, %v346_v45  ;;  %v669_v53 = vadd.f32 %v964_v47, %v668_v51 }
 0x125   : > { %684 = vst [vmem:[#allocation2] sm:$0xff] %v680_v52  ;;  %v681_v54 = vadd.f32 %v669_v53, %v347_v50  ;;  %v965_v55 = vpop.f32.mrb[4].mxu0 }
 0x126   : > { %v966_v56 = vpop.f32.mrb[5].mxu0 }
 0x127   : > { %685 = vst [vmem:[#allocation2 + $0x8] sm:$0xff] %v681_v54  ;;  %v967_v57 = vadd.f32 %v966_v56, %v965_v55  ;;  %v968_v58 = vpop.f32.mrb[6].mxu0 }
 0x128   : > { %v969_v60 = vpop.f32.mrb[7].mxu0 }
 0x129   : > { %v674_v61 = vadd.f32 %v999_v43, %v967_v57  ;;  %v970_v62 = vadd.f32 %v969_v60, %v968_v58  ;;  %691 = sbr.rel (%p916_p11) target bundleno = 320 (0x140), region = 70 }
 0x12b   : > { %v682_v0 = vadd.f32 %v674_v61, %v348_v59  ;;  %v677_v1 = vadd.f32 %v1000_v49, %v970_v62 }
 0x12c   : > { %v692_v3 = vld [vmem:[#allocation2] sm:$0xff] (!%p916_p11) }
 0x12d   : > { %686 = vst [vmem:[#allocation2 + $0x10] sm:$0xff] %v682_v0  ;;  %v683_v2 = vadd.f32 %v677_v1, %v349_v63  ;;  %v703_v6 = vmul.f32 (!%p916_p11), %v917_v5, %v692_v3 }
 0x12e   : > { %v693_v4 = vld [vmem:[#allocation2 + $0x8] sm:$0xff] (!%p916_p11) }
 0x12f   : > { %687 = vst [vmem:[#allocation2 + $0x18] sm:$0xff] %v683_v2  ;;  %v704_v7 = vmul.f32 (!%p916_p11), %v917_v5, %v693_v4  ;;  %v714_v13 = vadd.f32 (!%p916_p11), %v918_v8, %v703_v6 }
 0x131   : > { %v715_v14 = vadd.f32 %v918_v8, %v704_v7  ;;  %v718_v17 = vmax.f32 %v714_v13, 0.0 }
 0x133   : > { %v719_v18 = vmax.f32 %v715_v14, 0.0 }
 0x134   : > { %v694_v9 = vld [vmem:[#allocation2 + $0x10] sm:$0xff] }
 0x135   : > { %v705_v11 = vmul.f32 %v917_v5, %v694_v9  ;;  %v935_v21 = vpack.c.bf16 %v719_v18, %v718_v17 }
 0x136   : > { %v695_v10 = vld [vmem:[#allocation2 + $0x18] sm:$0xff] }
 0x137   : > { %v706_v12 = vmul.f32 %v917_v5, %v695_v10  ;;  %v716_v15 = vadd.f32 %v918_v8, %v705_v11  ;;  %936 = vst [vmem:[%s1259_s4] sm:$0xff] %v935_v21  }
 0x139   : > { %v717_v16 = vadd.f32 %v918_v8, %v706_v12  ;;  %v720_v19 = vmax.f32 %v716_v15, 0.0 }
 0x13b   : > { %v721_v20 = vmax.f32 %v717_v16, 0.0 }
 0x13d   : > { %v940_v22 = vpack.c.bf16 %v721_v20, %v720_v19 }
 0x13f   : > { %942 = vst [vmem:[%s1259_s4 + $0x8] sm:$0xff] %v940_v22  }
 0x140 PF: > { %s14_s19 = sadd.s32 1, %s1114_s19   ;;  %s1260_s15 = smov %s1102_s16 }
 0x141   : > { %p11_p12 = scmp.ge.s32.totalorder %s14_s19, 5   ;;  %s1261_s16 = smov %s1177_s23 }
 0x142   : > { %s1262_s17 = smov %s1110_s18  ;;  %s1263_s18 = smov %s1265_s20 }
 0x143   :  { %13 = sbr.rel (!%p11_p12) target bundleno = 3 (0x3), region = 120 }

// kernel: resnet_forward.27
= control target key start
LH: loop header
LB: loop body
LE: loop exit
PB: predicated region body
PF: predicated region fallthrough
CT: control target
= control target key end

     0   :  { %s1231_s15 = smov 0   ;;  %s1233_s16 = smov 0   ;;  %s1365_s0 = inlined_call_operand.vmem [shape: bf16[16,1152], index: 0, kind: input, shape index: {}]   ;;  %s1366_s1 = inlined_call_operand.vmem [shape: bf16[1152,256], index: 1, kind: input, shape index: {}]   ;;  %s1367_s2 = inlined_call_operand.vmem [shape: f32[1,256], index: 2, kind: input, shape index: {}]   ;;  %s1368_s3 = inlined_call_operand.vmem [shape: f32[1,256], index: 3, kind: input, shape index: {}]   ;;  %s1369_s4 = inlined_call_operand.vmem [shape: bf16[16,256], index: 4, kind: output, shape index: {}]  }
   0x1   :  { %s1235_s17 = smov 0   ;;  %s1237_s18 = smov 0  }
   0x2   :  { %s1239_s19 = smov 0  }
   0x3 LB: > { %s26_s20 = sadd.s32 1, %s1198_s18  ;;  %p49_p1 = scmp.ne.s32.totalorder %s1190_s16, %s1186_s15  ;;  %s1202_s19 = sphi %s1239_s19, %s14_s19   ;;  %s1198_s18 = sphi %s1237_s18, %s1373_s18   ;;  %s1194_s17 = sphi %s1235_s17, %s1372_s17   ;;  %s1190_s16 = sphi %s1233_s16, %s1371_s16   ;;  %s1186_s15 = sphi %s1231_s15, %s1370_s15  }
   0x4   : > { %p27_p0 = scmp.ge.s32.totalorder %s26_s20, 3  ;;  %p50_p2 = scmp.eq.s32.totalorder %s1202_s19, 0 }
   0x5   : > { %s42_s22 = sadd.s32 1, %s1190_s16  ;;  %p968_p5 = scmp.ge.s32.totalorder %s1202_s19, 3 }
   0x6   : > { %s1375_s20 = smov (%p27_p0, %s26_s20), 0  ;;  %p51_p3 = por %p50_p2, %p49_p1 }
   0x7   : > { %s38_s21 = ssub.s32 %s1198_s18, %s1375_s20  ;;  %199 = sbr.rel (%p968_p5) target bundleno = 21 (0x15), region = 24 }
   0x8   : > { %p40_p4 = scmp.eq.s32.totalorder %s38_s21, 0 }
   0xa   : > { %s1266_s23 = scalar_select %p40_p4, %s1190_s16, %s42_s22  }
   0xe   : > { %202 = sbr.rel (!%p51_p3) target bundleno = 21 (0x15), region = 28  ;;  %s204_s24 = sand.u32 (%p51_p3), 1, %s1190_s16  }
   0xf   : > { %s1036_s25 = smul.u32 (%p51_p3), 12, %s1198_s18 }
  0x10   : > { %s1044_s26 = smul.u32 (%p51_p3), 24, %s204_s24 }
  0x11   : > { %s212_s29 = scalar_lea.vmem (%p51_p3), %s1365_s0, %s1036_s25 }
  0x12   : > { %v227_v0 = vld [vmem:[%s212_s29] sm:$0xff] (%p51_p3)  ;;  %v970_v2 = vld [vmem:[%s212_s29 + $0x8] sm:$0xf] (%p51_p3)  ;;  %s206_s30 = scalar_lea.vmem (%p51_p3), [#allocation3], %s1044_s26  ;;  %v972_v3 = vld [vmem:[%s212_s29 + $0x2c] sm:$0xf] (%p51_p3) }
  0x13   : > { %v229_v1 = vld [vmem:[%s212_s29 + $0x24] sm:$0xff] (%p51_p3)  ;;  %228 = vst [vmem:[%s206_s30] sm:$0xff] (%p51_p3), %v227_v0  ;;  %971 = vst [vmem:[%s206_s30 + $0x8] sm:$0xf] (%p51_p3), %v970_v2 }
  0x14   : > { %230 = vst [vmem:[%s206_s30 + $0xc] sm:$0xff] (%p51_p3), %v229_v1  ;;  %973 = vst [vmem:[%s206_s30 + $0x14] sm:$0xf] (%p51_p3), %v972_v3 }
  0x15 PF: > { %p974_p6 = scmp.ge.s32.totalorder %s1202_s19, 1  ;;  %p261_p7 = scmp.lt.s32.totalorder %s1202_s19, 4 }
  0x17   : > { %p262_p8 = pnand %p974_p6, %p261_p7 }
  0x18   : > { %s268_s5 = sand.u32 (!%p262_p8), 1, %s1186_s15   ;;  %s318_s6 = smul.u32 (!%p262_p8), 48, %s1194_s17 }
  0x19   : > { %265 = sbr.rel (%p262_p8) target bundleno = 340 (0x154), region = 58  ;;  %p977_p10 = scmp.ne.s32.totalorder (!%p262_p8), %s1194_s17, 0 }
  0x1a   : > { %s1045_s7 = smul.u32 (!%p262_p8), 24, %s268_s5  ;;  %p320_p9 = scmp.lt.s32.totalorder (!%p262_p8), %s318_s6, 143 }
  0x1c   : > { %s1283_s12 = scalar_lea.vmem (!%p262_p8), [#allocation3], %s1045_s7 }
  0x20   : > { %s1377_s6 = smov (!%p320_p9, %s318_s6), 143  ;;  %356 = sbr.rel (%p977_p10) target bundleno = 39 (0x27), region = 66 }
  0x21   : > { %s1037_s8 = sshll.u32 %s1377_s6, 3  ;;  %v1204_v4 = vmov (!%p977_p10), 0.0  }
  0x22   : > { %s1281_s11 = scalar_lea.vmem %s1366_s1, %s1037_s8  ;;  %357 = vst [vmem:[#allocation2] sm:$0xff] (!%p977_p10), %v1204_v4  ;;  %358 = vst [vmem:[#allocation2 + $0x8] sm:$0xff] (!%p977_p10), %v1204_v4 }
  0x23   : > { %359 = vst [vmem:[#allocation2 + $0x10] sm:$0xff] (!%p977_p10), %v1204_v4  ;;  %360 = vst [vmem:[#allocation2 + $0x18] sm:$0xff] (!%p977_p10), %v1204_v4 }
  0x27 PF: > { %v1088_v5 = vld [vmem:[%s1281_s11 + $0x4] ss:$8 sps:$4 sm:$0xff]   ;;  %v1090_v6 = vld [vmem:[%s1281_s11] ss:$8 sps:$4 sm:$0xff]   ;;  %v1205_v7 = vmov 0   ;;  %p1029_p11 = scmp.ne.s32.totalorder %s1194_s17, 2 }
  0x28   : > { %748 = vmatprep.mubr.bf16.mxu0 %v1205_v7  ;;  %673 = vmatprep.subr.bf16.mxu1 %v1088_v5  ;;  %v1091_v8 = vld [vmem:[%s1281_s11 + $0x14] ss:$8 sps:$4 sm:$0xff]   ;;  %v1093_v9 = vld [vmem:[%s1281_s11 + $0x10] ss:$8 sps:$4 sm:$0xff]   ;;  %v1094_v10 = vld [vmem:[%s1281_s11 + $0x24] ss:$8 sps:$4 sm:$0xff]  }
  0x29   : > { %674 = vmatpush1.bf16.msra.mxu1 %v1090_v6  ;;  %v1096_v11 = vld [vmem:[%s1281_s11 + $0x20] ss:$8 sps:$4 sm:$0xff]   ;;  %v1097_v12 = vld [vmem:[%s1281_s11 + $0x34] ss:$8 sps:$4 sm:$0xff]   ;;  %v1099_v13 = vld [vmem:[%s1281_s11 + $0x30] ss:$8 sps:$4 sm:$0xff]  }
  0x2a   : > { %675 = vmatprep.subr.bf16.mxu1 %v1091_v8  ;;  %v1112_v14 = vld [vmem:[%s1281_s11 + $0x104] ss:$8 sps:$4 sm:$0xff]   ;;  %v1114_v15 = vld [vmem:[%s1281_s11 + $0x100] ss:$8 sps:$4 sm:$0xff]   ;;  %v1118_v17 = vld [vmem:[%s1281_s11 + $0x114] ss:$8 sps:$4 sm:$0xff]  }
  0x2b   : > { %v1100_v16 = vld [vmem:[%s1281_s11 + $0x44] ss:$8 sps:$4 sm:$0xff]   ;;  %716 = vmatprep.subr.bf16.mxu0 %v1112_v14  ;;  %v1120_v18 = vld [vmem:[%s1281_s11 + $0x110] ss:$8 sps:$4 sm:$0xff]   ;;  %v1102_v19 = vld [vmem:[%s1281_s11 + $0x40] ss:$8 sps:$4 sm:$0xff]  }
  0x2c   : > { %717 = vmatpush1.bf16.msra.mxu0 %v1114_v15  ;;  %v1103_v20 = vld [vmem:[%s1281_s11 + $0x54] ss:$8 sps:$4 sm:$0xff]   ;;  %v1124_v21 = vld [vmem:[%s1281_s11 + $0x124] ss:$8 sps:$4 sm:$0xff]   ;;  %v1126_v22 = vld [vmem:[%s1281_s11 + $0x120] ss:$8 sps:$4 sm:$0xff]  }
  0x2d   : > { %676 = vmatpush1.bf16.msra.mxu1 %v1093_v9  ;;  %718 = vmatprep.subr.bf16.mxu0 %v1118_v17  ;;  %v1105_v23 = vld [vmem:[%s1281_s11 + $0x50] ss:$8 sps:$4 sm:$0xff]   ;;  %v1130_v24 = vld [vmem:[%s1281_s11 + $0x134] ss:$8 sps:$4 sm:$0xff]   ;;  %v1106_v25 = vld [vmem:[%s1281_s11 + $0x64] ss:$8 sps:$4 sm:$0xff]  }
  0x2e   : > { %677 = vmatprep.subr.bf16.mxu1 %v1094_v10  ;;  %v1132_v26 = vld [vmem:[%s1281_s11 + $0x130] ss:$8 sps:$4 sm:$0xff]   ;;  %v1108_v27 = vld [vmem:[%s1281_s11 + $0x60] ss:$8 sps:$4 sm:$0xff]   ;;  %v1136_v28 = vld [vmem:[%s1281_s11 + $0x144] ss:$8 sps:$4 sm:$0xff]  }
  0x2f   : > { %v1109_v29 = vld [vmem:[%s1281_s11 + $0x74] ss:$8 sps:$4 sm:$0xff]   ;;  %v1138_v30 = vld [vmem:[%s1281_s11 + $0x140] ss:$8 sps:$4 sm:$0xff]   ;;  %v1111_v31 = vld [vmem:[%s1281_s11 + $0x70] ss:$8 sps:$4 sm:$0xff]  }
  0x30   : > { %719 = vmatpush1.bf16.msra.mxu0 %v1120_v18  ;;  %v1142_v32 = vld [vmem:[%s1281_s11 + $0x154] ss:$8 sps:$4 sm:$0xff]   ;;  %v1115_v33 = vld [vmem:[%s1281_s11 + $0x84] ss:$8 sps:$4 sm:$0xff]   ;;  %v1144_v34 = vld [vmem:[%s1281_s11 + $0x150] ss:$8 sps:$4 sm:$0xff]  }
  0x31   : > { %678 = vmatpush1.bf16.msra.mxu1 %v1096_v11  ;;  %720 = vmatprep.subr.bf16.mxu0 %v1124_v21  ;;  %v1117_v35 = vld [vmem:[%s1281_s11 + $0x80] ss:$8 sps:$4 sm:$0xff]   ;;  %v1148_v36 = vld [vmem:[%s1281_s11 + $0x164] ss:$8 sps:$4 sm:$0xff]   ;;  %v1121_v37 = vld [vmem:[%s1281_s11 + $0x94] ss:$8 sps:$4 sm:$0xff]  }
  0x32   : > { %679 = vmatprep.subr.bf16.mxu1 %v1097_v12  ;;  %v1150_v38 = vld [vmem:[%s1281_s11 + $0x160] ss:$8 sps:$4 sm:$0xff]   ;;  %v1123_v40 = vld [vmem:[%s1281_s11 + $0x90] ss:$8 sps:$4 sm:$0xff]   ;;  %v1154_v41 = vld [vmem:[%s1281_s11 + $0x174] ss:$8 sps:$4 sm:$0xff]  }
  0x33   : > { %v1163_v39 = vld [vmem:[%s1283_s12 + $0x4] ss:$12 sps:$4 sm:$0xff]   ;;  %v1160_v46 = vld [vmem:[%s1283_s12 + $0x8] ss:$12 sps:$4 sm:$0xff]   ;;  %v1161_v56 = vld [vmem:[%s1283_s12] ss:$12 sps:$4 sm:$0xff]  }
  0x34   : > { %721 = vmatpush1.bf16.msra.mxu0 %v1126_v22  ;;  %v1127_v42 = vld [vmem:[%s1281_s11 + $0xa4] ss:$8 sps:$4 sm:$0xff]   ;;  %705 = vmatprep.mubr.bf16.mxu1 %v1163_v39  ;;  %v1156_v43 = vld [vmem:[%s1281_s11 + $0x170] ss:$8 sps:$4 sm:$0xff]   ;;  %v1129_v44 = vld [vmem:[%s1281_s11 + $0xa0] ss:$8 sps:$4 sm:$0xff]  }
  0x35   : > { %680 = vmatpush1.bf16.msra.mxu1 %v1099_v13  ;;  %722 = vmatprep.subr.bf16.mxu0 %v1130_v24  ;;  %v1133_v45 = vld [vmem:[%s1281_s11 + $0xb4] ss:$8 sps:$4 sm:$0xff]   ;;  %v1135_v47 = vld [vmem:[%s1281_s11 + $0xb0] ss:$8 sps:$4 sm:$0xff]   ;;  %v1139_v48 = vld [vmem:[%s1281_s11 + $0xc4] ss:$8 sps:$4 sm:$0xff]   ;;  %v777_v13 = vlaneseq (!%p1029_p11) }
  0x36   : > { %681 = vmatprep.subr.bf16.mxu1 %v1100_v16  ;;  %v1141_v49 = vld [vmem:[%s1281_s11 + $0xc0] ss:$8 sps:$4 sm:$0xff]   ;;  %v1145_v50 = vld [vmem:[%s1281_s11 + $0xd4] ss:$8 sps:$4 sm:$0xff]   ;;  %v1147_v51 = vld [vmem:[%s1281_s11 + $0xd0] ss:$8 sps:$4 sm:$0xff]  }
  0x37   : > { %v1151_v52 = vld [vmem:[%s1281_s11 + $0xe4] ss:$8 sps:$4 sm:$0xff]   ;;  %v1153_v53 = vld [vmem:[%s1281_s11 + $0xe0] ss:$8 sps:$4 sm:$0xff]   ;;  %v1157_v54 = vld [vmem:[%s1281_s11 + $0xf4] ss:$8 sps:$4 sm:$0xff]  }
  0x38   : > { %723 = vmatpush1.bf16.msra.mxu0 %v1132_v26  ;;  %v1159_v55 = vld [vmem:[%s1281_s11 + $0xf0] ss:$8 sps:$4 sm:$0xff]   ;;  %v361_v61 = vld [vmem:[#allocation2] sm:$0xff]  ;;  %v362_v0 = vld [vmem:[#allocation2 + $0x8] sm:$0xff]  ;;  %v778_v14 = vshrl.u32 (!%p1029_p11), %v777_v13, 7 }
  0x39   : > { %682 = vmatpush1.bf16.msra.mxu1 %v1102_v19  ;;  %724 = vmatprep.subr.bf16.mxu0 %v1136_v28  ;;  %v363_v3 = vld [vmem:[#allocation2 + $0x10] sm:$0xff]  ;;  %v364_v7 = vld [vmem:[#allocation2 + $0x18] sm:$0xff]  ;;  %v775_v15 = vld [vmem:[%s1367_s2] sm:$0x3] (!%p1029_p11) }
  0x3a   : > { %683 = vmatprep.subr.bf16.mxu1 %v1103_v20  ;;  %v791_v16 = vld [vmem:[%s1368_s3] sm:$0x3] (!%p1029_p11)  ;;  %v779_v18 = vsub.s32 (!%p1029_p11), 0, %v778_v14  ;;  %v783_v19 = vsub.s32 (!%p1029_p11), 1, %v778_v14 }
  0x3c   : > { %725 = vmatpush1.bf16.msra.mxu0 %v1138_v30  ;;  %v784_v24 = vrot.slane (!%p1029_p11), %v775_v15, %v783_v19  ;;  %v800_v26 = vrot.slane (!%p1029_p11), %v791_v16, %v783_v19 }
  0x3d   : > { %684 = vmatpush1.bf16.msra.mxu1 %v1105_v23  ;;  %726 = vmatprep.subr.bf16.mxu0 %v1142_v32  ;;  %v780_v23 = vrot.slane (!%p1029_p11), %v775_v15, %v779_v18 }
  0x3e   : > { %685 = vmatprep.subr.bf16.mxu1 %v1106_v25  ;;  %v796_v25 = vrot.slane (!%p1029_p11), %v791_v16, %v779_v18 }
  0x40   : > { %727 = vmatpush1.bf16.msra.mxu0 %v1144_v34 }
  0x41   : > { %686 = vmatpush1.bf16.msra.mxu1 %v1108_v27  ;;  %728 = vmatprep.subr.bf16.mxu0 %v1148_v36 }
  0x42   : > { %687 = vmatprep.subr.bf16.mxu1 %v1109_v29 }
  0x44   : > { %729 = vmatpush1.bf16.msra.mxu0 %v1150_v38 }
  0x45   : > { %688 = vmatpush1.bf16.msra.mxu1 %v1111_v31  ;;  %730 = vmatprep.subr.bf16.mxu0 %v1154_v41 }
  0x46   : > { %689 = vmatprep.subr.bf16.mxu1 %v1115_v33 }
  0x48   : > { %731 = vmatpush1.bf16.msra.mxu0 %v1156_v43 }
  0x49   : > { %690 = vmatpush1.bf16.msra.mxu1 %v1117_v35 }
  0x4a   : > { %691 = vmatprep.subr.bf16.mxu1 %v1121_v37 }
  0x4b   : > { %749 = vmatmul.mubr.bf16.vlgmr.msra.gmra.mrb[0].mxu0 %v1160_v46 }
  0x4d   : > { %692 = vmatpush1.bf16.msra.mxu1 %v1123_v40 }
  0x4e   : > { %693 = vmatprep.subr.bf16.mxu1 %v1127_v42 }
  0x51   : > { %694 = vmatpush1.bf16.msra.mxu1 %v1129_v44 }
  0x52   : > { %695 = vmatprep.subr.bf16.mxu1 %v1133_v45 }
  0x55   : > { %696 = vmatpush1.bf16.msra.mxu1 %v1135_v47 }
  0x56   : > { %697 = vmatprep.subr.bf16.mxu1 %v1139_v48 }
  0x59   : > { %698 = vmatpush1.bf16.msra.mxu1 %v1141_v49 }
  0x5a   : > { %699 = vmatprep.subr.bf16.mxu1 %v1145_v50 }
  0x5d   : > { %700 = vmatpush1.bf16.msra.mxu1 %v1147_v51 }
  0x5e   : > { %701 = vmatprep.subr.bf16.mxu1 %v1151_v52 }
  0x61   : > { %702 = vmatpush1.bf16.msra.mxu1 %v1153_v53 }
  0x62   : > { %703 = vmatprep.subr.bf16.mxu1 %v1157_v54 }
  0x65   : > { %704 = vmatpush1.bf16.msra.mxu1 %v1159_v55 }
  0x68   : > { %706 = vmatmul.mubr.bf16.vlgmr.msra.gmra.mrb[0].mxu1 %v1161_v56 }
 0x11e   : > { %v750_v57 = vpop.f32.mrb[0].mxu0 }
 0x11f   : > { %v752_v58 = vpop.f32.mrb[1].mxu0 }
 0x120   : > { %v754_v59 = vpop.f32.mrb[2].mxu0 }
 0x121   : > { %v756_v60 = vpop.f32.mrb[3].mxu0 }
 0x13b   : > { %v707_v62 = vpop.f32.mrb[0].mxu1 }
 0x13c   : > { %v751_v63 = vadd.f32 %v750_v57, %v707_v62  ;;  %v709_v1 = vpop.f32.mrb[1].mxu1 }
 0x13d   : > { %v753_v2 = vadd.f32 %v752_v58, %v709_v1  ;;  %v711_v4 = vpop.f32.mrb[2].mxu1  ;;  %770 = sbr.rel (%p1029_p11) target bundleno = 340 (0x154), region = 70 }
 0x13e   : > { %v759_v5 = vadd.f32 %v751_v63, %v361_v61  ;;  %v755_v6 = vadd.f32 %v754_v59, %v711_v4  ;;  %v713_v8 = vpop.f32.mrb[3].mxu1 }
 0x13f   : > { %v760_v9 = vadd.f32 %v753_v2, %v362_v0  ;;  %v757_v10 = vadd.f32 %v756_v60, %v713_v8 }
 0x140   : > { %763 = vst [vmem:[#allocation2] sm:$0xff] %v759_v5  ;;  %v761_v11 = vadd.f32 %v755_v6, %v363_v3 }
 0x141   : > { %764 = vst [vmem:[#allocation2 + $0x8] sm:$0xff] %v760_v9  ;;  %v762_v12 = vadd.f32 %v757_v10, %v364_v7 }
 0x142   : > { %765 = vst [vmem:[#allocation2 + $0x10] sm:$0xff] %v761_v11 }
 0x143   : > { %766 = vst [vmem:[#allocation2 + $0x18] sm:$0xff] %v762_v12 }
 0x147   : > { %v771_v17 = vld [vmem:[#allocation2] sm:$0xff] }
 0x148   : > { %v772_v20 = vld [vmem:[#allocation2 + $0x8] sm:$0xff]  ;;  %v787_v27 = vmul.f32 %v780_v23, %v771_v17 }
 0x149   : > { %v773_v21 = vld [vmem:[#allocation2 + $0x10] sm:$0xff]  ;;  %v788_v28 = vmul.f32 %v784_v24, %v772_v20 }
 0x14a   : > { %v774_v22 = vld [vmem:[#allocation2 + $0x18] sm:$0xff]  ;;  %v789_v29 = vmul.f32 %v780_v23, %v773_v21  ;;  %v803_v31 = vadd.f32 %v796_v25, %v787_v27 }
 0x14b   : > { %v790_v30 = vmul.f32 %v784_v24, %v774_v22  ;;  %v804_v32 = vadd.f32 %v800_v26, %v788_v28 }
 0x14c   : > { %v805_v33 = vadd.f32 %v796_v25, %v789_v29  ;;  %v807_v35 = vmax.f32 %v803_v31, 0.0 }
 0x14d   : > { %v806_v34 = vadd.f32 %v800_v26, %v790_v30  ;;  %v808_v36 = vmax.f32 %v804_v32, 0.0 }
 0x14e   : > { %v809_v37 = vmax.f32 %v805_v33, 0.0 }
 0x14f   : > { %v810_v38 = vmax.f32 %v806_v34, 0.0  ;;  %v1038_v39 = vpack.c.bf16 %v808_v36, %v807_v35 }
 0x151   : > { %v1039_v40 = vpack.c.bf16 %v810_v38, %v809_v37  ;;  %823 = vst [vmem:[%s1369_s4] sm:$0xff] %v1038_v39 }
 0x153   : > { %824 = vst [vmem:[%s1369_s4 + $0x8] sm:$0xff] %v1039_v40 }
 0x154 PF: > { %s14_s19 = sadd.s32 1, %s1202_s19   ;;  %s1370_s15 = smov %s1190_s16 }
 0x155   : > { %p11_p12 = scmp.ge.s32.totalorder %s14_s19, 5   ;;  %s1371_s16 = smov %s1266_s23 }
 0x156   : > { %s1372_s17 = smov %s1198_s18  ;;  %s1373_s18 = smov %s1375_s20 }
 0x157   :  { %13 = sbr.rel (!%p11_p12) target bundleno = 3 (0x3), region = 120 }

// kernel: resnet_forward.28
= control target key start
LH: loop header
LB: loop body
LE: loop exit
PB: predicated region body
PF: predicated region fallthrough
CT: control target
= control target key end

     0   :  { %v289_v1 = vmov 0   ;;  %v194_v18 = vlaneseq  ;;  %s378_s1 = inlined_call_operand.vmem [shape: bf16[128,256], index: 1, kind: input, shape index: {}]   ;;  %s379_s0 = inlined_call_operand.vmem [shape: bf16[16,128], index: 0, kind: input, shape index: {}]   ;;  %s380_s2 = inlined_call_operand.vmem [shape: f32[1,256], index: 2, kind: input, shape index: {}]   ;;  %s381_s3 = inlined_call_operand.vmem [shape: f32[1,256], index: 3, kind: input, shape index: {}]   ;;  %s382_s4 = inlined_call_operand.vmem [shape: bf16[16,256], index: 4, kind: output, shape index: {}]  }
   0x1   :  { %v264_v0 = vld [vmem:[%s378_s1 + $0x4] ss:$8 sps:$4 sm:$0xff]   ;;  %166 = vmatprep.mubr.bf16.mxu0 %v289_v1  ;;  %v266_v2 = vld [vmem:[%s378_s1] ss:$8 sps:$4 sm:$0xff]   ;;  %v267_v3 = vld [vmem:[%s378_s1 + $0x14] ss:$8 sps:$4 sm:$0xff]  }
   0x2   :  { %134 = vmatprep.subr.bf16.mxu0 %v264_v0  ;;  %v269_v4 = vld [vmem:[%s378_s1 + $0x10] ss:$8 sps:$4 sm:$0xff]   ;;  %v270_v5 = vld [vmem:[%s378_s1 + $0x24] ss:$8 sps:$4 sm:$0xff]   ;;  %v272_v6 = vld [vmem:[%s378_s1 + $0x20] ss:$8 sps:$4 sm:$0xff]  }
   0x3   :  { %135 = vmatpush1.bf16.msra.mxu0 %v266_v2  ;;  %v273_v7 = vld [vmem:[%s378_s1 + $0x34] ss:$8 sps:$4 sm:$0xff]   ;;  %v275_v8 = vld [vmem:[%s378_s1 + $0x30] ss:$8 sps:$4 sm:$0xff]   ;;  %v276_v9 = vld [vmem:[%s378_s1 + $0x44] ss:$8 sps:$4 sm:$0xff]  }
   0x4   :  { %136 = vmatprep.subr.bf16.mxu0 %v267_v3  ;;  %v278_v10 = vld [vmem:[%s378_s1 + $0x40] ss:$8 sps:$4 sm:$0xff]   ;;  %v279_v11 = vld [vmem:[%s378_s1 + $0x54] ss:$8 sps:$4 sm:$0xff]   ;;  %v281_v12 = vld [vmem:[%s378_s1 + $0x50] ss:$8 sps:$4 sm:$0xff]  }
   0x5   :  { %v282_v13 = vld [vmem:[%s378_s1 + $0x64] ss:$8 sps:$4 sm:$0xff]   ;;  %v284_v14 = vld [vmem:[%s378_s1 + $0x60] ss:$8 sps:$4 sm:$0xff]   ;;  %v285_v15 = vld [vmem:[%s378_s1 + $0x74] ss:$8 sps:$4 sm:$0xff]  }
   0x6   :  { %v287_v16 = vld [vmem:[%s378_s1 + $0x70] ss:$8 sps:$4 sm:$0xff]   ;;  %v288_v17 = vld [vmem:[%s379_s0] sm:$0xff]   ;;  %v195_v19 = vshrl.u32 %v194_v18, 7 }
   0x7   :  { %137 = vmatpush1.bf16.msra.mxu0 %v269_v4  ;;  %v192_v21 = vld [vmem:[%s380_s2] sm:$0x3] }
   0x8   :  { %138 = vmatprep.subr.bf16.mxu0 %v270_v5  ;;  %v196_v20 = vsub.s32 0, %v195_v19  ;;  %v200_v22 = vsub.s32 1, %v195_v19  ;;  %v208_v23 = vld [vmem:[%s381_s3] sm:$0x3] }
   0xa   :  { %v197_v24 = vrot.slane %v192_v21, %v196_v20  ;;  %v201_v25 = vrot.slane %v192_v21, %v200_v22  ;;  %v213_v26 = vrot.slane %v208_v23, %v196_v20  ;;  %v217_v28 = vrot.slane %v208_v23, %v200_v22 }
   0xb   :  { %139 = vmatpush1.bf16.msra.mxu0 %v272_v6 }
   0xc   :  { %140 = vmatprep.subr.bf16.mxu0 %v273_v7 }
   0xf   :  { %141 = vmatpush1.bf16.msra.mxu0 %v275_v8 }
  0x10   :  { %142 = vmatprep.subr.bf16.mxu0 %v276_v9 }
  0x13   :  { %143 = vmatpush1.bf16.msra.mxu0 %v278_v10 }
  0x14   :  { %144 = vmatprep.subr.bf16.mxu0 %v279_v11 }
  0x17   :  { %145 = vmatpush1.bf16.msra.mxu0 %v281_v12 }
  0x18   :  { %146 = vmatprep.subr.bf16.mxu0 %v282_v13 }
  0x1b   :  { %147 = vmatpush1.bf16.msra.mxu0 %v284_v14 }
  0x1c   :  { %148 = vmatprep.subr.bf16.mxu0 %v285_v15 }
  0x1f   :  { %149 = vmatpush1.bf16.msra.mxu0 %v287_v16 }
  0x22   :  { %167 = vmatmul.mubr.bf16.vlgmr.msra.gmra.mrb[0].mxu0 %v288_v17 }
  0xf5   :  { %v168_v27 = vpop.f32.mrb[0].mxu0 }
  0xf6   :  { %v204_v29 = vmul.f32 %v197_v24, %v168_v27  ;;  %v170_v30 = vpop.f32.mrb[1].mxu0 }
  0xf7   :  { %v205_v31 = vmul.f32 %v201_v25, %v170_v30  ;;  %v172_v32 = vpop.f32.mrb[2].mxu0 }
  0xf8   :  { %v220_v33 = vadd.f32 %v213_v26, %v204_v29  ;;  %v206_v34 = vmul.f32 %v197_v24, %v172_v32  ;;  %v174_v35 = vpop.f32.mrb[3].mxu0 }
  0xf9   :  { %v221_v36 = vadd.f32 %v217_v28, %v205_v31  ;;  %v207_v37 = vmul.f32 %v201_v25, %v174_v35 }
  0xfa   :  { %v222_v38 = vadd.f32 %v213_v26, %v206_v34 }
  0xfb   :  { %v261_v39 = vpack.c.bf16 %v221_v36, %v220_v33  ;;  %v223_v40 = vadd.f32 %v217_v28, %v207_v37 }
  0xfd   :  { %236 = vst [vmem:[%s382_s4] sm:$0xff] %v261_v39  ;;  %v262_v41 = vpack.c.bf16 %v223_v40, %v222_v38 }
  0xff   :  { %237 = vst [vmem:[%s382_s4 + $0x8] sm:$0xff] %v262_v41 }

// kernel: resnet_forward.29
= control target key start
LH: loop header
LB: loop body
LE: loop exit
PB: predicated region body
PF: predicated region fallthrough
CT: control target
= control target key end

     0   :  { %s1336_s18 = smov 0   ;;  %s1338_s19 = smov 0   ;;  %s1476_s0 = inlined_call_operand.vmem [shape: bf16[16,2304], index: 0, kind: input, shape index: {}]   ;;  %s1477_s1 = inlined_call_operand.vmem [shape: bf16[2304,256], index: 1, kind: input, shape index: {}]   ;;  %s1478_s2 = inlined_call_operand.vmem [shape: f32[1,256], index: 2, kind: input, shape index: {}]   ;;  %s1479_s3 = inlined_call_operand.vmem [shape: f32[1,256], index: 3, kind: input, shape index: {}]   ;;  %s1480_s4 = inlined_call_operand.vmem [shape: bf16[16,256], index: 4, kind: input, shape index: {}]   ;;  %s1481_s5 = inlined_call_operand.vmem [shape: bf16[16,256], index: 5, kind: output, shape index: {}]  }
   0x1   :  { %s1340_s20 = smov 0   ;;  %s1342_s21 = smov 0  }
   0x2   :  { %s1344_s22 = smov 0  }
   0x3 LB: > { %s27_s23 = sadd.s32 1, %s1298_s21  ;;  %p50_p1 = scmp.ne.s32.totalorder %s1290_s19, %s1286_s18  ;;  %s1302_s22 = sphi %s1344_s22, %s15_s22   ;;  %s1298_s21 = sphi %s1342_s21, %s1485_s21   ;;  %s1294_s20 = sphi %s1340_s20, %s1484_s20   ;;  %s1290_s19 = sphi %s1338_s19, %s1483_s19   ;;  %s1286_s18 = sphi %s1336_s18, %s1482_s18  }
   0x4   : > { %p28_p0 = scmp.ge.s32.totalorder %s27_s23, 6  ;;  %p51_p2 = scmp.eq.s32.totalorder %s1302_s22, 0 }
   0x5   : > { %s43_s25 = sadd.s32 1, %s1290_s19  ;;  %p1068_p5 = scmp.ge.s32.totalorder %s1302_s22, 6 }
   0x6   : > { %s1487_s23 = smov (%p28_p0, %s27_s23), 0  ;;  %p52_p3 = por %p51_p2, %p50_p1 }
   0x7   : > { %s39_s24 = ssub.s32 %s1298_s21, %s1487_s23  ;;  %243 = sbr.rel (%p1068_p5) target bundleno = 21 (0x15), region = 28 }
   0x8   : > { %p41_p4 = scmp.eq.s32.totalorder %s39_s24, 0 }
   0xa   : > { %s1371_s26 = scalar_select %p41_p4, %s1290_s19, %s43_s25  }
   0xe   : > { %246 = sbr.rel (!%p52_p3) target bundleno = 21 (0x15), region = 32  ;;  %s248_s27 = sand.u32 (%p52_p3), 1, %s1290_s19  }
   0xf   : > { %s1136_s28 = smul.u32 (%p52_p3), 12, %s1298_s21 }
  0x10   : > { %s1144_s29 = smul.u32 (%p52_p3), 24, %s248_s27 }
  0x11   : > { %s256_s7 = scalar_lea.vmem (%p52_p3), %s1476_s0, %s1136_s28 }
  0x12   : > { %v271_v0 = vld [vmem:[%s256_s7] sm:$0xff] (%p52_p3)  ;;  %v273_v1 = vld [vmem:[%s256_s7 + $0x48] sm:$0xff] (%p52_p3)  ;;  %s250_s8 = scalar_lea.vmem (%p52_p3), [#allocation3], %s1144_s29  ;;  %v1072_v3 = vld [vmem:[%s256_s7 + $0x50] sm:$0xf] (%p52_p3) }
  0x13   : > { %v1070_v2 = vld [vmem:[%s256_s7 + $0x8] sm:$0xf] (%p52_p3)  ;;  %272 = vst [vmem:[%s250_s8] sm:$0xff] (%p52_p3), %v271_v0  ;;  %274 = vst [vmem:[%s250_s8 + $0xc] sm:$0xff] (%p52_p3), %v273_v1 }
  0x14   : > { %1071 = vst [vmem:[%s250_s8 + $0x8] sm:$0xf] (%p52_p3), %v1070_v2  ;;  %1073 = vst [vmem:[%s250_s8 + $0x14] sm:$0xf] (%p52_p3), %v1072_v3 }
  0x15 PF: > { %p1074_p6 = scmp.ge.s32.totalorder %s1302_s22, 1  ;;  %p305_p7 = scmp.lt.s32.totalorder %s1302_s22, 7 }
  0x17   : > { %p306_p8 = pnand %p1074_p6, %p305_p7 }
  0x18   : > { %s312_s9 = sand.u32 (!%p306_p8), 1, %s1286_s18   ;;  %s374_s10 = smul.u32 (!%p306_p8), 48, %s1294_s20 }
  0x19   : > { %309 = sbr.rel (%p306_p8) target bundleno = 342 (0x156), region = 62  ;;  %p1077_p10 = scmp.ne.s32.totalorder (!%p306_p8), %s1294_s20, 0 }
  0x1a   : > { %s1145_s11 = smul.u32 (!%p306_p8), 24, %s312_s9  ;;  %p376_p9 = scmp.lt.s32.totalorder (!%p306_p8), %s374_s10, 287 }
  0x1c   : > { %s1388_s16 = scalar_lea.vmem (!%p306_p8), [#allocation3], %s1145_s11 }
  0x20   : > { %s1489_s10 = smov (!%p376_p9, %s374_s10), 287  ;;  %424 = sbr.rel (%p1077_p10) target bundleno = 39 (0x27), region = 70 }
  0x21   : > { %s1137_s12 = sshll.u32 %s1489_s10, 3  ;;  %v1304_v4 = vmov (!%p1077_p10), 0.0  }
  0x22   : > { %s1386_s15 = scalar_lea.vmem %s1477_s1, %s1137_s12  ;;  %425 = vst [vmem:[#allocation2] sm:$0xff] (!%p1077_p10), %v1304_v4  ;;  %426 = vst [vmem:[#allocation2 + $0x8] sm:$0xff] (!%p1077_p10), %v1304_v4 }
  0x23   : > { %427 = vst [vmem:[#allocation2 + $0x10] sm:$0xff] (!%p1077_p10), %v1304_v4  ;;  %428 = vst [vmem:[#allocation2 + $0x18] sm:$0xff] (!%p1077_p10), %v1304_v4 }
  0x27 PF: > { %v1188_v5 = vld [vmem:[%s1386_s15 + $0x4] ss:$8 sps:$4 sm:$0xff]   ;;  %v1190_v6 = vld [vmem:[%s1386_s15] ss:$8 sps:$4 sm:$0xff]   ;;  %v1305_v7 = vmov 0   ;;  %p1129_p11 = scmp.ne.s32.totalorder %s1294_s20, 5 }
  0x28   : > { %816 = vmatprep.mubr.bf16.mxu0 %v1305_v7  ;;  %741 = vmatprep.subr.bf16.mxu1 %v1188_v5  ;;  %v1191_v8 = vld [vmem:[%s1386_s15 + $0x14] ss:$8 sps:$4 sm:$0xff]   ;;  %v1193_v9 = vld [vmem:[%s1386_s15 + $0x10] ss:$8 sps:$4 sm:$0xff]   ;;  %v1194_v10 = vld [vmem:[%s1386_s15 + $0x24] ss:$8 sps:$4 sm:$0xff]  }
  0x29   : > { %742 = vmatpush1.bf16.msra.mxu1 %v1190_v6  ;;  %v1196_v11 = vld [vmem:[%s1386_s15 + $0x20] ss:$8 sps:$4 sm:$0xff]   ;;  %v1197_v12 = vld [vmem:[%s1386_s15 + $0x34] ss:$8 sps:$4 sm:$0xff]   ;;  %v1199_v13 = vld [vmem:[%s1386_s15 + $0x30] ss:$8 sps:$4 sm:$0xff]  }
  0x2a   : > { %743 = vmatprep.subr.bf16.mxu1 %v1191_v8  ;;  %v1212_v14 = vld [vmem:[%s1386_s15 + $0x104] ss:$8 sps:$4 sm:$0xff]   ;;  %v1214_v15 = vld [vmem:[%s1386_s15 + $0x100] ss:$8 sps:$4 sm:$0xff]   ;;  %v1218_v17 = vld [vmem:[%s1386_s15 + $0x114] ss:$8 sps:$4 sm:$0xff]  }
  0x2b   : > { %v1200_v16 = vld [vmem:[%s1386_s15 + $0x44] ss:$8 sps:$4 sm:$0xff]   ;;  %784 = vmatprep.subr.bf16.mxu0 %v1212_v14  ;;  %v1220_v18 = vld [vmem:[%s1386_s15 + $0x110] ss:$8 sps:$4 sm:$0xff]   ;;  %v1202_v19 = vld [vmem:[%s1386_s15 + $0x40] ss:$8 sps:$4 sm:$0xff]  }
  0x2c   : > { %785 = vmatpush1.bf16.msra.mxu0 %v1214_v15  ;;  %v1203_v20 = vld [vmem:[%s1386_s15 + $0x54] ss:$8 sps:$4 sm:$0xff]   ;;  %v1224_v21 = vld [vmem:[%s1386_s15 + $0x124] ss:$8 sps:$4 sm:$0xff]   ;;  %v1226_v22 = vld [vmem:[%s1386_s15 + $0x120] ss:$8 sps:$4 sm:$0xff]  }
  0x2d   : > { %744 = vmatpush1.bf16.msra.mxu1 %v1193_v9  ;;  %786 = vmatprep.subr.bf16.mxu0 %v1218_v17  ;;  %v1205_v23 = vld [vmem:[%s1386_s15 + $0x50] ss:$8 sps:$4 sm:$0xff]   ;;  %v1230_v24 = vld [vmem:[%s1386_s15 + $0x134] ss:$8 sps:$4 sm:$0xff]   ;;  %v1206_v25 = vld [vmem:[%s1386_s15 + $0x64] ss:$8 sps:$4 sm:$0xff]  }
  0x2e   : > { %745 = vmatprep.subr.bf16.mxu1 %v1194_v10  ;;  %v1232_v26 = vld [vmem:[%s1386_s15 + $0x130] ss:$8 sps:$4 sm:$0xff]   ;;  %v1208_v27 = vld [vmem:[%s1386_s15 + $0x60] ss:$8 sps:$4 sm:$0xff]   ;;  %v1236_v28 = vld [vmem:[%s1386_s15 + $0x144] ss:$8 sps:$4 sm:$0xff]  }
  0x2f   : > { %v1209_v29 = vld [vmem:[%s1386_s15 + $0x74] ss:$8 sps:$4 sm:$0xff]   ;;  %v1238_v30 = vld [vmem:[%s1386_s15 + $0x140] ss:$8 sps:$4 sm:$0xff]   ;;  %v1211_v31 = vld [vmem:[%s1386_s15 + $0x70] ss:$8 sps:$4 sm:$0xff]  }
  0x30   : > { %787 = vmatpush1.bf16.msra.mxu0 %v1220_v18  ;;  %v1242_v32 = vld [vmem:[%s1386_s15 + $0x154] ss:$8 sps:$4 sm:$0xff]   ;;  %v1215_v33 = vld [vmem:[%s1386_s15 + $0x84] ss:$8 sps:$4 sm:$0xff]   ;;  %v1244_v34 = vld [vmem:[%s1386_s15 + $0x150] ss:$8 sps:$4 sm:$0xff]  }
  0x31   : > { %746 = vmatpush1.bf16.msra.mxu1 %v1196_v11  ;;  %788 = vmatprep.subr.bf16.mxu0 %v1224_v21  ;;  %v1217_v35 = vld [vmem:[%s1386_s15 + $0x80] ss:$8 sps:$4 sm:$0xff]   ;;  %v1248_v36 = vld [vmem:[%s1386_s15 + $0x164] ss:$8 sps:$4 sm:$0xff]   ;;  %v1221_v37 = vld [vmem:[%s1386_s15 + $0x94] ss:$8 sps:$4 sm:$0xff]  }
  0x32   : > { %747 = vmatprep.subr.bf16.mxu1 %v1197_v12  ;;  %v1250_v38 = vld [vmem:[%s1386_s15 + $0x160] ss:$8 sps:$4 sm:$0xff]   ;;  %v1223_v40 = vld [vmem:[%s1386_s15 + $0x90] ss:$8 sps:$4 sm:$0xff]   ;;  %v1254_v41 = vld [vmem:[%s1386_s15 + $0x174] ss:$8 sps:$4 sm:$0xff]  }
  0x33   : > { %v1263_v39 = vld [vmem:[%s1388_s16 + $0x4] ss:$12 sps:$4 sm:$0xff]   ;;  %v1260_v46 = vld [vmem:[%s1388_s16 + $0x8] ss:$12 sps:$4 sm:$0xff]   ;;  %v1261_v56 = vld [vmem:[%s1388_s16] ss:$12 sps:$4 sm:$0xff]  }
  0x34   : > { %789 = vmatpush1.bf16.msra.mxu0 %v1226_v22  ;;  %v1227_v42 = vld [vmem:[%s1386_s15 + $0xa4] ss:$8 sps:$4 sm:$0xff]   ;;  %773 = vmatprep.mubr.bf16.mxu1 %v1263_v39  ;;  %v1256_v43 = vld [vmem:[%s1386_s15 + $0x170] ss:$8 sps:$4 sm:$0xff]   ;;  %v1229_v44 = vld [vmem:[%s1386_s15 + $0xa0] ss:$8 sps:$4 sm:$0xff]  }
  0x35   : > { %748 = vmatpush1.bf16.msra.mxu1 %v1199_v13  ;;  %790 = vmatprep.subr.bf16.mxu0 %v1230_v24  ;;  %v1233_v45 = vld [vmem:[%s1386_s15 + $0xb4] ss:$8 sps:$4 sm:$0xff]   ;;  %v1235_v47 = vld [vmem:[%s1386_s15 + $0xb0] ss:$8 sps:$4 sm:$0xff]   ;;  %v1239_v48 = vld [vmem:[%s1386_s15 + $0xc4] ss:$8 sps:$4 sm:$0xff]   ;;  %v845_v13 = vlaneseq (!%p1129_p11) }
  0x36   : > { %749 = vmatprep.subr.bf16.mxu1 %v1200_v16  ;;  %v1241_v49 = vld [vmem:[%s1386_s15 + $0xc0] ss:$8 sps:$4 sm:$0xff]   ;;  %v1245_v50 = vld [vmem:[%s1386_s15 + $0xd4] ss:$8 sps:$4 sm:$0xff]   ;;  %v1247_v51 = vld [vmem:[%s1386_s15 + $0xd0] ss:$8 sps:$4 sm:$0xff]  }
  0x37   : > { %v1251_v52 = vld [vmem:[%s1386_s15 + $0xe4] ss:$8 sps:$4 sm:$0xff]   ;;  %v1253_v53 = vld [vmem:[%s1386_s15 + $0xe0] ss:$8 sps:$4 sm:$0xff]   ;;  %v1257_v54 = vld [vmem:[%s1386_s15 + $0xf4] ss:$8 sps:$4 sm:$0xff]  }
  0x38   : > { %791 = vmatpush1.bf16.msra.mxu0 %v1232_v26  ;;  %v1259_v55 = vld [vmem:[%s1386_s15 + $0xf0] ss:$8 sps:$4 sm:$0xff]   ;;  %v429_v61 = vld [vmem:[#allocation2] sm:$0xff]  ;;  %v430_v0 = vld [vmem:[#allocation2 + $0x8] sm:$0xff]  ;;  %v846_v14 = vshrl.u32 (!%p1129_p11), %v845_v13, 7 }
  0x39   : > { %750 = vmatpush1.bf16.msra.mxu1 %v1202_v19  ;;  %792 = vmatprep.subr.bf16.mxu0 %v1236_v28  ;;  %v431_v3 = vld [vmem:[#allocation2 + $0x10] sm:$0xff]  ;;  %v432_v7 = vld [vmem:[#allocation2 + $0x18] sm:$0xff]  ;;  %v843_v15 = vld [vmem:[%s1478_s2] sm:$0x3] (!%p1129_p11) }
  0x3a   : > { %751 = vmatprep.subr.bf16.mxu1 %v1203_v20  ;;  %v859_v16 = vld [vmem:[%s1479_s3] sm:$0x3] (!%p1129_p11)  ;;  %v847_v18 = vsub.s32 (!%p1129_p11), 0, %v846_v14  ;;  %v851_v19 = vsub.s32 (!%p1129_p11), 1, %v846_v14  ;;  %v876_v21 = vld [vmem:[%s1480_s4 + $0x8] sm:$0xff] (!%p1129_p11) }
  0x3b   : > { %v875_v20 = vld [vmem:[%s1480_s4] sm:$0xff] (!%p1129_p11) }
  0x3c   : > { %793 = vmatpush1.bf16.msra.mxu0 %v1238_v30  ;;  %v852_v26 = vrot.slane (!%p1129_p11), %v843_v15, %v851_v19  ;;  %v868_v28 = vrot.slane (!%p1129_p11), %v859_v16, %v851_v19  ;;  %v878_v30 = vunpack.c.h.bf16 (!%p1129_p11), %v875_v20 }
  0x3d   : > { %752 = vmatpush1.bf16.msra.mxu1 %v1205_v23  ;;  %794 = vmatprep.subr.bf16.mxu0 %v1242_v32  ;;  %v880_v32 = vunpack.c.h.bf16 (!%p1129_p11), %v876_v21 }
  0x3e   : > { %753 = vmatprep.subr.bf16.mxu1 %v1206_v25  ;;  %v848_v25 = vrot.slane (!%p1129_p11), %v843_v15, %v847_v18 }
  0x40   : > { %795 = vmatpush1.bf16.msra.mxu0 %v1244_v34 }
  0x41   : > { %754 = vmatpush1.bf16.msra.mxu1 %v1208_v27  ;;  %796 = vmatprep.subr.bf16.mxu0 %v1248_v36  ;;  %v864_v27 = vrot.slane (!%p1129_p11), %v859_v16, %v847_v18 }
  0x42   : > { %755 = vmatprep.subr.bf16.mxu1 %v1209_v29  ;;  %v877_v29 = vunpack.c.l.bf16 (!%p1129_p11), %v875_v20 }
  0x44   : > { %797 = vmatpush1.bf16.msra.mxu0 %v1250_v38 }
  0x45   : > { %756 = vmatpush1.bf16.msra.mxu1 %v1211_v31  ;;  %798 = vmatprep.subr.bf16.mxu0 %v1254_v41  ;;  %v879_v31 = vunpack.c.l.bf16 (!%p1129_p11), %v876_v21 }
  0x46   : > { %757 = vmatprep.subr.bf16.mxu1 %v1215_v33 }
  0x48   : > { %799 = vmatpush1.bf16.msra.mxu0 %v1256_v43 }
  0x49   : > { %758 = vmatpush1.bf16.msra.mxu1 %v1217_v35 }
  0x4a   : > { %759 = vmatprep.subr.bf16.mxu1 %v1221_v37 }
  0x4b   : > { %817 = vmatmul.mubr.bf16.vlgmr.msra.gmra.mrb[0].mxu0 %v1260_v46 }
  0x4d   : > { %760 = vmatpush1.bf16.msra.mxu1 %v1223_v40 }
  0x4e   : > { %761 = vmatprep.subr.bf16.mxu1 %v1227_v42 }
  0x51   : > { %762 = vmatpush1.bf16.msra.mxu1 %v1229_v44 }
  0x52   : > { %763 = vmatprep.subr.bf16.mxu1 %v1233_v45 }
  0x55   : > { %764 = vmatpush1.bf16.msra.mxu1 %v1235_v47 }
  0x56   : > { %765 = vmatprep.subr.bf16.mxu1 %v1239_v48 }
  0x59   : > { %766 = vmatpush1.bf16.msra.mxu1 %v1241_v49 }
  0x5a   : > { %767 = vmatprep.subr.bf16.mxu1 %v1245_v50 }
  0x5d   : > { %768 = vmatpush1.bf16.msra.mxu1 %v1247_v51 }
  0x5e   : > { %769 = vmatprep.subr.bf16.mxu1 %v1251_v52 }
  0x61   : > { %770 = vmatpush1.bf16.msra.mxu1 %v1253_v53 }
  0x62   : > { %771 = vmatprep.subr.bf16.mxu1 %v1257_v54 }
  0x65   : > { %772 = vmatpush1.bf16.msra.mxu1 %v1259_v55 }
  0x68   : > { %774 = vmatmul.mubr.bf16.vlgmr.msra.gmra.mrb[0].mxu1 %v1261_v56 }
 0x11e   : > { %v818_v57 = vpop.f32.mrb[0].mxu0 }
 0x11f   : > { %v820_v58 = vpop.f32.mrb[1].mxu0 }
 0x120   : > { %v822_v59 = vpop.f32.mrb[2].mxu0 }
 0x121   : > { %v824_v60 = vpop.f32.mrb[3].mxu0 }
 0x13b   : > { %v775_v62 = vpop.f32.mrb[0].mxu1 }
 0x13c   : > { %v819_v63 = vadd.f32 %v818_v57, %v775_v62  ;;  %v777_v1 = vpop.f32.mrb[1].mxu1 }
 0x13d   : > { %v821_v2 = vadd.f32 %v820_v58, %v777_v1  ;;  %v779_v4 = vpop.f32.mrb[2].mxu1  ;;  %838 = sbr.rel (%p1129_p11) target bundleno = 342 (0x156), region = 74 }
 0x13e   : > { %v827_v5 = vadd.f32 %v819_v63, %v429_v61  ;;  %v823_v6 = vadd.f32 %v822_v59, %v779_v4  ;;  %v781_v8 = vpop.f32.mrb[3].mxu1 }
 0x13f   : > { %v828_v9 = vadd.f32 %v821_v2, %v430_v0  ;;  %v825_v10 = vadd.f32 %v824_v60, %v781_v8 }
 0x140   : > { %831 = vst [vmem:[#allocation2] sm:$0xff] %v827_v5  ;;  %v829_v11 = vadd.f32 %v823_v6, %v431_v3 }
 0x141   : > { %832 = vst [vmem:[#allocation2 + $0x8] sm:$0xff] %v828_v9  ;;  %v830_v12 = vadd.f32 %v825_v10, %v432_v7 }
 0x142   : > { %833 = vst [vmem:[#allocation2 + $0x10] sm:$0xff] %v829_v11 }
 0x143   : > { %834 = vst [vmem:[#allocation2 + $0x18] sm:$0xff] %v830_v12 }
 0x147   : > { %v839_v17 = vld [vmem:[#allocation2] sm:$0xff] }
 0x148   : > { %v840_v22 = vld [vmem:[#allocation2 + $0x8] sm:$0xff]  ;;  %v855_v33 = vmul.f32 %v848_v25, %v839_v17 }
 0x149   : > { %v841_v23 = vld [vmem:[#allocation2 + $0x10] sm:$0xff]  ;;  %v856_v34 = vmul.f32 %v852_v26, %v840_v22 }
 0x14a   : > { %v842_v24 = vld [vmem:[#allocation2 + $0x18] sm:$0xff]  ;;  %v857_v35 = vmul.f32 %v848_v25, %v841_v23  ;;  %v871_v37 = vadd.f32 %v864_v27, %v855_v33 }
 0x14b   : > { %v858_v36 = vmul.f32 %v852_v26, %v842_v24  ;;  %v872_v38 = vadd.f32 %v868_v28, %v856_v34 }
 0x14c   : > { %v873_v39 = vadd.f32 %v864_v27, %v857_v35  ;;  %v881_v41 = vadd.f32 %v877_v29, %v871_v37 }
 0x14d   : > { %v874_v40 = vadd.f32 %v868_v28, %v858_v36  ;;  %v882_v42 = vadd.f32 %v878_v30, %v872_v38 }
 0x14e   : > { %v883_v43 = vadd.f32 %v879_v31, %v873_v39  ;;  %v885_v45 = vmax.f32 %v881_v41, 0.0 }
 0x14f   : > { %v884_v44 = vadd.f32 %v880_v32, %v874_v40  ;;  %v886_v46 = vmax.f32 %v882_v42, 0.0 }
 0x150   : > { %v887_v47 = vmax.f32 %v883_v43, 0.0 }
 0x151   : > { %v888_v48 = vmax.f32 %v884_v44, 0.0  ;;  %v1138_v49 = vpack.c.bf16 %v886_v46, %v885_v45 }
 0x153   : > { %v1139_v50 = vpack.c.bf16 %v888_v48, %v887_v47  ;;  %901 = vst [vmem:[%s1481_s5] sm:$0xff] %v1138_v49 }
 0x155   : > { %902 = vst [vmem:[%s1481_s5 + $0x8] sm:$0xff] %v1139_v50 }
 0x156 PF: > { %s15_s22 = sadd.s32 1, %s1302_s22   ;;  %s1482_s18 = smov %s1290_s19 }
 0x157   : > { %p12_p12 = scmp.ge.s32.totalorder %s15_s22, 8   ;;  %s1483_s19 = smov %s1371_s26 }
 0x158   : > { %s1484_s20 = smov %s1298_s21  ;;  %s1485_s21 = smov %s1487_s23 }
 0x159   :  { %14 = sbr.rel (!%p12_p12) target bundleno = 3 (0x3), region = 127 }

// kernel: resnet_forward.30
= control target key start
LH: loop header
LB: loop body
LE: loop exit
PB: predicated region body
PF: predicated region fallthrough
CT: control target
= control target key end

     0   :  { %s1231_s15 = smov 0   ;;  %s1233_s16 = smov 0   ;;  %s1365_s0 = inlined_call_operand.vmem [shape: bf16[16,2304], index: 0, kind: input, shape index: {}]   ;;  %s1366_s1 = inlined_call_operand.vmem [shape: bf16[2304,256], index: 1, kind: input, shape index: {}]   ;;  %s1367_s2 = inlined_call_operand.vmem [shape: f32[1,256], index: 2, kind: input, shape index: {}]   ;;  %s1368_s3 = inlined_call_operand.vmem [shape: f32[1,256], index: 3, kind: input, shape index: {}]   ;;  %s1369_s4 = inlined_call_operand.vmem [shape: bf16[16,256], index: 4, kind: output, shape index: {}]  }
   0x1   :  { %s1235_s17 = smov 0   ;;  %s1237_s18 = smov 0  }
   0x2   :  { %s1239_s19 = smov 0  }
   0x3 LB: > { %s26_s20 = sadd.s32 1, %s1198_s18  ;;  %p49_p1 = scmp.ne.s32.totalorder %s1190_s16, %s1186_s15  ;;  %s1202_s19 = sphi %s1239_s19, %s14_s19   ;;  %s1198_s18 = sphi %s1237_s18, %s1373_s18   ;;  %s1194_s17 = sphi %s1235_s17, %s1372_s17   ;;  %s1190_s16 = sphi %s1233_s16, %s1371_s16   ;;  %s1186_s15 = sphi %s1231_s15, %s1370_s15  }
   0x4   : > { %p27_p0 = scmp.ge.s32.totalorder %s26_s20, 6  ;;  %p50_p2 = scmp.eq.s32.totalorder %s1202_s19, 0 }
   0x5   : > { %s42_s22 = sadd.s32 1, %s1190_s16  ;;  %p968_p5 = scmp.ge.s32.totalorder %s1202_s19, 6 }
   0x6   : > { %s1375_s20 = smov (%p27_p0, %s26_s20), 0  ;;  %p51_p3 = por %p50_p2, %p49_p1 }
   0x7   : > { %s38_s21 = ssub.s32 %s1198_s18, %s1375_s20  ;;  %199 = sbr.rel (%p968_p5) target bundleno = 21 (0x15), region = 24 }
   0x8   : > { %p40_p4 = scmp.eq.s32.totalorder %s38_s21, 0 }
   0xa   : > { %s1266_s23 = scalar_select %p40_p4, %s1190_s16, %s42_s22  }
   0xe   : > { %202 = sbr.rel (!%p51_p3) target bundleno = 21 (0x15), region = 28  ;;  %s204_s24 = sand.u32 (%p51_p3), 1, %s1190_s16  }
   0xf   : > { %s1036_s25 = smul.u32 (%p51_p3), 12, %s1198_s18 }
  0x10   : > { %s1044_s26 = smul.u32 (%p51_p3), 24, %s204_s24 }
  0x11   : > { %s212_s29 = scalar_lea.vmem (%p51_p3), %s1365_s0, %s1036_s25 }
  0x12   : > { %v227_v0 = vld [vmem:[%s212_s29] sm:$0xff] (%p51_p3)  ;;  %v229_v1 = vld [vmem:[%s212_s29 + $0x48] sm:$0xff] (%p51_p3)  ;;  %s206_s30 = scalar_lea.vmem (%p51_p3), [#allocation3], %s1044_s26  ;;  %v972_v3 = vld [vmem:[%s212_s29 + $0x50] sm:$0xf] (%p51_p3) }
  0x13   : > { %v970_v2 = vld [vmem:[%s212_s29 + $0x8] sm:$0xf] (%p51_p3)  ;;  %228 = vst [vmem:[%s206_s30] sm:$0xff] (%p51_p3), %v227_v0  ;;  %230 = vst [vmem:[%s206_s30 + $0xc] sm:$0xff] (%p51_p3), %v229_v1 }
  0x14   : > { %971 = vst [vmem:[%s206_s30 + $0x8] sm:$0xf] (%p51_p3), %v970_v2  ;;  %973 = vst [vmem:[%s206_s30 + $0x14] sm:$0xf] (%p51_p3), %v972_v3 }
  0x15 PF: > { %p974_p6 = scmp.ge.s32.totalorder %s1202_s19, 1  ;;  %p261_p7 = scmp.lt.s32.totalorder %s1202_s19, 7 }
  0x17   : > { %p262_p8 = pnand %p974_p6, %p261_p7 }
  0x18   : > { %s268_s5 = sand.u32 (!%p262_p8), 1, %s1186_s15   ;;  %s318_s6 = smul.u32 (!%p262_p8), 48, %s1194_s17 }
  0x19   : > { %265 = sbr.rel (%p262_p8) target bundleno = 340 (0x154), region = 58  ;;  %p977_p10 = scmp.ne.s32.totalorder (!%p262_p8), %s1194_s17, 0 }
  0x1a   : > { %s1045_s7 = smul.u32 (!%p262_p8), 24, %s268_s5  ;;  %p320_p9 = scmp.lt.s32.totalorder (!%p262_p8), %s318_s6, 287 }
  0x1c   : > { %s1283_s12 = scalar_lea.vmem (!%p262_p8), [#allocation3], %s1045_s7 }
  0x20   : > { %s1377_s6 = smov (!%p320_p9, %s318_s6), 287  ;;  %356 = sbr.rel (%p977_p10) target bundleno = 39 (0x27), region = 66 }
  0x21   : > { %s1037_s8 = sshll.u32 %s1377_s6, 3  ;;  %v1204_v4 = vmov (!%p977_p10), 0.0  }
  0x22   : > { %s1281_s11 = scalar_lea.vmem %s1366_s1, %s1037_s8  ;;  %357 = vst [vmem:[#allocation2] sm:$0xff] (!%p977_p10), %v1204_v4  ;;  %358 = vst [vmem:[#allocation2 + $0x8] sm:$0xff] (!%p977_p10), %v1204_v4 }
  0x23   : > { %359 = vst [vmem:[#allocation2 + $0x10] sm:$0xff] (!%p977_p10), %v1204_v4  ;;  %360 = vst [vmem:[#allocation2 + $0x18] sm:$0xff] (!%p977_p10), %v1204_v4 }
  0x27 PF: > { %v1088_v5 = vld [vmem:[%s1281_s11 + $0x4] ss:$8 sps:$4 sm:$0xff]   ;;  %v1090_v6 = vld [vmem:[%s1281_s11] ss:$8 sps:$4 sm:$0xff]   ;;  %v1205_v7 = vmov 0   ;;  %p1029_p11 = scmp.ne.s32.totalorder %s1194_s17, 5 }
  0x28   : > { %748 = vmatprep.mubr.bf16.mxu0 %v1205_v7  ;;  %673 = vmatprep.subr.bf16.mxu1 %v1088_v5  ;;  %v1091_v8 = vld [vmem:[%s1281_s11 + $0x14] ss:$8 sps:$4 sm:$0xff]   ;;  %v1093_v9 = vld [vmem:[%s1281_s11 + $0x10] ss:$8 sps:$4 sm:$0xff]   ;;  %v1094_v10 = vld [vmem:[%s1281_s11 + $0x24] ss:$8 sps:$4 sm:$0xff]  }
  0x29   : > { %674 = vmatpush1.bf16.msra.mxu1 %v1090_v6  ;;  %v1096_v11 = vld [vmem:[%s1281_s11 + $0x20] ss:$8 sps:$4 sm:$0xff]   ;;  %v1097_v12 = vld [vmem:[%s1281_s11 + $0x34] ss:$8 sps:$4 sm:$0xff]   ;;  %v1099_v13 = vld [vmem:[%s1281_s11 + $0x30] ss:$8 sps:$4 sm:$0xff]  }
  0x2a   : > { %675 = vmatprep.subr.bf16.mxu1 %v1091_v8  ;;  %v1112_v14 = vld [vmem:[%s1281_s11 + $0x104] ss:$8 sps:$4 sm:$0xff]   ;;  %v1114_v15 = vld [vmem:[%s1281_s11 + $0x100] ss:$8 sps:$4 sm:$0xff]   ;;  %v1118_v17 = vld [vmem:[%s1281_s11 + $0x114] ss:$8 sps:$4 sm:$0xff]  }
  0x2b   : > { %v1100_v16 = vld [vmem:[%s1281_s11 + $0x44] ss:$8 sps:$4 sm:$0xff]   ;;  %716 = vmatprep.subr.bf16.mxu0 %v1112_v14  ;;  %v1120_v18 = vld [vmem:[%s1281_s11 + $0x110] ss:$8 sps:$4 sm:$0xff]   ;;  %v1102_v19 = vld [vmem:[%s1281_s11 + $0x40] ss:$8 sps:$4 sm:$0xff]  }
  0x2c   : > { %717 = vmatpush1.bf16.msra.mxu0 %v1114_v15  ;;  %v1103_v20 = vld [vmem:[%s1281_s11 + $0x54] ss:$8 sps:$4 sm:$0xff]   ;;  %v1124_v21 = vld [vmem:[%s1281_s11 + $0x124] ss:$8 sps:$4 sm:$0xff]   ;;  %v1126_v22 = vld [vmem:[%s1281_s11 + $0x120] ss:$8 sps:$4 sm:$0xff]  }
  0x2d   : > { %676 = vmatpush1.bf16.msra.mxu1 %v1093_v9  ;;  %718 = vmatprep.subr.bf16.mxu0 %v1118_v17  ;;  %v1105_v23 = vld [vmem:[%s1281_s11 + $0x50] ss:$8 sps:$4 sm:$0xff]   ;;  %v1130_v24 = vld [vmem:[%s1281_s11 + $0x134] ss:$8 sps:$4 sm:$0xff]   ;;  %v1106_v25 = vld [vmem:[%s1281_s11 + $0x64] ss:$8 sps:$4 sm:$0xff]  }
  0x2e   : > { %677 = vmatprep.subr.bf16.mxu1 %v1094_v10  ;;  %v1132_v26 = vld [vmem:[%s1281_s11 + $0x130] ss:$8 sps:$4 sm:$0xff]   ;;  %v1108_v27 = vld [vmem:[%s1281_s11 + $0x60] ss:$8 sps:$4 sm:$0xff]   ;;  %v1136_v28 = vld [vmem:[%s1281_s11 + $0x144] ss:$8 sps:$4 sm:$0xff]  }
  0x2f   : > { %v1109_v29 = vld [vmem:[%s1281_s11 + $0x74] ss:$8 sps:$4 sm:$0xff]   ;;  %v1138_v30 = vld [vmem:[%s1281_s11 + $0x140] ss:$8 sps:$4 sm:$0xff]   ;;  %v1111_v31 = vld [vmem:[%s1281_s11 + $0x70] ss:$8 sps:$4 sm:$0xff]  }
  0x30   : > { %719 = vmatpush1.bf16.msra.mxu0 %v1120_v18  ;;  %v1142_v32 = vld [vmem:[%s1281_s11 + $0x154] ss:$8 sps:$4 sm:$0xff]   ;;  %v1115_v33 = vld [vmem:[%s1281_s11 + $0x84] ss:$8 sps:$4 sm:$0xff]   ;;  %v1144_v34 = vld [vmem:[%s1281_s11 + $0x150] ss:$8 sps:$4 sm:$0xff]  }
  0x31   : > { %678 = vmatpush1.bf16.msra.mxu1 %v1096_v11  ;;  %720 = vmatprep.subr.bf16.mxu0 %v1124_v21  ;;  %v1117_v35 = vld [vmem:[%s1281_s11 + $0x80] ss:$8 sps:$4 sm:$0xff]   ;;  %v1148_v36 = vld [vmem:[%s1281_s11 + $0x164] ss:$8 sps:$4 sm:$0xff]   ;;  %v1121_v37 = vld [vmem:[%s1281_s11 + $0x94] ss:$8 sps:$4 sm:$0xff]  }
  0x32   : > { %679 = vmatprep.subr.bf16.mxu1 %v1097_v12  ;;  %v1150_v38 = vld [vmem:[%s1281_s11 + $0x160] ss:$8 sps:$4 sm:$0xff]   ;;  %v1123_v40 = vld [vmem:[%s1281_s11 + $0x90] ss:$8 sps:$4 sm:$0xff]   ;;  %v1154_v41 = vld [vmem:[%s1281_s11 + $0x174] ss:$8 sps:$4 sm:$0xff]  }
  0x33   : > { %v1163_v39 = vld [vmem:[%s1283_s12 + $0x4] ss:$12 sps:$4 sm:$0xff]   ;;  %v1160_v46 = vld [vmem:[%s1283_s12 + $0x8] ss:$12 sps:$4 sm:$0xff]   ;;  %v1161_v56 = vld [vmem:[%s1283_s12] ss:$12 sps:$4 sm:$0xff]  }
  0x34   : > { %721 = vmatpush1.bf16.msra.mxu0 %v1126_v22  ;;  %v1127_v42 = vld [vmem:[%s1281_s11 + $0xa4] ss:$8 sps:$4 sm:$0xff]   ;;  %705 = vmatprep.mubr.bf16.mxu1 %v1163_v39  ;;  %v1156_v43 = vld [vmem:[%s1281_s11 + $0x170] ss:$8 sps:$4 sm:$0xff]   ;;  %v1129_v44 = vld [vmem:[%s1281_s11 + $0xa0] ss:$8 sps:$4 sm:$0xff]  }
  0x35   : > { %680 = vmatpush1.bf16.msra.mxu1 %v1099_v13  ;;  %722 = vmatprep.subr.bf16.mxu0 %v1130_v24  ;;  %v1133_v45 = vld [vmem:[%s1281_s11 + $0xb4] ss:$8 sps:$4 sm:$0xff]   ;;  %v1135_v47 = vld [vmem:[%s1281_s11 + $0xb0] ss:$8 sps:$4 sm:$0xff]   ;;  %v1139_v48 = vld [vmem:[%s1281_s11 + $0xc4] ss:$8 sps:$4 sm:$0xff]   ;;  %v777_v13 = vlaneseq (!%p1029_p11) }
  0x36   : > { %681 = vmatprep.subr.bf16.mxu1 %v1100_v16  ;;  %v1141_v49 = vld [vmem:[%s1281_s11 + $0xc0] ss:$8 sps:$4 sm:$0xff]   ;;  %v1145_v50 = vld [vmem:[%s1281_s11 + $0xd4] ss:$8 sps:$4 sm:$0xff]   ;;  %v1147_v51 = vld [vmem:[%s1281_s11 + $0xd0] ss:$8 sps:$4 sm:$0xff]  }
  0x37   : > { %v1151_v52 = vld [vmem:[%s1281_s11 + $0xe4] ss:$8 sps:$4 sm:$0xff]   ;;  %v1153_v53 = vld [vmem:[%s1281_s11 + $0xe0] ss:$8 sps:$4 sm:$0xff]   ;;  %v1157_v54 = vld [vmem:[%s1281_s11 + $0xf4] ss:$8 sps:$4 sm:$0xff]  }
  0x38   : > { %723 = vmatpush1.bf16.msra.mxu0 %v1132_v26  ;;  %v1159_v55 = vld [vmem:[%s1281_s11 + $0xf0] ss:$8 sps:$4 sm:$0xff]   ;;  %v361_v61 = vld [vmem:[#allocation2] sm:$0xff]  ;;  %v362_v0 = vld [vmem:[#allocation2 + $0x8] sm:$0xff]  ;;  %v778_v14 = vshrl.u32 (!%p1029_p11), %v777_v13, 7 }
  0x39   : > { %682 = vmatpush1.bf16.msra.mxu1 %v1102_v19  ;;  %724 = vmatprep.subr.bf16.mxu0 %v1136_v28  ;;  %v363_v3 = vld [vmem:[#allocation2 + $0x10] sm:$0xff]  ;;  %v364_v7 = vld [vmem:[#allocation2 + $0x18] sm:$0xff]  ;;  %v775_v15 = vld [vmem:[%s1367_s2] sm:$0x3] (!%p1029_p11) }
  0x3a   : > { %683 = vmatprep.subr.bf16.mxu1 %v1103_v20  ;;  %v791_v16 = vld [vmem:[%s1368_s3] sm:$0x3] (!%p1029_p11)  ;;  %v779_v18 = vsub.s32 (!%p1029_p11), 0, %v778_v14  ;;  %v783_v19 = vsub.s32 (!%p1029_p11), 1, %v778_v14 }
  0x3c   : > { %725 = vmatpush1.bf16.msra.mxu0 %v1138_v30  ;;  %v784_v24 = vrot.slane (!%p1029_p11), %v775_v15, %v783_v19  ;;  %v800_v26 = vrot.slane (!%p1029_p11), %v791_v16, %v783_v19 }
  0x3d   : > { %684 = vmatpush1.bf16.msra.mxu1 %v1105_v23  ;;  %726 = vmatprep.subr.bf16.mxu0 %v1142_v32  ;;  %v780_v23 = vrot.slane (!%p1029_p11), %v775_v15, %v779_v18 }
  0x3e   : > { %685 = vmatprep.subr.bf16.mxu1 %v1106_v25  ;;  %v796_v25 = vrot.slane (!%p1029_p11), %v791_v16, %v779_v18 }
  0x40   : > { %727 = vmatpush1.bf16.msra.mxu0 %v1144_v34 }
  0x41   : > { %686 = vmatpush1.bf16.msra.mxu1 %v1108_v27  ;;  %728 = vmatprep.subr.bf16.mxu0 %v1148_v36 }
  0x42   : > { %687 = vmatprep.subr.bf16.mxu1 %v1109_v29 }
  0x44   : > { %729 = vmatpush1.bf16.msra.mxu0 %v1150_v38 }
  0x45   : > { %688 = vmatpush1.bf16.msra.mxu1 %v1111_v31  ;;  %730 = vmatprep.subr.bf16.mxu0 %v1154_v41 }
  0x46   : > { %689 = vmatprep.subr.bf16.mxu1 %v1115_v33 }
  0x48   : > { %731 = vmatpush1.bf16.msra.mxu0 %v1156_v43 }
  0x49   : > { %690 = vmatpush1.bf16.msra.mxu1 %v1117_v35 }
  0x4a   : > { %691 = vmatprep.subr.bf16.mxu1 %v1121_v37 }
  0x4b   : > { %749 = vmatmul.mubr.bf16.vlgmr.msra.gmra.mrb[0].mxu0 %v1160_v46 }
  0x4d   : > { %692 = vmatpush1.bf16.msra.mxu1 %v1123_v40 }
  0x4e   : > { %693 = vmatprep.subr.bf16.mxu1 %v1127_v42 }
  0x51   : > { %694 = vmatpush1.bf16.msra.mxu1 %v1129_v44 }
  0x52   : > { %695 = vmatprep.subr.bf16.mxu1 %v1133_v45 }
  0x55   : > { %696 = vmatpush1.bf16.msra.mxu1 %v1135_v47 }
  0x56   : > { %697 = vmatprep.subr.bf16.mxu1 %v1139_v48 }
  0x59   : > { %698 = vmatpush1.bf16.msra.mxu1 %v1141_v49 }
  0x5a   : > { %699 = vmatprep.subr.bf16.mxu1 %v1145_v50 }
  0x5d   : > { %700 = vmatpush1.bf16.msra.mxu1 %v1147_v51 }
  0x5e   : > { %701 = vmatprep.subr.bf16.mxu1 %v1151_v52 }
  0x61   : > { %702 = vmatpush1.bf16.msra.mxu1 %v1153_v53 }
  0x62   : > { %703 = vmatprep.subr.bf16.mxu1 %v1157_v54 }
  0x65   : > { %704 = vmatpush1.bf16.msra.mxu1 %v1159_v55 }
  0x68   : > { %706 = vmatmul.mubr.bf16.vlgmr.msra.gmra.mrb[0].mxu1 %v1161_v56 }
 0x11e   : > { %v750_v57 = vpop.f32.mrb[0].mxu0 }
 0x11f   : > { %v752_v58 = vpop.f32.mrb[1].mxu0 }
 0x120   : > { %v754_v59 = vpop.f32.mrb[2].mxu0 }
 0x121   : > { %v756_v60 = vpop.f32.mrb[3].mxu0 }
 0x13b   : > { %v707_v62 = vpop.f32.mrb[0].mxu1 }
 0x13c   : > { %v751_v63 = vadd.f32 %v750_v57, %v707_v62  ;;  %v709_v1 = vpop.f32.mrb[1].mxu1 }
 0x13d   : > { %v753_v2 = vadd.f32 %v752_v58, %v709_v1  ;;  %v711_v4 = vpop.f32.mrb[2].mxu1  ;;  %770 = sbr.rel (%p1029_p11) target bundleno = 340 (0x154), region = 70 }
 0x13e   : > { %v759_v5 = vadd.f32 %v751_v63, %v361_v61  ;;  %v755_v6 = vadd.f32 %v754_v59, %v711_v4  ;;  %v713_v8 = vpop.f32.mrb[3].mxu1 }
 0x13f   : > { %v760_v9 = vadd.f32 %v753_v2, %v362_v0  ;;  %v757_v10 = vadd.f32 %v756_v60, %v713_v8 }
 0x140   : > { %763 = vst [vmem:[#allocation2] sm:$0xff] %v759_v5  ;;  %v761_v11 = vadd.f32 %v755_v6, %v363_v3 }
 0x141   : > { %764 = vst [vmem:[#allocation2 + $0x8] sm:$0xff] %v760_v9  ;;  %v762_v12 = vadd.f32 %v757_v10, %v364_v7 }
 0x142   : > { %765 = vst [vmem:[#allocation2 + $0x10] sm:$0xff] %v761_v11 }
 0x143   : > { %766 = vst [vmem:[#allocation2 + $0x18] sm:$0xff] %v762_v12 }
 0x147   : > { %v771_v17 = vld [vmem:[#allocation2] sm:$0xff] }
 0x148   : > { %v772_v20 = vld [vmem:[#allocation2 + $0x8] sm:$0xff]  ;;  %v787_v27 = vmul.f32 %v780_v23, %v771_v17 }
 0x149   : > { %v773_v21 = vld [vmem:[#allocation2 + $0x10] sm:$0xff]  ;;  %v788_v28 = vmul.f32 %v784_v24, %v772_v20 }
 0x14a   : > { %v774_v22 = vld [vmem:[#allocation2 + $0x18] sm:$0xff]  ;;  %v789_v29 = vmul.f32 %v780_v23, %v773_v21  ;;  %v803_v31 = vadd.f32 %v796_v25, %v787_v27 }
 0x14b   : > { %v790_v30 = vmul.f32 %v784_v24, %v774_v22  ;;  %v804_v32 = vadd.f32 %v800_v26, %v788_v28 }
 0x14c   : > { %v805_v33 = vadd.f32 %v796_v25, %v789_v29  ;;  %v807_v35 = vmax.f32 %v803_v31, 0.0 }
 0x14d   : > { %v806_v34 = vadd.f32 %v800_v26, %v790_v30  ;;  %v808_v36 = vmax.f32 %v804_v32, 0.0 }
 0x14e   : > { %v809_v37 = vmax.f32 %v805_v33, 0.0 }
 0x14f   : > { %v810_v38 = vmax.f32 %v806_v34, 0.0  ;;  %v1038_v39 = vpack.c.bf16 %v808_v36, %v807_v35 }
 0x151   : > { %v1039_v40 = vpack.c.bf16 %v810_v38, %v809_v37  ;;  %823 = vst [vmem:[%s1369_s4] sm:$0xff] %v1038_v39 }
 0x153   : > { %824 = vst [vmem:[%s1369_s4 + $0x8] sm:$0xff] %v1039_v40 }
 0x154 PF: > { %s14_s19 = sadd.s32 1, %s1202_s19   ;;  %s1370_s15 = smov %s1190_s16 }
 0x155   : > { %p11_p12 = scmp.ge.s32.totalorder %s14_s19, 8   ;;  %s1371_s16 = smov %s1266_s23 }
 0x156   : > { %s1372_s17 = smov %s1198_s18  ;;  %s1373_s18 = smov %s1375_s20 }
 0x157   :  { %13 = sbr.rel (!%p11_p12) target bundleno = 3 (0x3), region = 120 }

</bundles_post_ra>
